<compile_context>
chip_gen: v7x
topology: tpu7x:2x2x1
jax: 0.10.0
libtpu: 0.0.40
codegen_flags: <defaults>
</compile_context>

<pallas_src>
import functools

import jax
import jax.numpy as jnp
import numpy as np
from jax.experimental import pallas as pl
from jax.experimental.pallas import tpu as pltpu


def _round_up(v, m):
    return (v + m - 1) // m * m


# ----------------------------------------------------------------------------
# Pallas kernel: full GraphGRU forward (all `depth` iterations), VMEM resident.
# All shapes arriving here are padded/aligned by graphgru_prepare/apply.
# ----------------------------------------------------------------------------
def graphgru_kernel(h_ref, x_ref, onehot_ref, adj_ref, mask_ref,
                    wxc_ref, bxc_ref, uri_ref, wzh_ref, whh_ref,
                    out_ref, *, depth):
    f32 = jnp.float32
    Np, Hp = h_ref.shape                  # Np mult of 8, Hp mult of 128
    NM = onehot_ref.shape[0]              # Np * Mp
    Mp = NM // Np
    cdt = uri_ref.dtype                   # MXU compute dtype (bf16 perf / f32 exact)

    onehot = onehot_ref[...]              # (NM, Np)  row-gather operator, in cdt
    adj = adj_ref[...]                    # (Np, Np)  neighbour-count matrix, f32
    mask = mask_ref[...]                  # (Np, Hp)  zeros row 0 and padded rows
    uri = uri_ref[...]                    # (Hp, 2Hp) = [I | U_r]
    wzh = wzh_ref[...]                    # (Hp, Hp)
    whh = whh_ref[...]                    # (Hp, Hp)

    # Fused x-projections for all three gates (one 3H-wide MXU pass), biases folded
    # in (b_z, b_{U_r}, b_h); hoisted out of the depth loop.
    xproj = jnp.dot(x_ref[...], wxc_ref[...],
                    preferred_element_type=f32) + bxc_ref[...]          # (Np, 3Hp)
    xz = xproj[:, :Hp]
    xr = xproj[:, Hp:2 * Hp]              # already includes b_{U_r}
    xh = xproj[:, 2 * Hp:]
    xr_b = jnp.broadcast_to(xr[:, None, :], (Np, Mp, Hp))               # hoisted

    h = h_ref[...]                        # (Np, Hp) f32 recurrent state

    # depth is small and static -> Python unroll (use lax.fori_loop for large depth).
    for _ in range(depth):
        hc = h.astype(cdt)

        # [h, U_r h] in a single 2H-wide MXU pass (identity||U_r avoids an in-kernel
        # concatenate), then gather BOTH halves with one wide one-hot matmul.
        hext = jnp.dot(hc, uri, preferred_element_type=f32)             # (Np, 2Hp)
        gathered = jnp.dot(onehot, hext.astype(cdt),
                           preferred_element_type=f32)                  # (NM, 2Hp)
        h_nei = gathered[:, :Hp].reshape(Np, Mp, Hp)                    # h[mess_graph]
        r2 = gathered[:, Hp:].reshape(Np, Mp, Hp)                       # (U_r h)[mess_graph]

        # Neighbour sum in full f32 (exact adjacency-count matmul): keeps the
        # dominant linear recurrence path exact even in the bf16 perf mode.
        sum_h = jnp.dot(adj, h, preferred_element_type=f32)             # (Np, Hp)

        # z gate: sigmoid(W_z([x, sum_h]))
        z = jax.nn.sigmoid(
            xz + jnp.dot(sum_h.astype(cdt), wzh, preferred_element_type=f32))

        # r gate: sigmoid(W_r(x) + U_r(h_nei) + b_{U_r})
        r = jax.nn.sigmoid(xr_b + r2)                                   # (Np, Mp, Hp)

        # candidate state
        sum_gated = jnp.sum(r * h_nei, axis=1)                          # (Np, Hp)
        pre_h = jnp.tanh(
            xh + jnp.dot(sum_gated.astype(cdt), whh, preferred_element_type=f32))

        # GRU update + mask (row 0 and padded/sentinel rows stay exactly zero).
        h = (1.0 - z) * sum_h + z * pre_h
        h = h * mask

    out_ref[...] = h


# ----------------------------------------------------------------------------
# One-time preparation (per model / per graph): pad+cast+fuse weights, build the
# gather / adjacency operators and the row mask.  Deliberately OUTSIDE the jitted
# per-call forward (the review flagged per-call operator construction as the main
# wall-clock cost at small scale).
# ----------------------------------------------------------------------------
def graphgru_prepare(params, mess_graph, mxu_dtype=jnp.bfloat16):
    wzx, wzh, bz, wr, ur, bur, whx, whh, bh = params
    f32 = jnp.float32
    N, M = mess_graph.shape
    D, H = wzx.shape

    Hp = _round_up(H, 128)        # lane-dense hidden dim
    Dp = _round_up(D, 128)        # lane-dense input dim
    Mp = _round_up(M, 8)          # sublane-aligned neighbour count
    Np = _round_up(N + 1, 8)      # +1 guaranteed-zero sentinel row for padded slots

    def pad2(a, rows, cols):
        return jnp.pad(a.astype(f32), ((0, rows - a.shape[0]), (0, cols - a.shape[1])))

    # Fused x-projection weights / biases for the z, r, h gates: (Dp, 3Hp), (1, 3Hp).
    wxc = jnp.concatenate([pad2(wzx, Dp, Hp), pad2(wr, Dp, Hp), pad2(whx, Dp, Hp)],
                          axis=1).astype(mxu_dtype)
    bxc = jnp.concatenate([pad2(bz, 1, Hp), pad2(bur, 1, Hp), pad2(bh, 1, Hp)], axis=1)
    # [I | U_r] so that h @ [I | U_r] = [h, U_r h] in a single 2H-wide MXU pass.
    uri = jnp.concatenate([jnp.eye(Hp, dtype=f32), pad2(ur, Hp, Hp)],
                          axis=1).astype(mxu_dtype)
    wzh_p = pad2(wzh, Hp, Hp).astype(mxu_dtype)
    whh_p = pad2(whh, Hp, Hp).astype(mxu_dtype)

    # Padded neighbour slots / padded rows point at the zero sentinel row N
    # (NOT row 0 -- h[0] may be nonzero before the first iteration).
    sentinel = N
    mgp = jnp.pad(mess_graph.astype(jnp.int32),
                  ((0, Np - N), (0, Mp - M)), constant_values=sentinel)
    cols = jnp.arange(Np, dtype=jnp.int32)
    onehot = (mgp.reshape(-1)[:, None] == cols[None, :]).astype(mxu_dtype)   # (NM, Np)
    adj = (mgp[:, :, None] == cols[None, None, :]).sum(axis=1).astype(f32)   # (Np, Np)

    rows = jnp.arange(Np, dtype=jnp.int32)
    mask = (((rows != 0) & (rows < N)).astype(f32)[:, None]
            * jnp.ones((Np, Hp), f32))                                       # (Np, Hp)

    return dict(onehot=onehot, adj=adj, mask=mask, wxc=wxc, bxc=bxc,
                uri=uri, wzh=wzh_p, whh=whh_p)


# ----------------------------------------------------------------------------
# Jitted hot path: pad h / x, launch one grid-less VMEM-resident pallas_call.
# ----------------------------------------------------------------------------
@functools.partial(jax.jit, static_argnames=("depth",))
def graphgru_apply(h, x, packed, *, depth):
    f32 = jnp.float32
    N, H = h.shape
    D = x.shape[1]

    onehot, adj, mask = packed["onehot"], packed["adj"], packed["mask"]
    wxc, bxc, uri = packed["wxc"], packed["bxc"], packed["uri"]
    wzh, whh = packed["wzh"], packed["whh"]

    Np, Hp = mask.shape
    Dp = wxc.shape[0]
    NM = onehot.shape[0]
    cdt = wxc.dtype

    hp = jnp.pad(h.astype(f32), ((0, Np - N), (0, Hp - H)))
    xp = jnp.pad(x.astype(f32), ((0, Np - N), (0, Dp - D))).astype(cdt)

    operands = (hp, xp, onehot, adj, mask, wxc, bxc, uri, wzh, whh)

    # Advisory cost estimate for XLA's scheduler.
    macs = (Np * Dp * 3 * Hp
            + depth * (Np * Hp * 2 * Hp      # h @ [I|U_r]
                       + NM * Np * 2 * Hp    # fused one-hot gather
                       + Np * Np * Hp        # adjacency sum (f32)
                       + 2 * Np * Hp * Hp))  # z / pre_h projections
    transcendentals = depth * (NM + 2 * Np) * Hp
    bytes_accessed = (sum(int(np.prod(a.shape)) * a.dtype.itemsize for a in operands)
                      + Np * Hp * 4)

    out = pl.pallas_call(
        functools.partial(graphgru_kernel, depth=depth),
        out_shape=jax.ShapeDtypeStruct((Np, Hp), f32),
        in_specs=[pl.BlockSpec(memory_space=pltpu.MemorySpace.VMEM)] * len(operands),
        out_specs=pl.BlockSpec(memory_space=pltpu.MemorySpace.VMEM),
        input_output_aliases={0: 0},     # reuse the padded-h buffer for the output
        compiler_params=pltpu.CompilerParams(vmem_limit_bytes=32 * 1024 * 1024),
        cost_estimate=pl.CostEstimate(flops=2 * macs,
                                      transcendentals=transcendentals,
                                      bytes_accessed=bytes_accessed),
    )(*operands)

    return out[:N, :H]


# ----------------------------------------------------------------------------
# Pure-JAX references.
# ----------------------------------------------------------------------------
def graphgru_ref(h, x, mg, params, depth):
    """Faithful f32 mirror of the PyTorch module."""
    wzx, wzh, bz, wr, ur, bur, whx, whh, bh = params
    N = h.shape[0]
    mask = jnp.ones((N, 1), jnp.float32).at[0].set(0.0)
    for _ in range(depth):
        h_nei = h[mg]                                   # (N, M, H)
        sum_h = h_nei.sum(axis=1)
        z = jax.nn.sigmoid(x @ wzx + sum_h @ wzh + bz)
        r = jax.nn.sigmoid((x @ wr)[:, None, :] + h_nei @ ur + bur)
        sum_gated_h = (r * h_nei).sum(axis=1)
        pre_h = jnp.tanh(x @ whx + sum_gated_h @ whh + bh)
        h = (1.0 - z) * sum_h + z * pre_h
        h = h * mask
    return h


def graphgru_matched_ref(h, x, mg, params, depth, cdt):
    """Mirror of the kernel's *precision model* (cdt matmul operands, f32 accumulate,
    exact f32 sum_h) -- used to validate the bf16 performance path."""
    wzx, wzh, bz, wr, ur, bur, whx, whh, bh = params
    f32 = jnp.float32
    N = h.shape[0]
    mask = jnp.ones((N, 1), f32).at[0].set(0.0)

    def dot(a, b):
        return jnp.dot(a.astype(cdt), b.astype(cdt), preferred_element_type=f32)

    xz = dot(x, wzx) + bz
    xr = dot(x, wr) + bur
    xh = dot(x, whx) + bh
    for _ in range(depth):
        hc = h.astype(cdt).astype(f32)
        uh = dot(h, ur).astype(cdt).astype(f32)
        h_nei = hc[mg]
        r2 = uh[mg]
        sum_h = h[mg].sum(axis=1)                       # exact f32, as in the kernel
        z = jax.nn.sigmoid(xz + dot(sum_h, wzh))
        r = jax.nn.sigmoid(xr[:, None, :] + r2)
        sum_gated = (r * h_nei).sum(axis=1)
        pre_h = jnp.tanh(xh + dot(sum_gated, whh))
        h = (1.0 - z) * sum_h + z * pre_h
        h = h * mask
    return h


# ----------------------------------------------------------------------------
# Deterministic parameter init (PyTorch nn.Linear-style uniform(-1/sqrt(fan_in))).
# ----------------------------------------------------------------------------
def init_params(key, input_size, hidden_size):
    D, H = input_size, hidden_size

    def lin(k, fan_in, shape):
        bound = 1.0 / np.sqrt(fan_in)
        return jax.random.uniform(k, shape, jnp.float32, -bound, bound)

    ks = jax.random.split(key, 7)
    wz = lin(ks[0], D + H, (D + H, H))
    bz = lin(ks[1], D + H, (1, H))
    wzx, wzh = wz[:D], wz[D:]
    wr = lin(ks[2], D, (D, H))
    ur = lin(ks[3], H, (H, H))
    bur = lin(ks[4], H, (1, H))
    wh = lin(ks[5], D + H, (D + H, H))
    bh = lin(ks[6], D + H, (1, H))
    whx, whh = wh[:D], wh[D:]
    return (wzx, wzh, bz, wr, ur, bur, whx, whh, bh)


if __name__ == "__main__":
    # Small shapes consistent with the module's forward:
    #   N messages, H hidden, D input, M max neighbours, depth iterations.
    N, H, D, M, DEPTH = 16, 32, 16, 6, 3

    key = jax.random.PRNGKey(0)
    k_h, k_x, k_g, k_p = jax.random.split(key, 4)

    h0 = jax.random.normal(k_h, (N, H), jnp.float32)
    x = jax.random.normal(k_x, (N, D), jnp.float32)
    mess_graph = jax.random.randint(k_g, (N, M), 0, N, jnp.int32)
    params = init_params(k_p, D, H)

    ref = graphgru_ref(h0, x, mess_graph, params, DEPTH)

    # Exact-precision path (f32 MXU operands): tight semantic check vs the reference.
    packed_f32 = graphgru_prepare(params, mess_graph, mxu_dtype=jnp.float32)
    out_f32 = jax.block_until_ready(graphgru_apply(h0, x, packed_f32, depth=DEPTH))
    np.testing.assert_allclose(np.asarray(out_f32), np.asarray(ref),
                               rtol=2e-3, atol=2e-3)

    # Performance path (bf16 MXU operands, f32 accumulation, exact f32 sum_h):
    # validated against a reference with the same precision model.
    packed_bf16 = graphgru_prepare(params, mess_graph, mxu_dtype=jnp.bfloat16)
    out_bf16 = jax.block_until_ready(graphgru_apply(h0, x, packed_bf16, depth=DEPTH))
    ref_bf16 = graphgru_matched_ref(h0, x, mess_graph, params, DEPTH, jnp.bfloat16)
    assert np.all(np.isfinite(np.asarray(out_bf16)))
    np.testing.assert_allclose(np.asarray(out_bf16), np.asarray(ref_bf16),
                               rtol=3e-2, atol=3e-2)

    print("KERNEL_OK")
</pallas_src>

<mosaic_0001>
module attributes {stable_mosaic.version = 11 : i64} {
  func.func @graphgru_kernel(%arg0: memref<24x128xf32, #tpu.memory_space<vmem>>, %arg1: memref<24x128xf32, #tpu.memory_space<vmem>>, %arg2: memref<192x24xf32, #tpu.memory_space<vmem>>, %arg3: memref<24x24xf32, #tpu.memory_space<vmem>>, %arg4: memref<24x128xf32, #tpu.memory_space<vmem>>, %arg5: memref<128x384xf32, #tpu.memory_space<vmem>>, %arg6: memref<1x384xf32, #tpu.memory_space<vmem>>, %arg7: memref<128x256xf32, #tpu.memory_space<vmem>>, %arg8: memref<128x128xf32, #tpu.memory_space<vmem>>, %arg9: memref<128x128xf32, #tpu.memory_space<vmem>>, %arg10: memref<24x128xf32, #tpu.memory_space<vmem>>) attributes {dimension_semantics = [], scalar_prefetch = 0 : i64, scratch_operands = 0 : i64, tpu.core_type = #tpu.core_type<tc>} {
    %c0 = arith.constant 0 : index
    %c0_0 = arith.constant 0 : index
    %0 = vector.load %arg2[%c0, %c0_0] : memref<192x24xf32, #tpu.memory_space<vmem>>, vector<192x24xf32>
    %c0_1 = arith.constant 0 : index
    %c0_2 = arith.constant 0 : index
    %1 = vector.load %arg3[%c0_1, %c0_2] : memref<24x24xf32, #tpu.memory_space<vmem>>, vector<24x24xf32>
    %c0_3 = arith.constant 0 : index
    %c0_4 = arith.constant 0 : index
    %2 = vector.load %arg4[%c0_3, %c0_4] : memref<24x128xf32, #tpu.memory_space<vmem>>, vector<24x128xf32>
    %c0_5 = arith.constant 0 : index
    %c0_6 = arith.constant 0 : index
    %3 = vector.load %arg7[%c0_5, %c0_6] : memref<128x256xf32, #tpu.memory_space<vmem>>, vector<128x256xf32>
    %c0_7 = arith.constant 0 : index
    %c0_8 = arith.constant 0 : index
    %4 = vector.load %arg8[%c0_7, %c0_8] : memref<128x128xf32, #tpu.memory_space<vmem>>, vector<128x128xf32>
    %c0_9 = arith.constant 0 : index
    %c0_10 = arith.constant 0 : index
    %5 = vector.load %arg9[%c0_9, %c0_10] : memref<128x128xf32, #tpu.memory_space<vmem>>, vector<128x128xf32>
    %c0_11 = arith.constant 0 : index
    %c0_12 = arith.constant 0 : index
    %6 = vector.load %arg1[%c0_11, %c0_12] : memref<24x128xf32, #tpu.memory_space<vmem>>, vector<24x128xf32>
    %c0_13 = arith.constant 0 : index
    %c0_14 = arith.constant 0 : index
    %7 = vector.load %arg5[%c0_13, %c0_14] : memref<128x384xf32, #tpu.memory_space<vmem>>, vector<128x384xf32>
    %cst = arith.constant dense<0.000000e+00> : vector<24x384xf32>
    %8 = tpu.matmul %6, %7, %cst {dimension_numbers = #tpu.dot_dimension_numbers<[1], [0], [0], [1], [0, 0, 1, 1], [], []>} : vector<24x128xf32>, vector<128x384xf32>, vector<24x384xf32> -> vector<24x384xf32>
    %c0_15 = arith.constant 0 : index
    %c0_16 = arith.constant 0 : index
    %9 = vector.load %arg6[%c0_15, %c0_16] : memref<1x384xf32, #tpu.memory_space<vmem>>, vector<1x384xf32>
    %10 = vector.broadcast %9 : vector<1x384xf32> to vector<24x384xf32>
    %11 = arith.addf %8, %10 : vector<24x384xf32>
    %12 = vector.extract_strided_slice %11 {offsets = [0, 0], sizes = [24, 128], strides = [1, 1]} : vector<24x384xf32> to vector<24x128xf32>
    %13 = vector.extract_strided_slice %11 {offsets = [0, 128], sizes = [24, 128], strides = [1, 1]} : vector<24x384xf32> to vector<24x128xf32>
    %14 = vector.extract_strided_slice %11 {offsets = [0, 256], sizes = [24, 128], strides = [1, 1]} : vector<24x384xf32> to vector<24x128xf32>
    %15 = vector.shape_cast %13 : vector<24x128xf32> to vector<24x1x128xf32>
    %16 = vector.shape_cast %15 : vector<24x1x128xf32> to vector<24x1x128xf32>
    %17 = vector.broadcast %16 : vector<24x1x128xf32> to vector<24x8x128xf32>
    %c0_17 = arith.constant 0 : index
    %c0_18 = arith.constant 0 : index
    %18 = vector.load %arg0[%c0_17, %c0_18] : memref<24x128xf32, #tpu.memory_space<vmem>>, vector<24x128xf32>
    %cst_19 = arith.constant dense<0.000000e+00> : vector<24x256xf32>
    %19 = tpu.matmul %18, %3, %cst_19 {dimension_numbers = #tpu.dot_dimension_numbers<[1], [0], [0], [1], [0, 0, 1, 1], [], []>} : vector<24x128xf32>, vector<128x256xf32>, vector<24x256xf32> -> vector<24x256xf32>
    %cst_20 = arith.constant dense<0.000000e+00> : vector<192x256xf32>
    %20 = tpu.matmul %0, %19, %cst_20 {dimension_numbers = #tpu.dot_dimension_numbers<[1], [0], [0], [1], [0, 0, 1, 1], [], []>} : vector<192x24xf32>, vector<24x256xf32>, vector<192x256xf32> -> vector<192x256xf32>
    %21 = vector.extract_strided_slice %20 {offsets = [0, 0], sizes = [192, 128], strides = [1, 1]} : vector<192x256xf32> to vector<192x128xf32>
    %22 = vector.shape_cast %21 : vector<192x128xf32> to vector<24x8x128xf32>
    %23 = vector.extract_strided_slice %20 {offsets = [0, 128], sizes = [192, 128], strides = [1, 1]} : vector<192x256xf32> to vector<192x128xf32>
    %24 = vector.shape_cast %23 : vector<192x128xf32> to vector<24x8x128xf32>
    %cst_21 = arith.constant dense<0.000000e+00> : vector<24x128xf32>
    %25 = tpu.matmul %1, %18, %cst_21 {dimension_numbers = #tpu.dot_dimension_numbers<[1], [0], [0], [1], [0, 0, 1, 1], [], []>} : vector<24x24xf32>, vector<24x128xf32>, vector<24x128xf32> -> vector<24x128xf32>
    %cst_22 = arith.constant dense<0.000000e+00> : vector<24x128xf32>
    %26 = tpu.matmul %25, %4, %cst_22 {dimension_numbers = #tpu.dot_dimension_numbers<[1], [0], [0], [1], [0, 0, 1, 1], [], []>} : vector<24x128xf32>, vector<128x128xf32>, vector<24x128xf32> -> vector<24x128xf32>
    %27 = arith.addf %12, %26 : vector<24x128xf32>
    %28 = arith.negf %27 : vector<24x128xf32>
    %29 = math.exp %28 : vector<24x128xf32>
    %cst_23 = arith.constant 1.000000e+00 : f32
    %30 = vector.broadcast %cst_23 : f32 to vector<24x128xf32>
    %31 = arith.addf %30, %29 : vector<24x128xf32>
    %32 = arith.divf %30, %31 : vector<24x128xf32>
    %33 = arith.addf %17, %24 : vector<24x8x128xf32>
    %34 = arith.negf %33 : vector<24x8x128xf32>
    %35 = math.exp %34 : vector<24x8x128xf32>
    %cst_24 = arith.constant 1.000000e+00 : f32
    %36 = vector.broadcast %cst_24 : f32 to vector<24x8x128xf32>
    %37 = arith.addf %36, %35 : vector<24x8x128xf32>
    %38 = arith.divf %36, %37 : vector<24x8x128xf32>
    %39 = arith.mulf %38, %22 : vector<24x8x128xf32>
    %cst_25 = arith.constant dense<0.000000e+00> : vector<24x128xf32>
    %40 = vector.multi_reduction <add>, %39, %cst_25 [1] : vector<24x8x128xf32> to vector<24x128xf32>
    %cst_26 = arith.constant dense<0.000000e+00> : vector<24x128xf32>
    %41 = tpu.matmul %40, %5, %cst_26 {dimension_numbers = #tpu.dot_dimension_numbers<[1], [0], [0], [1], [0, 0, 1, 1], [], []>} : vector<24x128xf32>, vector<128x128xf32>, vector<24x128xf32> -> vector<24x128xf32>
    %42 = arith.addf %14, %41 : vector<24x128xf32>
    %43 = math.tanh %42 : vector<24x128xf32>
    %cst_27 = arith.constant 1.000000e+00 : f32
    %44 = vector.broadcast %cst_27 : f32 to vector<24x128xf32>
    %45 = arith.subf %44, %32 : vector<24x128xf32>
    %46 = arith.mulf %45, %25 : vector<24x128xf32>
    %47 = arith.mulf %32, %43 : vector<24x128xf32>
    %48 = arith.addf %46, %47 : vector<24x128xf32>
    %49 = arith.mulf %48, %2 : vector<24x128xf32>
    %cst_28 = arith.constant dense<0.000000e+00> : vector<24x256xf32>
    %50 = tpu.matmul %49, %3, %cst_28 {dimension_numbers = #tpu.dot_dimension_numbers<[1], [0], [0], [1], [0, 0, 1, 1], [], []>} : vector<24x128xf32>, vector<128x256xf32>, vector<24x256xf32> -> vector<24x256xf32>
    %cst_29 = arith.constant dense<0.000000e+00> : vector<192x256xf32>
    %51 = tpu.matmul %0, %50, %cst_29 {dimension_numbers = #tpu.dot_dimension_numbers<[1], [0], [0], [1], [0, 0, 1, 1], [], []>} : vector<192x24xf32>, vector<24x256xf32>, vector<192x256xf32> -> vector<192x256xf32>
    %52 = vector.extract_strided_slice %51 {offsets = [0, 0], sizes = [192, 128], strides = [1, 1]} : vector<192x256xf32> to vector<192x128xf32>
    %53 = vector.shape_cast %52 : vector<192x128xf32> to vector<24x8x128xf32>
    %54 = vector.extract_strided_slice %51 {offsets = [0, 128], sizes = [192, 128], strides = [1, 1]} : vector<192x256xf32> to vector<192x128xf32>
    %55 = vector.shape_cast %54 : vector<192x128xf32> to vector<24x8x128xf32>
    %cst_30 = arith.constant dense<0.000000e+00> : vector<24x128xf32>
    %56 = tpu.matmul %1, %49, %cst_30 {dimension_numbers = #tpu.dot_dimension_numbers<[1], [0], [0], [1], [0, 0, 1, 1], [], []>} : vector<24x24xf32>, vector<24x128xf32>, vector<24x128xf32> -> vector<24x128xf32>
    %cst_31 = arith.constant dense<0.000000e+00> : vector<24x128xf32>
    %57 = tpu.matmul %56, %4, %cst_31 {dimension_numbers = #tpu.dot_dimension_numbers<[1], [0], [0], [1], [0, 0, 1, 1], [], []>} : vector<24x128xf32>, vector<128x128xf32>, vector<24x128xf32> -> vector<24x128xf32>
    %58 = arith.addf %12, %57 : vector<24x128xf32>
    %59 = arith.negf %58 : vector<24x128xf32>
    %60 = math.exp %59 : vector<24x128xf32>
    %cst_32 = arith.constant 1.000000e+00 : f32
    %61 = vector.broadcast %cst_32 : f32 to vector<24x128xf32>
    %62 = arith.addf %61, %60 : vector<24x128xf32>
    %63 = arith.divf %61, %62 : vector<24x128xf32>
    %64 = arith.addf %17, %55 : vector<24x8x128xf32>
    %65 = arith.negf %64 : vector<24x8x128xf32>
    %66 = math.exp %65 : vector<24x8x128xf32>
    %cst_33 = arith.constant 1.000000e+00 : f32
    %67 = vector.broadcast %cst_33 : f32 to vector<24x8x128xf32>
    %68 = arith.addf %67, %66 : vector<24x8x128xf32>
    %69 = arith.divf %67, %68 : vector<24x8x128xf32>
    %70 = arith.mulf %69, %53 : vector<24x8x128xf32>
    %cst_34 = arith.constant dense<0.000000e+00> : vector<24x128xf32>
    %71 = vector.multi_reduction <add>, %70, %cst_34 [1] : vector<24x8x128xf32> to vector<24x128xf32>
    %cst_35 = arith.constant dense<0.000000e+00> : vector<24x128xf32>
    %72 = tpu.matmul %71, %5, %cst_35 {dimension_numbers = #tpu.dot_dimension_numbers<[1], [0], [0], [1], [0, 0, 1, 1], [], []>} : vector<24x128xf32>, vector<128x128xf32>, vector<24x128xf32> -> vector<24x128xf32>
    %73 = arith.addf %14, %72 : vector<24x128xf32>
    %74 = math.tanh %73 : vector<24x128xf32>
    %cst_36 = arith.constant 1.000000e+00 : f32
    %75 = vector.broadcast %cst_36 : f32 to vector<24x128xf32>
    %76 = arith.subf %75, %63 : vector<24x128xf32>
    %77 = arith.mulf %76, %56 : vector<24x128xf32>
    %78 = arith.mulf %63, %74 : vector<24x128xf32>
    %79 = arith.addf %77, %78 : vector<24x128xf32>
    %80 = arith.mulf %79, %2 : vector<24x128xf32>
    %cst_37 = arith.constant dense<0.000000e+00> : vector<24x256xf32>
    %81 = tpu.matmul %80, %3, %cst_37 {dimension_numbers = #tpu.dot_dimension_numbers<[1], [0], [0], [1], [0, 0, 1, 1], [], []>} : vector<24x128xf32>, vector<128x256xf32>, vector<24x256xf32> -> vector<24x256xf32>
    %cst_38 = arith.constant dense<0.000000e+00> : vector<192x256xf32>
    %82 = tpu.matmul %0, %81, %cst_38 {dimension_numbers = #tpu.dot_dimension_numbers<[1], [0], [0], [1], [0, 0, 1, 1], [], []>} : vector<192x24xf32>, vector<24x256xf32>, vector<192x256xf32> -> vector<192x256xf32>
    %83 = vector.extract_strided_slice %82 {offsets = [0, 0], sizes = [192, 128], strides = [1, 1]} : vector<192x256xf32> to vector<192x128xf32>
    %84 = vector.shape_cast %83 : vector<192x128xf32> to vector<24x8x128xf32>
    %85 = vector.extract_strided_slice %82 {offsets = [0, 128], sizes = [192, 128], strides = [1, 1]} : vector<192x256xf32> to vector<192x128xf32>
    %86 = vector.shape_cast %85 : vector<192x128xf32> to vector<24x8x128xf32>
    %cst_39 = arith.constant dense<0.000000e+00> : vector<24x128xf32>
    %87 = tpu.matmul %1, %80, %cst_39 {dimension_numbers = #tpu.dot_dimension_numbers<[1], [0], [0], [1], [0, 0, 1, 1], [], []>} : vector<24x24xf32>, vector<24x128xf32>, vector<24x128xf32> -> vector<24x128xf32>
    %cst_40 = arith.constant dense<0.000000e+00> : vector<24x128xf32>
    %88 = tpu.matmul %87, %4, %cst_40 {dimension_numbers = #tpu.dot_dimension_numbers<[1], [0], [0], [1], [0, 0, 1, 1], [], []>} : vector<24x128xf32>, vector<128x128xf32>, vector<24x128xf32> -> vector<24x128xf32>
    %89 = arith.addf %12, %88 : vector<24x128xf32>
    %90 = arith.negf %89 : vector<24x128xf32>
    %91 = math.exp %90 : vector<24x128xf32>
    %cst_41 = arith.constant 1.000000e+00 : f32
    %92 = vector.broadcast %cst_41 : f32 to vector<24x128xf32>
    %93 = arith.addf %92, %91 : vector<24x128xf32>
    %94 = arith.divf %92, %93 : vector<24x128xf32>
    %95 = arith.addf %17, %86 : vector<24x8x128xf32>
    %96 = arith.negf %95 : vector<24x8x128xf32>
    %97 = math.exp %96 : vector<24x8x128xf32>
    %cst_42 = arith.constant 1.000000e+00 : f32
    %98 = vector.broadcast %cst_42 : f32 to vector<24x8x128xf32>
    %99 = arith.addf %98, %97 : vector<24x8x128xf32>
    %100 = arith.divf %98, %99 : vector<24x8x128xf32>
    %101 = arith.mulf %100, %84 : vector<24x8x128xf32>
    %cst_43 = arith.constant dense<0.000000e+00> : vector<24x128xf32>
    %102 = vector.multi_reduction <add>, %101, %cst_43 [1] : vector<24x8x128xf32> to vector<24x128xf32>
    %cst_44 = arith.constant dense<0.000000e+00> : vector<24x128xf32>
    %103 = tpu.matmul %102, %5, %cst_44 {dimension_numbers = #tpu.dot_dimension_numbers<[1], [0], [0], [1], [0, 0, 1, 1], [], []>} : vector<24x128xf32>, vector<128x128xf32>, vector<24x128xf32> -> vector<24x128xf32>
    %104 = arith.addf %14, %103 : vector<24x128xf32>
    %105 = math.tanh %104 : vector<24x128xf32>
    %cst_45 = arith.constant 1.000000e+00 : f32
    %106 = vector.broadcast %cst_45 : f32 to vector<24x128xf32>
    %107 = arith.subf %106, %94 : vector<24x128xf32>
    %108 = arith.mulf %107, %87 : vector<24x128xf32>
    %109 = arith.mulf %94, %105 : vector<24x128xf32>
    %110 = arith.addf %108, %109 : vector<24x128xf32>
    %111 = arith.mulf %110, %2 : vector<24x128xf32>
    %c0_46 = arith.constant 0 : index
    %c0_47 = arith.constant 0 : index
    %112 = vector.load %arg10[%c0_46, %c0_47] : memref<24x128xf32, #tpu.memory_space<vmem>>, vector<24x128xf32>
    tpu.vector_store %arg10[%c0_46, %c0_47], %111 {strides = array<i32>} : memref<24x128xf32, #tpu.memory_space<vmem>>, vector<24x128xf32>,
    return
  }
}

</mosaic_0001>

<bundles_post_ra>
// kernel: graphgru_apply.1
= control target key start
LH: loop header
LB: loop body
LE: loop exit
PB: predicated region body
PF: predicated region fallthrough
CT: control target
= control target key end

     0   :  { %15 = vsyncpa [#allocation3], 0  ;;  %s6690_s0 = inlined_call_operand.vmem [shape: f32[24,128], index: 0, kind: input, shape index: {}, may-alias: {0,10}]   ;;  %s6691_s1 = inlined_call_operand.vmem [shape: f32[24,128], index: 1, kind: input, shape index: {}]   ;;  %s6692_s2 = inlined_call_operand.vmem [shape: f32[192,24], index: 2, kind: input, shape index: {}]   ;;  %s6693_s3 = inlined_call_operand.vmem [shape: f32[24,24], index: 3, kind: input, shape index: {}]   ;;  %s6694_s4 = inlined_call_operand.vmem [shape: f32[24,128], index: 4, kind: input, shape index: {}]   ;;  %s6695_s5 = inlined_call_operand.hbm [shape: f32[128,384], index: 5, kind: input, shape index: {}]   ;;  %s6696_s6 = inlined_call_operand.vmem [shape: f32[1,384], index: 6, kind: input, shape index: {}]   ;;  %s6697_s7 = inlined_call_operand.vmem [shape: f32[128,256], index: 7, kind: input, shape index: {}]   ;;  %s6698_s8 = inlined_call_operand.hbm [shape: f32[128,128], index: 8, kind: input, shape index: {}]   ;;  %s6699_s9 = inlined_call_operand.hbm [shape: f32[128,128], index: 9, kind: input, shape index: {}]   ;;  %s6700_s10 = inlined_call_operand.vmem [shape: f32[24,128], index: 10, kind: output, shape index: {}, may-alias: {0,10}]  }
   0x1   :  { %16 = vsyncpa [#allocation5], 0  ;;  %s5095_s13 = smov [#allocation4]   ;;  %s5025_s17 = scalar_lea.hbm %s6698_s8, 2048 }
   0x2   :  { %s48_s14 = sshll.u32 %s5095_s13, 4  ;;  %p5026_p0 = scmp.ne.s32.totalorder %s6698_s8, %s5025_s17  ;;  %s49_s14 = int_to_ptr.vmem [resolvable:$true] %s48_s14 }
   0x3   :  { %p5029_p1 = scmp.lt.u32.totalorder %s5025_s17, %s6698_s8 }
   0x5   :  { %p5031_p2 = pnand %p5029_p1, %p5026_p0 }
   0x7   :  { %5034 = shalt.err (!%p5031_p2)
}
   0x8   :  { %s5035_s22 = scalar_lea.vmem %s49_s14, 2048  ;;  %p5040_p4 = scmp.lt.s32.totalorder %s49_s14, %s49_s14 }
   0x9   :  { %p5036_p3 = scmp.ne.s32.totalorder %s49_s14, %s5035_s22  ;;  %p5041_p5 = scmp.lt.s32.totalorder %s5035_s22, %s5035_s22 }
   0xb   :  { %p5042_p6 = por %p5041_p5, %p5040_p4 }
   0xd   :  { %p5043_p7 = pnand %p5042_p6, %p5036_p3 }
   0xf   :  { %5046 = shalt.err (!%p5043_p7)
}
  0x10   :  { %s5096_s23 = smov 128   ;;  %s5097_s24 = smov 8  }
  0x11   :  { %54 = dma.hbm_to_vmem [thread:$0]  %s6698_s8, 2048, %s49_s14, [#allocation5], %s5096_s23, %s5096_s23, %s5097_s24  }
  0x12   :  { %s5098_s27 = smov [#allocation2]   ;;  %s5047_s11 = scalar_lea.hbm %s6695_s5, 6144 }
  0x13   :  { %s32_s28 = sshll.u32 %s5098_s27, 4  ;;  %p5048_p8 = scmp.ne.s32.totalorder %s6695_s5, %s5047_s11  ;;  %s33_s28 = int_to_ptr.vmem [resolvable:$true] %s32_s28 }
  0x14   :  { %p5051_p9 = scmp.lt.u32.totalorder %s5047_s11, %s6695_s5 }
  0x16   :  { %p5053_p10 = pnand %p5051_p9, %p5048_p8 }
  0x18   :  { %5056 = shalt.err (!%p5053_p10)
}
  0x19   :  { %s5057_s17 = scalar_lea.vmem %s33_s28, 6144  ;;  %p5062_p12 = scmp.lt.s32.totalorder %s33_s28, %s33_s28 }
  0x1a   :  { %p5058_p11 = scmp.ne.s32.totalorder %s33_s28, %s5057_s17  ;;  %p5063_p13 = scmp.lt.s32.totalorder %s5057_s17, %s5057_s17 }
  0x1c   :  { %p5064_p0 = por %p5063_p13, %p5062_p12 }
  0x1e   :  { %p5065_p1 = pnand %p5064_p0, %p5058_p11 }
  0x20   :  { %5068 = shalt.err (!%p5065_p1)
}
  0x21   :  { %s5099_s8 = smov 384   ;;  %s5100_s14 = smov 24  }
  0x22   :  { %38 = dma.hbm_to_vmem [thread:$0]  %s6695_s5, 6144, %s33_s28, [#allocation3], %s5099_s8, %s5099_s8, %s5100_s14  }
  0x23   :  { %s5101_s20 = smov [#allocation6]   ;;  %s5069_s26 = scalar_lea.hbm %s6699_s9, 2048 }
  0x24   :  { %s60_s21 = sshll.u32 %s5101_s20, 4  ;;  %p5070_p2 = scmp.ne.s32.totalorder %s6699_s9, %s5069_s26  ;;  %s61_s21 = int_to_ptr.vmem [resolvable:$true] %s60_s21 }
  0x25   :  { %p5073_p3 = scmp.lt.u32.totalorder %s5069_s26, %s6699_s9 }
  0x27   :  { %p5075_p4 = pnand %p5073_p3, %p5070_p2 }
  0x29   :  { %5078 = shalt.err (!%p5075_p4)
}
  0x2a   :  { %s5079_s12 = scalar_lea.vmem %s61_s21, 2048  ;;  %p5084_p6 = scmp.lt.s32.totalorder %s61_s21, %s61_s21 }
  0x2b   :  { %p5080_p5 = scmp.ne.s32.totalorder %s61_s21, %s5079_s12  ;;  %p5085_p7 = scmp.lt.s32.totalorder %s5079_s12, %s5079_s12 }
  0x2d   :  { %p5086_p8 = por %p5085_p7, %p5084_p6 }
  0x2f   :  { %p5087_p9 = pnand %p5086_p8, %p5080_p5 }
  0x31   :  { %5090 = shalt.err (!%p5087_p9)
}
  0x32   :  { %66 = dma.hbm_to_vmem [thread:$0]  %s6699_s9, 2048, %s61_s21, [#allocation5], %s5096_s23, %s5096_s23, %s5097_s24  }
  0x33   :  { %5091 = dma.done.wait [#allocation3], 6144  }
  0x34   :  { %5092 = vsyncadd [#allocation3], 4294961152 }
  0x35   :  { %5093 = dma.done.wait [#allocation5], 4096  }
  0x36   :  { %5094 = vsyncadd [#allocation5], 4294963200  ;;  %v6703_v0 = vmov 0.0   ;;  %v6701_v1 = vmov 0.0|0.0   ;;  %vm5104_vm0 = vmmov 0   ;;  %v174_v2 = vld [vmem:[#allocation2 + $0x8] sm:$0xff] }
  0x37   :  { %302 = vmatprep.mubr.f32.mxu0 %v6703_v0  ;;  %4323 = vmatprep.subr.bf16.mxu1 %v6701_v1  ;;  %v177_v3 = vld [vmem:[#allocation2 + $0x20] sm:$0xff]  ;;  %v176_v6 = vld [vmem:[#allocation2 + $0x18] sm:$0xff]  ;;  %v183_v8 = vld [vmem:[#allocation2 + $0x50] sm:$0xff]  ;;  %vm757_vm1 = vcmask 195584   ;;  %vm1589_vm2 = vcmask 1041409   ;;  %vm1591_vm3 = vcmask 1042434  }
  0x38   :  { %3991 = vmatprep.mubr.msk.f32.mxu1 %vm5104_vm0, %v6703_v0  ;;  %v173_v4 = vld [vmem:[#allocation2] sm:$0xff]  ;;  %v4291_v5 = vpack.c.bf16 %v177_v3, %v174_v2  ;;  %v180_v7 = vld [vmem:[#allocation2 + $0x38] sm:$0xff]  ;;  %v179_v11 = vld [vmem:[#allocation2 + $0x30] sm:$0xff]  ;;  %vm1593_vm4 = vcmask 1043459   ;;  %vm1595_vm5 = vcmask 1044484   ;;  %vm1597_vm6 = vcmask 1045509  }
  0x39   :  { %v4293_v9 = vpack.c.bf16 %v176_v6, %v173_v4  ;;  %v4295_v10 = vpack.c.bf16 %v183_v8, %v180_v7  ;;  %v182_v12 = vld [vmem:[#allocation2 + $0x48] sm:$0xff]  ;;  %v189_v14 = vld [vmem:[#allocation2 + $0x80] sm:$0xff]  ;;  %v188_v18 = vld [vmem:[#allocation2 + $0x78] sm:$0xff]  ;;  %vm1599_vm7 = vcmask 1046534   ;;  %vm1601_vm8 = vcmask 1047559  }
  0x3a   :  { %v186_v13 = vld [vmem:[#allocation2 + $0x68] sm:$0xff]  ;;  %4292 = vmatprep.subr.bf16.mxu0 %v4291_v5  ;;  %v4297_v15 = vpack.c.bf16 %v182_v12, %v179_v11  ;;  %v185_v17 = vld [vmem:[#allocation2 + $0x60] sm:$0xff]  ;;  %v192_v19 = vld [vmem:[#allocation2 + $0x98] sm:$0xff] }
  0x3b   :  { %4294 = vmatpush1.bf16.msra.mxu0 %v4293_v9  ;;  %v4299_v16 = vpack.c.bf16 %v189_v14, %v186_v13  ;;  %v195_v20 = vld [vmem:[#allocation2 + $0xb0] sm:$0xff]  ;;  %v4301_v21 = vpack.c.bf16 %v188_v18, %v185_v17  ;;  %v194_v24 = vld [vmem:[#allocation2 + $0xa8] sm:$0xff]  ;;  %v201_v26 = vld [vmem:[#allocation2 + $0xe0] sm:$0xff] }
  0x3c   :  { %4296 = vmatprep.subr.bf16.mxu0 %v4295_v10  ;;  %v4303_v22 = vpack.c.bf16 %v195_v20, %v192_v19  ;;  %v191_v23 = vld [vmem:[#allocation2 + $0x90] sm:$0xff]  ;;  %v198_v25 = vld [vmem:[#allocation2 + $0xc8] sm:$0xff]  ;;  %v197_v29 = vld [vmem:[#allocation2 + $0xc0] sm:$0xff] }
  0x3d   :  { %v4305_v27 = vpack.c.bf16 %v194_v24, %v191_v23  ;;  %v4307_v28 = vpack.c.bf16 %v201_v26, %v198_v25  ;;  %v200_v30 = vld [vmem:[#allocation2 + $0xd8] sm:$0xff]  ;;  %v207_v32 = vld [vmem:[#allocation2 + $0x110] sm:$0xff]  ;;  %v206_v36 = vld [vmem:[#allocation2 + $0x108] sm:$0xff] }
  0x3e   :  { %v204_v31 = vld [vmem:[#allocation2 + $0xf8] sm:$0xff]  ;;  %v4309_v33 = vpack.c.bf16 %v200_v30, %v197_v29  ;;  %v203_v35 = vld [vmem:[#allocation2 + $0xf0] sm:$0xff]  ;;  %v210_v37 = vld [vmem:[#allocation2 + $0x128] sm:$0xff] }
  0x3f   :  { %4298 = vmatpush1.bf16.msra.mxu0 %v4297_v15  ;;  %v4311_v34 = vpack.c.bf16 %v207_v32, %v204_v31  ;;  %v213_v38 = vld [vmem:[#allocation2 + $0x140] sm:$0xff]  ;;  %v4313_v39 = vpack.c.bf16 %v206_v36, %v203_v35  ;;  %v212_v42 = vld [vmem:[#allocation2 + $0x138] sm:$0xff]  ;;  %v219_v44 = vld [vmem:[#allocation2 + $0x170] sm:$0xff] }
  0x40   :  { %4300 = vmatprep.subr.bf16.mxu0 %v4299_v16  ;;  %v4315_v40 = vpack.c.bf16 %v213_v38, %v210_v37  ;;  %v209_v41 = vld [vmem:[#allocation2 + $0x120] sm:$0xff]  ;;  %v216_v43 = vld [vmem:[#allocation2 + $0x158] sm:$0xff]  ;;  %v215_v47 = vld [vmem:[#allocation2 + $0x150] sm:$0xff] }
  0x41   :  { %v4317_v45 = vpack.c.bf16 %v212_v42, %v209_v41  ;;  %v4319_v46 = vpack.c.bf16 %v219_v44, %v216_v43  ;;  %v218_v48 = vld [vmem:[#allocation2 + $0x168] sm:$0xff]  ;;  %v107_v49 = vld [vmem:[%s6697_s7 + $0x8] sm:$0xff]  ;;  %v109_v50 = vld [vmem:[%s6697_s7 + $0x18] sm:$0xff] }
  0x42   :  { %v4321_v51 = vpack.c.bf16 %v218_v48, %v215_v47  ;;  %v5213_v52 = vpack.c.bf16 %v109_v50, %v107_v49  ;;  %v106_v53 = vld [vmem:[%s6697_s7] sm:$0xff]  ;;  %v108_v54 = vld [vmem:[%s6697_s7 + $0x10] sm:$0xff]  ;;  %v111_v55 = vld [vmem:[%s6697_s7 + $0x28] sm:$0xff] }
  0x43   :  { %4302 = vmatpush1.bf16.msra.mxu0 %v4301_v21  ;;  %v113_v56 = vld [vmem:[%s6697_s7 + $0x38] sm:$0xff]  ;;  %v5230_v57 = vld [vmem:[%s6691_s1] sm:$0xff]  ;;  %v5232_v58 = vpack.c.bf16 %v108_v54, %v106_v53  ;;  %v112_v61 = vld [vmem:[%s6697_s7 + $0x30] sm:$0xff] }
  0x44   :  { %4304 = vmatprep.subr.bf16.mxu0 %v4303_v22  ;;  %v5235_v59 = vpack.c.bf16 %v113_v56, %v111_v55  ;;  %v110_v60 = vld [vmem:[%s6697_s7 + $0x20] sm:$0xff]  ;;  %v115_v62 = vld [vmem:[%s6697_s7 + $0x48] sm:$0xff]  ;;  %v117_v63 = vld [vmem:[%s6697_s7 + $0x58] sm:$0xff] }
  0x45   :  { %v5251_v2 = vpack.c.bf16 %v112_v61, %v110_v60  ;;  %v5257_v3 = vld [vmem:[%s6691_s1 + $0x8] sm:$0xff]  ;;  %v5260_v4 = vpack.c.bf16 %v117_v63, %v115_v62  ;;  %v114_v5 = vld [vmem:[%s6697_s7 + $0x40] sm:$0xff]  ;;  %v116_v6 = vld [vmem:[%s6697_s7 + $0x50] sm:$0xff] }
  0x46   :  { %v119_v7 = vld [vmem:[%s6697_s7 + $0x68] sm:$0xff]  ;;  %v121_v8 = vld [vmem:[%s6697_s7 + $0x78] sm:$0xff]  ;;  %v5276_v9 = vpack.c.bf16 %v116_v6, %v114_v5  ;;  %v5282_v10 = vld [vmem:[%s6691_s1 + $0x10] sm:$0xff] }
  0x47   :  { %4306 = vmatpush1.bf16.msra.mxu0 %v4305_v27  ;;  %v5285_v11 = vpack.c.bf16 %v121_v8, %v119_v7  ;;  %v118_v12 = vld [vmem:[%s6697_s7 + $0x60] sm:$0xff]  ;;  %v120_v13 = vld [vmem:[%s6697_s7 + $0x70] sm:$0xff]  ;;  %v123_v14 = vld [vmem:[%s6697_s7 + $0x88] sm:$0xff] }
  0x48   :  { %4308 = vmatprep.subr.bf16.mxu0 %v4307_v28  ;;  %v125_v15 = vld [vmem:[%s6697_s7 + $0x98] sm:$0xff]  ;;  %v5301_v16 = vpack.c.bf16 %v120_v13, %v118_v12  ;;  %v122_v18 = vld [vmem:[%s6697_s7 + $0x80] sm:$0xff]  ;;  %v124_v19 = vld [vmem:[%s6697_s7 + $0x90] sm:$0xff] }
  0x49   :  { %v5305_v17 = vpack.c.bf16 %v125_v15, %v123_v14  ;;  %v127_v20 = vld [vmem:[%s6697_s7 + $0xa8] sm:$0xff]  ;;  %v129_v21 = vld [vmem:[%s6697_s7 + $0xb8] sm:$0xff]  ;;  %v5320_v22 = vpack.c.bf16 %v124_v19, %v122_v18  ;;  %v126_v24 = vld [vmem:[%s6697_s7 + $0xa0] sm:$0xff] }
  0x4a   :  { %6778 = vst [vmem:[#allocation9_spill] sm:$0xff] %v5301_v16  ;;  %v5323_v23 = vpack.c.bf16 %v129_v21, %v127_v20  ;;  %v128_v25 = vld [vmem:[%s6697_s7 + $0xb0] sm:$0xff]  ;;  %v131_v26 = vld [vmem:[%s6697_s7 + $0xc8] sm:$0xff]  ;;  %v133_v27 = vld [vmem:[%s6697_s7 + $0xd8] sm:$0xff] }
  0x4b   :  { %4310 = vmatpush1.bf16.msra.mxu0 %v4309_v33  ;;  %6779 = vst [vmem:[#allocation10_spill] sm:$0xff] %v5305_v17  ;;  %6780 = vst [vmem:[#allocation11_spill] sm:$0xff] %v5320_v22  ;;  %v5338_v28 = vpack.c.bf16 %v128_v25, %v126_v24  ;;  %v5341_v29 = vpack.c.bf16 %v133_v27, %v131_v26  ;;  %v130_v30 = vld [vmem:[%s6697_s7 + $0xc0] sm:$0xff]  ;;  %v132_v31 = vld [vmem:[%s6697_s7 + $0xd0] sm:$0xff] }
  0x4c   :  { %4312 = vmatprep.subr.bf16.mxu0 %v4311_v34  ;;  %6781 = vst [vmem:[#allocation12_spill] sm:$0xff] %v5323_v23  ;;  %v135_v32 = vld [vmem:[%s6697_s7 + $0xe8] sm:$0xff]  ;;  %v137_v33 = vld [vmem:[%s6697_s7 + $0xf8] sm:$0xff]  ;;  %v5356_v34 = vpack.c.bf16 %v132_v31, %v130_v30  ;;  %v134_v36 = vld [vmem:[%s6697_s7 + $0xe0] sm:$0xff] }
  0x4d   :  { %6782 = vst [vmem:[#allocation13_spill] sm:$0xff] %v5338_v28  ;;  %6783 = vst [vmem:[#allocation14_spill] sm:$0xff] %v5341_v29  ;;  %v5359_v35 = vpack.c.bf16 %v137_v33, %v135_v32  ;;  %v136_v37 = vld [vmem:[%s6697_s7 + $0xf0] sm:$0xff]  ;;  %v100_v43 = vld [vmem:[%s6693_s3] sm:$0xff] }
  0x4e   :  { %6784 = vst [vmem:[#allocation15_spill] sm:$0xff] %v5356_v34  ;;  %v5368_v38 = vpack.c.bf16 %v136_v37, %v134_v36  ;;  %v673_v42 = vld [vmem:[%s6690_s0 + $0x10] sm:$0xff]  ;;  %v101_v44 = vld [vmem:[%s6693_s3 + $0x8] sm:$0xff]  ;;  %v178_v47 = vld [vmem:[#allocation2 + $0x28] sm:$0xff] }
  0x4f   :  { %4314 = vmatpush1.bf16.msra.mxu0 %v4313_v39  ;;  %6785 = vst [vmem:[#allocation16_spill] sm:$0xff] %v5359_v35  ;;  %v672_v39 = vld [vmem:[%s6690_s0 + $0x8] sm:$0xff]  ;;  %v181_v49 = vld [vmem:[#allocation2 + $0x40] sm:$0xff]  ;;  %v184_v50 = vld [vmem:[#allocation2 + $0x58] sm:$0xff] }
  0x50   :  { %4316 = vmatprep.subr.bf16.mxu0 %v4315_v40  ;;  %6786 = vst [vmem:[#allocation17_spill] sm:$0xff] %v5368_v38  ;;  %v671_v40 = vld [vmem:[%s6690_s0] sm:$0xff]  ;;  %v187_v53 = vld [vmem:[#allocation2 + $0x70] sm:$0xff]  ;;  %v138_v56 = vld [vmem:[#allocation4] sm:$0xff] }
  0x51   :  { %v4384_v41 = vpack.c.bf16 %v672_v39, %v671_v40  ;;  %v190_v54 = vld [vmem:[#allocation2 + $0x88] sm:$0xff]  ;;  %v193_v61 = vld [vmem:[#allocation2 + $0xa0] sm:$0xff]  ;;  %v196_v63 = vld [vmem:[#allocation2 + $0xb8] sm:$0xff] }
  0x52   :  { %v4330_v55 = vpack.c.bf16 %v190_v54, %v187_v53  ;;  %v139_v60 = vld [vmem:[#allocation4 + $0x8] sm:$0xff]  ;;  %v140_v5 = vld [vmem:[#allocation4 + $0x10] sm:$0xff]  ;;  %v141_v6 = vld [vmem:[#allocation4 + $0x18] sm:$0xff]  ;;  %v4333_v7 = vpack.c.bf16 %v196_v63, %v193_v61  ;;  %v5105_v54 = vmov 1966171168  }
  0x53   :  { %4318 = vmatpush1.bf16.msra.mxu0 %v4317_v45  ;;  %v102_v45 = vld [vmem:[%s6693_s3 + $0x10] sm:$0xff]  ;;  %v5408_v62 = vpack.c.bf16 %v139_v60, %v138_v56  ;;  %v5412_v8 = vpack.c.bf16 %v141_v6, %v140_v5  ;;  %v199_v12 = vld [vmem:[#allocation2 + $0xd0] sm:$0xff]  ;;  %v202_v13 = vld [vmem:[#allocation2 + $0xe8] sm:$0xff] }
  0x54   :  { %4320 = vmatprep.subr.bf16.mxu0 %v4319_v46  ;;  %v175_v46 = vld [vmem:[#allocation2 + $0x10] sm:$0xff]  ;;  %v142_v14 = vld [vmem:[#allocation4 + $0x20] sm:$0xff]  ;;  %v143_v15 = vld [vmem:[#allocation4 + $0x28] sm:$0xff]  ;;  %v4336_v18 = vpack.c.bf16 %v202_v13, %v199_v12 }
  0x55   :  { %v4324_v48 = vpack.c.bf16 %v178_v47, %v175_v46  ;;  %v5417_v19 = vpack.c.bf16 %v143_v15, %v142_v14  ;;  %v205_v20 = vld [vmem:[#allocation2 + $0x100] sm:$0xff]  ;;  %v208_v21 = vld [vmem:[#allocation2 + $0x118] sm:$0xff]  ;;  %v144_v24 = vld [vmem:[#allocation4 + $0x30] sm:$0xff] }
  0x56   :  { %v145_v25 = vld [vmem:[#allocation4 + $0x38] sm:$0xff]  ;;  %v4339_v26 = vpack.c.bf16 %v208_v21, %v205_v20  ;;  %v211_v30 = vld [vmem:[#allocation2 + $0x130] sm:$0xff]  ;;  %v214_v31 = vld [vmem:[#allocation2 + $0x148] sm:$0xff] }
  0x57   :  { %4322 = vmatpush1.bf16.msra.mxu0 %v4321_v51  ;;  %4325 = vmatpush3.bf16.msra.mxu1 %v4324_v48  ;;  %v4327_v51 = vpack.c.bf16 %v184_v50, %v181_v49  ;;  %v5422_v27 = vpack.c.bf16 %v145_v25, %v144_v24  ;;  %v146_v32 = vld [vmem:[#allocation4 + $0x40] sm:$0xff]  ;;  %v147_v33 = vld [vmem:[#allocation4 + $0x48] sm:$0xff]  ;;  %v4342_v36 = vpack.c.bf16 %v214_v31, %v211_v30  ;;  %v153_v48 = vld [vmem:[#allocation4 + $0x78] sm:$0xff] }
  0x58   :  { %4348 = vmatprep.subr.bf16.mxu0 %v5213_v52  ;;  %4326 = vmatprep.subr.bf16.mxu1 %v6701_v1  ;;  %v5427_v37 = vpack.c.bf16 %v147_v33, %v146_v32  ;;  %v151_v46 = vld [vmem:[#allocation4 + $0x68] sm:$0xff] }
  0x59   :  { %6787 = vst [vmem:[#allocation18_spill] sm:$0xff] %v5422_v27 }
  0x5a   :  { %303 = vmatmul.mubr.f32.vlgmr.msra.gmra.mrb[0].mxu0 %v5230_v57  ;;  %6788 = vst [vmem:[#allocation19_spill] sm:$0xff] %v5427_v37 }
  0x5b   :  { %4350 = vmatpush1.bf16.msra.mxu0 %v5232_v58  ;;  %308 = vmatprep.mubr.f32.mxu0 %v6703_v0 }
  0x5c   :  { %4352 = vmatprep.subr.bf16.mxu0 %v5235_v59  ;;  %4328 = vmatpush3.bf16.msra.mxu1 %v4327_v51 }
  0x5d   :  { %4329 = vmatprep.subr.bf16.mxu1 %v6701_v1 }
  0x5e   :  { %309 = vmatmul.mubr.f32.gmra.mrb[2].mxu0 %v5257_v3 }
  0x5f   :  { %4354 = vmatpush1.bf16.msra.mxu0 %v5251_v2  ;;  %314 = vmatprep.mubr.f32.mxu0 %v6703_v0 }
  0x60   :  { %4356 = vmatprep.subr.bf16.mxu0 %v5260_v4  ;;  %4331 = vmatpush3.bf16.msra.mxu1 %v4330_v55  ;;  %v406_v55 = vunpack.c.l.s4 %v5105_v54  ;;  %v77_v54 = vld [vmem:[%s6692_s2 + $0x8] sm:$0xff] }
  0x61   :  { %4332 = vmatprep.subr.bf16.mxu1 %v6701_v1 }
  0x62   :  { %315 = vmatmul.mubr.f32.gmra.mrb[4].mxu0 %v5282_v10  ;;  %v407_v5 = vunpack.c.0.s8 %v406_v55 }
  0x63   :  { %4358 = vmatpush1.bf16.msra.mxu0 %v5276_v9  ;;  %738 = vmatprep.mubr.f32.mxu0 %v6703_v0 }
  0x64   :  { %4360 = vmatprep.subr.bf16.mxu0 %v5285_v11  ;;  %4334 = vmatpush3.bf16.msra.mxu1 %v4333_v7 }
  0x65   :  { %4335 = vmatprep.subr.bf16.mxu1 %v6701_v1 }
  0x67   :  { %4362 = vmatpush1.bf16.msra.mxu0 %v5301_v16 }
  0x68   :  { %4364 = vmatprep.subr.bf16.mxu0 %v5305_v17  ;;  %4337 = vmatpush3.bf16.msra.mxu1 %v4336_v18 }
  0x69   :  { %4338 = vmatprep.subr.bf16.mxu1 %v6701_v1 }
  0x6b   :  { %4366 = vmatpush1.bf16.msra.mxu0 %v5320_v22 }
  0x6c   :  { %4368 = vmatprep.subr.bf16.mxu0 %v5323_v23  ;;  %4340 = vmatpush3.bf16.msra.mxu1 %v4339_v26 }
  0x6d   :  { %4341 = vmatprep.subr.bf16.mxu1 %v6701_v1 }
  0x6f   :  { %4370 = vmatpush1.bf16.msra.mxu0 %v5338_v28 }
  0x70   :  { %4372 = vmatprep.subr.bf16.mxu0 %v5341_v29  ;;  %4343 = vmatpush3.bf16.msra.mxu1 %v4342_v36 }
  0x71   :  { %4344 = vmatprep.subr.bf16.mxu1 %v6701_v1 }
  0x73   :  { %4374 = vmatpush1.bf16.msra.mxu0 %v5356_v34 }
  0x74   :  { %4376 = vmatprep.subr.bf16.mxu0 %v5359_v35 }
  0x77   :  { %4378 = vmatpush1.bf16.msra.mxu0 %v5368_v38 }
  0x78   :  { %4383 = vmatprep.subr.bf16.mxu0 %v6701_v1 }
  0x7a   :  { %739 = vmatmul.mubr.f32.vlgmr.msra.gmra.mrb[6].mxu0 %v671_v40  ;;  %v220_v40 = vld [vmem:[#allocation2 + $0x178] sm:$0xff] }
  0x7b   :  { %744 = vmatprep.mubr.f32.mxu0 %v6703_v0  ;;  %4385 = vmatpush3.bf16.msra.mxu0 %v4384_v41 }
  0x7c   :  { %4004 = vmatprep.subr.mxu0 %v6703_v0 }
  0x7e   :  { %745 = vmatmul.mubr.f32.gmra.mrb[8].mxu0 %v672_v39  ;;  %v217_v39 = vld [vmem:[#allocation2 + $0x160] sm:$0xff] }
  0x7f   :  { %750 = vmatprep.mubr.f32.mxu0 %v6703_v0  ;;  %4005 = vmatpush3.msra.mxu0 %v673_v42  ;;  %v4345_v41 = vpack.c.bf16 %v220_v40, %v217_v39 }
  0x80   :  { %4386 = vmatprep.subr.bf16.mxu0 %v6701_v1 }
  0x81   :  { %4346 = vmatpush3.bf16.msra.mxu1 %v4345_v41 }
  0x82   :  { %751 = vmatmul.mubr.f32.gmra.mrb[10].mxu0 %v673_v42  ;;  %v148_v42 = vld [vmem:[#allocation4 + $0x50] sm:$0xff] }
  0x83   :  { %4006 = vmatprep.mubr.msk.f32.mxu0 %vm5104_vm0, %v6703_v0 }
  0x84   :  { %3992 = vmatmul.mubr.f32.vlgmr.msra.gmra.mrb[0].mxu1 %v5230_v57  ;;  %v152_v57 = vld [vmem:[#allocation4 + $0x70] sm:$0xff] }
  0x85   :  { %3994 = vmatprep.mubr.msk.f32.mxu1 %vm5104_vm0, %v6703_v0  ;;  %v5447_v49 = vpack.c.bf16 %v153_v48, %v152_v57  ;;  %v76_v57 = vld [vmem:[%s6692_s2] sm:$0xff] }
  0x86   :  { %4007 = vmatmul.mubr.msk.f32.vlgmr.msra.gmra.mrb[12].mxu0 %vm757_vm1, %v100_v43  ;;  %v149_v43 = vld [vmem:[#allocation4 + $0x58] sm:$0xff] }
  0x87   :  { %4009 = vmatprep.mubr.msk.f32.mxu0 %vm5104_vm0, %v6703_v0  ;;  %4388 = vmatpush3.bf16.msra.mxu0 %v5408_v62  ;;  %6791 = vst [vmem:[#allocation22_spill] sm:$0xff] %v5447_v49 }
  0x88   :  { %4389 = vmatprep.subr.bf16.mxu0 %v6701_v1  ;;  %3995 = vmatmul.mubr.f32.gmra.mrb[2].mxu1 %v5257_v3  ;;  %v223_v3 = vlaneseq }
  0x89   :  { %3997 = vmatprep.mubr.msk.f32.mxu1 %vm5104_vm0, %v6703_v0 }
  0x8a   :  { %4010 = vmatmul.mubr.msk.f32.gmra.mrb[14].mxu0 %vm757_vm1, %v101_v44  ;;  %v5433_v44 = vpack.c.bf16 %v149_v43, %v148_v42  ;;  %v5453_v50 = vshrl.u32 %v223_v3, 7 }
  0x8b   :  { %4012 = vmatprep.mubr.msk.f32.mxu0 %vm5104_vm0, %v6703_v0  ;;  %4391 = vmatpush3.bf16.msra.mxu0 %v5412_v8 }
  0x8c   :  { %4392 = vmatprep.subr.bf16.mxu0 %v6701_v1  ;;  %6789 = vst [vmem:[#allocation20_spill] sm:$0xff] %v5433_v44  ;;  %3998 = vmatmul.mubr.f32.gmra.mrb[4].mxu1 %v5282_v10  ;;  %v5460_v56 = vsub.s32 0, %v5453_v50  ;;  %v5465_v10 = vld [vmem:[%s6696_s6] sm:$0x7]  ;;  %v229_v60 = vsub.s32 1, %v5453_v50  ;;  %v5483_v15 = vsub.s32 %v407_v5, %v5453_v50  ;;  %v78_v5 = vld [vmem:[%s6692_s2 + $0x10] sm:$0xff] }
  0x8d   :  { %894 = vmatprep.mubr.f32.mxu1 %v6703_v0 }
  0x8e   :  { %4013 = vmatmul.mubr.msk.f32.gmra.mrb[16].mxu0 %vm757_vm1, %v102_v45  ;;  %v150_v45 = vld [vmem:[#allocation4 + $0x60] sm:$0xff]  ;;  %v5474_v6 = vrot.slane %v5465_v10, %v5460_v56  ;;  %v5477_v7 = vrot.slane %v5465_v10, %v229_v60 }
  0x8f   :  { %4047 = vmatprep.mubr.msk.f32.mxu0 %vm5104_vm0, %v6703_v0  ;;  %4394 = vmatpush3.bf16.msra.mxu0 %v5417_v19  ;;  %v5440_v47 = vpack.c.bf16 %v151_v46, %v150_v45 }
  0x90   :  { %4395 = vmatprep.subr.bf16.mxu0 %v6701_v1 }
  0x91   :  { %6790 = vst [vmem:[#allocation21_spill] sm:$0xff] %v5440_v47 }
  0x93   :  { %4397 = vmatpush3.bf16.msra.mxu0 %v5422_v27 }
  0x94   :  { %4398 = vmatprep.subr.bf16.mxu0 %v6701_v1 }
  0x97   :  { %4400 = vmatpush3.bf16.msra.mxu0 %v5427_v37 }
  0x98   :  { %4401 = vmatprep.subr.bf16.mxu0 %v6701_v1 }
  0x9b   :  { %4403 = vmatpush3.bf16.msra.mxu0 %v5433_v44 }
  0x9c   :  { %4404 = vmatprep.subr.bf16.mxu0 %v6701_v1 }
  0x9f   :  { %4406 = vmatpush3.bf16.msra.mxu0 %v5440_v47 }
  0xa0   :  { %4407 = vmatprep.subr.bf16.mxu0 %v6701_v1 }
  0xa3   :  { %4409 = vmatpush3.bf16.msra.mxu0 %v5447_v49 }
  0xa4   :  { %4410 = vmatprep.subr.bf16.mxu0 %v6701_v1 }
 0x12d   :  { %v5455_v51 = vpop.f32.mrb[0].mxu0 }
 0x12e   :  { %v5457_v53 = vpop.f32.mrb[1].mxu0 }
 0x131   :  { %v5468_v61 = vpop.f32.mrb[2].mxu0 }
 0x132   :  { %v5470_v63 = vpop.f32.mrb[3].mxu0 }
 0x135   :  { %v316_v12 = vpop.f32.mrb[4].mxu0 }
 0x136   :  { %v5480_v13 = vadd.f32 %v316_v12, %v5474_v6  ;;  %v318_v14 = vpop.f32.mrb[5].mxu0 }
 0x137   :  { %v319_v18 = vadd.f32 %v318_v14, %v5477_v7 }
 0x138   :  { %6792 = vst [vmem:[#allocation23_spill] sm:$0xff] %v5480_v13 }
 0x139   :  { %v502_v20 = vcombine.high %v319_v18, %v319_v18  ;;  %v509_v21 = vrot.slane %v319_v18, %v5483_v15  ;;  %v79_v18 = vld [vmem:[%s6692_s2 + $0x18] sm:$0xff] }
 0x13b   :  { %v516_v24 = vrot.slane %v502_v20, %v5483_v15  ;;  %v517_v25 = vcombine.high %v509_v21, %v509_v21  ;;  %v5489_v26 = vrot.slane %v509_v21, %v5483_v15  ;;  %v80_v20 = vld [vmem:[%s6692_s2 + $0x20] sm:$0xff]  ;;  %v81_v21 = vld [vmem:[%s6692_s2 + $0x28] sm:$0xff] }
 0x13d   :  { %v5492_v30 = vrot.slane %v516_v24, %v5483_v15  ;;  %v5495_v31 = vrot.slane %v517_v25, %v5483_v15  ;;  %v518_v32 = vcombine.high %v516_v24, %v516_v24  ;;  %v82_v24 = vld [vmem:[%s6692_s2 + $0x30] sm:$0xff]  ;;  %v83_v25 = vld [vmem:[%s6692_s2 + $0x38] sm:$0xff] }
 0x13f   :  { %v5498_v33 = vrot.slane %v518_v32, %v5483_v15  ;;  %v84_v32 = vld [vmem:[%s6692_s2 + $0x40] sm:$0xff] }
 0x14d   :  { %v740_v36 = vpop.f32.mrb[6].mxu0 }
 0x14e   :  { %v742_v39 = vpop.f32.mrb[7].mxu0 }
 0x151   :  { %v746_v40 = vpop.f32.mrb[8].mxu0 }
 0x152   :  { %v4381_v41 = vpack.c.bf16 %v746_v40, %v740_v36  ;;  %v748_v42 = vpop.f32.mrb[9].mxu0  ;;  %v85_v36 = vld [vmem:[%s6692_s2 + $0x48] sm:$0xff]  ;;  %v87_v40 = vld [vmem:[%s6692_s2 + $0x58] sm:$0xff] }
 0x153   :  { %v4379_v43 = vpack.c.bf16 %v748_v42, %v742_v39  ;;  %v86_v39 = vld [vmem:[%s6692_s2 + $0x50] sm:$0xff]  ;;  %v89_v42 = vld [vmem:[%s6692_s2 + $0x68] sm:$0xff] }
 0x155   :  { %4380 = vmatprep.subr.bf16.mxu1 %v4379_v43  ;;  %v752_v45 = vpop.f32.mrb[10].mxu0  ;;  %v90_v43 = vld [vmem:[%s6692_s2 + $0x70] sm:$0xff] }
 0x156   :  { %4382 = vmatpush1.bf16.msra.mxu1 %v4381_v41  ;;  %v754_v46 = vpop.f32.mrb[11].mxu0  ;;  %v88_v41 = vld [vmem:[%s6692_s2 + $0x60] sm:$0xff] }
 0x157   :  { %834 = vmatprep.subr.mxu1 %v754_v46  ;;  %v92_v46 = vld [vmem:[%s6692_s2 + $0x80] sm:$0xff] }
 0x159   :  { %v5503_v48 = vpop.f32.mrb[12].mxu0 }
 0x15a   :  { %835 = vmatpush1.msra.mxu1 %v752_v45  ;;  %4048 = vmatmul.mubr.f32.vlgmr.msra.gmra.mrb[18].mxu0 %v5503_v48  ;;  %v4008_v3 = vpop.f32.mrb[13].mxu0  ;;  %v91_v45 = vld [vmem:[%s6692_s2 + $0x78] sm:$0xff] }
 0x15b   :  { %3646 = vmatmul.mubr.msk.f32.vlgmr.msra.gmra.mrb[6].mxu1 %vm757_vm1, %v76_v57  ;;  %4050 = vmatprep.mubr.msk.f32.mxu0 %vm5104_vm0, %v6703_v0  ;;  %v93_v57 = vld [vmem:[%s6692_s2 + $0x88] sm:$0xff]  ;;  %v94_v3 = vld [vmem:[%s6692_s2 + $0x90] sm:$0xff] }
 0x15c   :  { %900 = vmatprep.mubr.f32.mxu1 %v6703_v0  ;;  %4435 = vmatprep.subr.bf16.mxu1 %v5213_v52 }
 0x15d   :  { %v5514_v55 = vpop.f32.mrb[14].mxu0  ;;  %4437 = vmatpush1.bf16.msra.mxu1 %v5232_v58 }
 0x15e   :  { %4051 = vmatmul.mubr.f32.gmra.mrb[20].mxu0 %v5514_v55  ;;  %v4011_v60 = vpop.f32.mrb[15].mxu0  ;;  %4439 = vmatprep.subr.bf16.mxu1 %v5235_v59 }
 0x15f   :  { %3647 = vmatmul.mubr.msk.f32.gmra.mrb[8].mxu1 %vm757_vm1, %v77_v54  ;;  %4053 = vmatprep.mubr.msk.f32.mxu0 %vm5104_vm0, %v6703_v0  ;;  %v5624_v54 = vpop.f32.mrb[0].mxu1 }
 0x160   :  { %906 = vmatprep.mubr.f32.mxu1 %v6703_v0  ;;  %v3993_v60 = vpop.f32.mrb[1].mxu1 }
 0x161   :  { %v5526_v12 = vpop.f32.mrb[16].mxu0  ;;  %4441 = vmatpush1.bf16.msra.mxu1 %v5251_v2 }
 0x162   :  { %4054 = vmatmul.mubr.f32.gmra.mrb[22].mxu0 %v5526_v12  ;;  %v4014_v14 = vpop.f32.mrb[17].mxu0  ;;  %4443 = vmatprep.subr.bf16.mxu1 %v5260_v4 }
 0x163   :  { %3648 = vmatmul.mubr.msk.f32.gmra.mrb[10].mxu1 %vm757_vm1, %v78_v5  ;;  %4088 = vmatprep.mubr.msk.f32.mxu0 %vm5104_vm0, %v6703_v0  ;;  %v95_v5 = vld [vmem:[%s6692_s2 + $0x98] sm:$0xff]  ;;  %v233_v14 = vsub.s32 2, %v5453_v50  ;;  %v97_v50 = vld [vmem:[%s6692_s2 + $0xa8] sm:$0xff] }
 0x164   :  { %912 = vmatprep.mubr.f32.mxu1 %v6703_v0 }
 0x165   :  { %4445 = vmatpush1.bf16.msra.mxu1 %v5276_v9 }
 0x166   :  { %4447 = vmatprep.subr.bf16.mxu1 %v5285_v11 }
 0x167   :  { %3649 = vmatmul.mubr.msk.f32.gmra.mrb[12].mxu1 %vm757_vm1, %v79_v18  ;;  %v5632_v18 = vpop.f32.mrb[2].mxu1 }
 0x168   :  { %918 = vmatprep.mubr.f32.mxu1 %v6703_v0 }
 0x169   :  { %4449 = vmatpush1.bf16.msra.mxu1 %v5301_v16 }
 0x16a   :  { %4451 = vmatprep.subr.bf16.mxu1 %v5305_v17 }
 0x16b   :  { %3650 = vmatmul.mubr.msk.f32.gmra.mrb[14].mxu1 %vm757_vm1, %v80_v20  ;;  %v3996_v20 = vpop.f32.mrb[3].mxu1 }
 0x16c   :  { %924 = vmatprep.mubr.f32.mxu1 %v6703_v0 }
 0x16d   :  { %4453 = vmatpush1.bf16.msra.mxu1 %v5320_v22 }
 0x16e   :  { %4455 = vmatprep.subr.bf16.mxu1 %v5323_v23 }
 0x16f   :  { %3651 = vmatmul.mubr.msk.f32.gmra.mrb[16].mxu1 %vm757_vm1, %v81_v21  ;;  %v96_v21 = vld [vmem:[%s6692_s2 + $0xa0] sm:$0xff] }
 0x170   :  { %930 = vmatprep.mubr.f32.mxu1 %v6703_v0 }
 0x171   :  { %4457 = vmatpush1.bf16.msra.mxu1 %v5338_v28 }
 0x172   :  { %4459 = vmatprep.subr.bf16.mxu1 %v5341_v29 }
 0x173   :  { %3652 = vmatmul.mubr.msk.f32.gmra.mrb[18].mxu1 %vm757_vm1, %v82_v24  ;;  %v5640_v24 = vrot.slane %v5465_v10, %v233_v14  ;;  %v98_v10 = vld [vmem:[%s6692_s2 + $0xb0] sm:$0xff] }
 0x174   :  { %936 = vmatprep.mubr.f32.mxu1 %v6703_v0  ;;  %v161_v14 = vld [vmem:[#allocation6 + $0x38] sm:$0xff] }
 0x175   :  { %4461 = vmatpush1.bf16.msra.mxu1 %v5356_v34 }
 0x176   :  { %4463 = vmatprep.subr.bf16.mxu1 %v5359_v35 }
 0x177   :  { %3653 = vmatmul.mubr.msk.f32.gmra.mrb[20].mxu1 %vm757_vm1, %v83_v25  ;;  %v397_v25 = vpop.f32.mrb[4].mxu1 }
 0x178   :  { %942 = vmatprep.mubr.f32.mxu1 %v6703_v0 }
 0x179   :  { %4465 = vmatpush1.bf16.msra.mxu1 %v5368_v38 }
 0x17b   :  { %3654 = vmatmul.mubr.msk.f32.gmra.mrb[22].mxu1 %vm757_vm1, %v84_v32  ;;  %v5643_v32 = vadd.f32 %v397_v25, %v5640_v24  ;;  %v163_v25 = vld [vmem:[#allocation6 + $0x48] sm:$0xff] }
 0x17c   :  { %948 = vmatprep.mubr.f32.mxu1 %v6703_v0 }
 0x17f   :  { %3655 = vmatmul.mubr.msk.f32.gmra.mrb[24].mxu1 %vm757_vm1, %v85_v36  ;;  %v3999_v36 = vpop.f32.mrb[5].mxu1 }
 0x180   :  { %954 = vmatprep.mubr.f32.mxu1 %v6703_v0 }
 0x183   :  { %3656 = vmatmul.mubr.msk.f32.gmra.mrb[26].mxu1 %vm757_vm1, %v86_v39  ;;  %v99_v39 = vld [vmem:[%s6692_s2 + $0xb8] sm:$0xff] }
 0x184   :  { %960 = vmatprep.mubr.f32.mxu1 %v6703_v0 }
 0x187   :  { %3657 = vmatmul.mubr.msk.f32.gmra.mrb[28].mxu1 %vm757_vm1, %v87_v40  ;;  %v154_v40 = vld [vmem:[#allocation6] sm:$0xff] }
 0x188   :  { %966 = vmatprep.mubr.f32.mxu1 %v6703_v0 }
 0x18b   :  { %3658 = vmatmul.mubr.msk.f32.gmra.mrb[30].mxu1 %vm757_vm1, %v88_v41  ;;  %v155_v41 = vld [vmem:[#allocation6 + $0x8] sm:$0xff] }
 0x18c   :  { %972 = vmatprep.mubr.f32.mxu1 %v6703_v0 }
 0x18f   :  { %3659 = vmatmul.mubr.msk.f32.gmra.mrb[32].mxu1 %vm757_vm1, %v89_v42  ;;  %v5662_v42 = vpack.c.bf16 %v155_v41, %v154_v40  ;;  %v166_v40 = vld [vmem:[#allocation6 + $0x60] sm:$0xff]  ;;  %v167_v41 = vld [vmem:[#allocation6 + $0x68] sm:$0xff] }
 0x190   :  { %978 = vmatprep.mubr.f32.mxu1 %v6703_v0 }
 0x191   :  { %6793 = vst [vmem:[#allocation24_spill] sm:$0xff] %v5662_v42  ;;  %4412 = vmatpush3.bf16.msra.mxu0 %v5662_v42 }
 0x192   :  { %4413 = vmatprep.subr.bf16.mxu0 %v6701_v1 }
 0x193   :  { %3660 = vmatmul.mubr.msk.f32.gmra.mrb[34].mxu1 %vm757_vm1, %v90_v43  ;;  %v156_v43 = vld [vmem:[#allocation6 + $0x10] sm:$0xff] }
 0x194   :  { %984 = vmatprep.mubr.f32.mxu1 %v6703_v0 }
 0x197   :  { %3661 = vmatmul.mubr.msk.f32.gmra.mrb[36].mxu1 %vm757_vm1, %v91_v45  ;;  %v157_v45 = vld [vmem:[#allocation6 + $0x18] sm:$0xff] }
 0x198   :  { %990 = vmatprep.mubr.f32.mxu1 %v6703_v0 }
 0x19b   :  { %3662 = vmatmul.mubr.msk.f32.gmra.mrb[38].mxu1 %vm757_vm1, %v92_v46  ;;  %v5666_v46 = vpack.c.bf16 %v157_v45, %v156_v43  ;;  %v5686_v43 = vpack.c.bf16 %v167_v41, %v166_v40  ;;  %v168_v45 = vld [vmem:[#allocation6 + $0x70] sm:$0xff] }
 0x19c   :  { %996 = vmatprep.mubr.f32.mxu1 %v6703_v0 }
 0x19d   :  { %6794 = vst [vmem:[#allocation25_spill] sm:$0xff] %v5666_v46  ;;  %4415 = vmatpush3.bf16.msra.mxu0 %v5666_v46  ;;  %6799 = vst [vmem:[#allocation30_spill] sm:$0xff] %v5686_v43 }
 0x19e   :  { %4416 = vmatprep.subr.bf16.mxu0 %v6701_v1 }
 0x19f   :  { %3663 = vmatmul.mubr.msk.f32.gmra.mrb[40].mxu1 %vm757_vm1, %v93_v57  ;;  %v158_v57 = vld [vmem:[#allocation6 + $0x20] sm:$0xff] }
 0x1a0   :  { %1002 = vmatprep.mubr.f32.mxu1 %v6703_v0 }
 0x1a3   :  { %3664 = vmatmul.mubr.msk.f32.gmra.mrb[42].mxu1 %vm757_vm1, %v94_v3  ;;  %v159_v3 = vld [vmem:[#allocation6 + $0x28] sm:$0xff] }
 0x1a4   :  { %1008 = vmatprep.mubr.f32.mxu1 %v6703_v0  ;;  %v5670_v60 = vpack.c.bf16 %v159_v3, %v158_v57  ;;  %v169_v57 = vld [vmem:[#allocation6 + $0x78] sm:$0xff] }
 0x1a5   :  { %v5690_v3 = vpack.c.bf16 %v169_v57, %v168_v45 }
 0x1a6   :  { %6795 = vst [vmem:[#allocation26_spill] sm:$0xff] %v5670_v60  ;;  %4418 = vmatpush3.bf16.msra.mxu0 %v5670_v60 }
 0x1a7   :  { %3665 = vmatmul.mubr.msk.f32.gmra.mrb[44].mxu1 %vm757_vm1, %v95_v5  ;;  %4419 = vmatprep.subr.bf16.mxu0 %v6701_v1  ;;  %v160_v5 = vld [vmem:[#allocation6 + $0x30] sm:$0xff]  ;;  %6800 = vst [vmem:[#allocation31_spill] sm:$0xff] %v5690_v3 }
 0x1a8   :  { %1014 = vmatprep.mubr.f32.mxu1 %v6703_v0  ;;  %v5674_v20 = vpack.c.bf16 %v161_v14, %v160_v5  ;;  %v307_v5 = vadd.f32 %v5457_v53, %v5477_v7 }
 0x1aa   :  { %6796 = vst [vmem:[#allocation27_spill] sm:$0xff] %v5674_v20  ;;  %4421 = vmatpush3.bf16.msra.mxu0 %v5674_v20  ;;  %v411_v14 = vrot.slane %v307_v5, %v5483_v15 }
 0x1ab   :  { %3666 = vmatmul.mubr.msk.f32.gmra.mrb[46].mxu1 %vm757_vm1, %v96_v21  ;;  %4422 = vmatprep.subr.bf16.mxu0 %v6701_v1  ;;  %v162_v21 = vld [vmem:[#allocation6 + $0x40] sm:$0xff] }
 0x1ac   :  { %1020 = vmatprep.mubr.f32.mxu1 %v6703_v0  ;;  %v5678_v36 = vpack.c.bf16 %v163_v25, %v162_v21  ;;  %v419_v21 = vcombine.high %v411_v14, %v411_v14  ;;  %v427_v25 = vrot.slane %v411_v14, %v5483_v15 }
 0x1ae   :  { %6797 = vst [vmem:[#allocation28_spill] sm:$0xff] %v5678_v36  ;;  %4424 = vmatpush3.bf16.msra.mxu0 %v5678_v36  ;;  %v441_v40 = vrot.slane %v419_v21, %v5483_v15  ;;  %v5706_v57 = vrot.slane %v427_v25, %v5460_v56 }
 0x1af   :  { %3667 = vmatmul.mubr.msk.f32.gmra.mrb[48].mxu1 %vm757_vm1, %v97_v50  ;;  %4425 = vmatprep.subr.bf16.mxu0 %v6701_v1  ;;  %v164_v50 = vld [vmem:[#allocation6 + $0x50] sm:$0xff] }
 0x1b0   :  { %1026 = vmatprep.mubr.f32.mxu1 %v6703_v0  ;;  %6802 = vst [vmem:[#allocation33_spill] sm:$0xff] %v5706_v57  ;;  %v5717_v36 = vrot.slane %v441_v40, %v5460_v56 }
 0x1b2   :  { %6804 = vst [vmem:[#allocation35_spill] sm:$0xff] %v5717_v36 }
 0x1b3   :  { %3668 = vmatmul.mubr.msk.f32.gmra.mrb[50].mxu1 %vm757_vm1, %v98_v10  ;;  %v165_v10 = vld [vmem:[#allocation6 + $0x58] sm:$0xff] }
 0x1b4   :  { %1032 = vmatprep.mubr.f32.mxu1 %v6703_v0 }
 0x1b7   :  { %3669 = vmatmul.mubr.msk.f32.gmra.mrb[52].mxu1 %vm757_vm1, %v99_v39  ;;  %v5682_v39 = vpack.c.bf16 %v165_v10, %v164_v50  ;;  %v5699_v50 = vadd.f32 %v5455_v51, %v5474_v6 }
 0x1b8   :  { %1785 = vmatprep.mubr.f32.mxu1 %v6703_v0  ;;  %v5710_v0 = vadd.f32 %v5468_v61, %v5474_v6 }
 0x1b9   :  { %6798 = vst [vmem:[#allocation29_spill] sm:$0xff] %v5682_v39  ;;  %4427 = vmatpush3.bf16.msra.mxu0 %v5682_v39  ;;  %6801 = vst [vmem:[#allocation32_spill] sm:$0xff] %v5699_v50 }
 0x1ba   :  { %4428 = vmatprep.subr.bf16.mxu0 %v6701_v1  ;;  %6803 = vst [vmem:[#allocation34_spill] sm:$0xff] %v5710_v0 }
 0x1bd   :  { %4430 = vmatpush3.bf16.msra.mxu0 %v5686_v43  ;;  %v449_v43 = vcombine.high %v427_v25, %v427_v25 }
 0x1be   :  { %4431 = vmatprep.subr.bf16.mxu0 %v6701_v1 }
 0x1bf   :  { %v5722_v25 = vrot.slane %v449_v43, %v5460_v56 }
 0x1c1   :  { %4433 = vmatpush3.bf16.msra.mxu0 %v5690_v3  ;;  %v404_v3 = vcombine.high %v307_v5, %v307_v5  ;;  %6805 = vst [vmem:[#allocation36_spill] sm:$0xff] %v5722_v25 }
 0x22d   :  { %v1194_v10 = vpop.f32.mrb[18].mxu0 }
 0x22e   :  { %v1208_v41 = vadd.f32 %v1194_v10, %v5699_v50  ;;  %v5703_v45 = vpop.f32.mrb[6].mxu1  ;;  %v4049_v53 = vpop.f32.mrb[19].mxu0 }
 0x22f   :  { %v898_v1 = vpop.f32.mrb[7].mxu1 }
 0x230   :  { %v3673_v14 = vmul.f32 -1.442695, %v1208_v41  ;;  %v1229_v51 = vadd.f32 %v898_v1, %v5706_v57  ;;  %v418_v1 = vrot.slane %v404_v3, %v5483_v15 }
 0x231   :  { %v1199_v39 = vpop.f32.mrb[20].mxu0 }
 0x232   :  { %4623 = vpow2.f32 %v3673_v14  ;;  %v3676_v21 = vmul.f32 -1.442695, %v1229_v51  ;;  %v1209_v10 = vadd.f32 %v1199_v39, %v5710_v0  ;;  %v5714_v50 = vpop.f32.mrb[8].mxu1  ;;  %v4052_v53 = vpop.f32.mrb[21].mxu0  ;;  %v451_v51 = vcombine.high %v441_v40, %v441_v40 }
 0x233   :  { %v904_v20 = vpop.f32.mrb[9].mxu1  ;;  %v434_v3 = vrot.slane %v418_v1, %v5483_v15 }
 0x234   :  { %4625 = vpow2.f32 %v3676_v21  ;;  %v3674_v61 = vmul.f32 -1.442695, %v1209_v10  ;;  %v1230_v6 = vadd.f32 %v904_v20, %v5717_v36  ;;  %v420_v20 = vcombine.high %v418_v1, %v418_v1 }
 0x235   :  { %v1204_v5 = vpop.f32.mrb[22].mxu0 }
 0x236   :  { %4627 = vpow2.f32 %v3674_v61  ;;  %v3677_v41 = vmul.f32 -1.442695, %v1230_v6  ;;  %v1210_v39 = vadd.f32 %v1204_v5, %v5480_v13  ;;  %v5725_v14 = vpop.f32.mrb[10].mxu1  ;;  %v4055_v0 = vpop.f32.mrb[23].mxu0  ;;  %v5732_v61 = vrot.slane %v451_v51, %v5460_v56 }
 0x237   :  { %v910_v53 = vpop.f32.mrb[11].mxu1  ;;  %v448_v1 = vrot.slane %v420_v20, %v5483_v15  ;;  %v450_v20 = vcombine.high %v434_v3, %v434_v3 }
 0x238   :  { %4629 = vpow2.f32 %v3677_v41  ;;  %v3675_v21 = vmul.f32 -1.442695, %v1210_v39  ;;  %v1231_v10 = vadd.f32 %v910_v53, %v5722_v25  ;;  %6806 = vst [vmem:[#allocation37_spill] sm:$0xff] %v5732_v61  ;;  %v5738_v53 = vrot.slane %v434_v3, %v5460_v56 }
 0x239   :  { %v5747_v25 = vrot.slane %v448_v1, %v5460_v56 }
 0x23a   :  { %4631 = vpow2.f32 %v3675_v21  ;;  %v3678_v60 = vmul.f32 -1.442695, %v1231_v10  ;;  %v5729_v43 = vpop.f32.mrb[12].mxu1  ;;  %6807 = vst [vmem:[#allocation38_spill] sm:$0xff] %v5738_v53 }
 0x23b   :  { %v916_v6 = vpop.f32.mrb[13].mxu1  ;;  %6808 = vst [vmem:[#allocation39_spill] sm:$0xff] %v5747_v25 }
 0x23c   :  { %v4624_v5 = vpop.eup %4623  ;;  %4633 = vpow2.f32 %v3678_v60  ;;  %v1232_v0 = vadd.f32 %v916_v6, %v5732_v61 }
 0x23d   :  { %v1220_v40 = vadd.f32 1.0, %v4624_v5  ;;  %v313_v5 = vadd.f32 %v5470_v63, %v5477_v7 }
 0x23e   :  { %v4626_v41 = vpop.eup %4625  ;;  %v3679_v39 = vmul.f32 -1.442695, %v1232_v0  ;;  %v5735_v13 = vpop.f32.mrb[14].mxu1 }
 0x23f   :  { %4635 = vrcp.f32 %v1220_v40  ;;  %v1325_v21 = vadd.f32 1.0, %v4626_v41  ;;  %v922_v10 = vpop.f32.mrb[15].mxu1 }
 0x240   :  { %v4628_v51 = vpop.eup %4627  ;;  %4637 = vpow2.f32 %v3679_v39  ;;  %v1233_v46 = vadd.f32 %v922_v10, %v5738_v53  ;;  %v452_v53 = vcombine.high %v448_v1, %v448_v1 }
 0x241   :  { %4639 = vrcp.f32 %v1325_v21  ;;  %v1221_v60 = vadd.f32 1.0, %v4628_v51  ;;  %v460_v51 = vrot.slane %v313_v5, %v5483_v15 }
 0x242   :  { %v4630_v6 = vpop.eup %4629  ;;  %v3680_v0 = vmul.f32 -1.442695, %v1233_v46  ;;  %v5744_v61 = vpop.f32.mrb[16].mxu1  ;;  %v5754_v46 = vrot.slane %v450_v20, %v5460_v56  ;;  %v5764_v20 = vrot.slane %v452_v53, %v5460_v56 }
 0x243   :  { %4641 = vrcp.f32 %v1221_v60  ;;  %v1326_v40 = vadd.f32 1.0, %v4630_v6  ;;  %v928_v41 = vpop.f32.mrb[17].mxu1 }
 0x244   :  { %v4632_v42 = vpop.eup %4631  ;;  %4643 = vpow2.f32 %v3680_v0  ;;  %v1234_v39 = vadd.f32 %v928_v41, %v5747_v25  ;;  %6809 = vst [vmem:[#allocation40_spill] sm:$0xff] %v5754_v46  ;;  %6810 = vst [vmem:[#allocation41_spill] sm:$0xff] %v5764_v20 }
 0x245   :  { %4645 = vrcp.f32 %v1326_v40  ;;  %v1222_v21 = vadd.f32 1.0, %v4632_v42  ;;  %v476_v40 = vrot.slane %v460_v51, %v5483_v15 }
 0x246   :  { %v4634_v10 = vpop.eup %4633  ;;  %v3681_v63 = vmul.f32 -1.442695, %v1234_v39  ;;  %v5751_v7 = vpop.f32.mrb[18].mxu1 }
 0x247   :  { %4647 = vrcp.f32 %v1222_v21  ;;  %v1327_v3 = vadd.f32 1.0, %v4634_v10  ;;  %v934_v60 = vpop.f32.mrb[19].mxu1  ;;  %v453_v21 = vcombine.high %v313_v5, %v313_v5  ;;  %v468_v10 = vcombine.high %v460_v51, %v460_v51 }
 0x248   :  { %4649 = vpow2.f32 %v3681_v63  ;;  %v1235_v6 = vadd.f32 %v934_v60, %v5754_v46  ;;  %v5776_v5 = vrot.slane %v476_v40, %v5460_v56 }
 0x249   :  { %v5757_v0 = vpop.eup %4635  ;;  %4651 = vrcp.f32 %v1327_v3 }
 0x24a   :  { %v4638_v42 = vpop.eup %4637  ;;  %v1706_v41 = vsub.f32 1.0, %v5757_v0  ;;  %v3682_v39 = vmul.f32 -1.442695, %v1235_v6  ;;  %v5761_v25 = vpop.f32.mrb[20].mxu1  ;;  %6811 = vst [vmem:[#allocation42_spill] sm:$0xff] %v5776_v5 }
 0x24b   :  { %v4640_v1 = vpop.eup %4639  ;;  %v1328_v63 = vadd.f32 1.0, %v4638_v42  ;;  %v940_v36 = vpop.f32.mrb[21].mxu1  ;;  %v5780_v42 = vrot.slane %v453_v21, %v5483_v15 }
 0x24c   :  { %v1397_v60 = vmul.f32 %v4640_v1, %v5703_v45  ;;  %4653 = vpow2.f32 %v3682_v39  ;;  %v1236_v3 = vadd.f32 %v940_v36, %v5764_v20  ;;  %v5769_v46 = vmul.f32 %v1706_v41, %v5503_v48 }
 0x24d   :  { %v5771_v57 = vpop.eup %4641  ;;  %4655 = vrcp.f32 %v1328_v63  ;;  %v490_v48 = vrot.slane %v468_v10, %v5483_v15 }
 0x24e   :  { %v4644_v6 = vpop.eup %4643  ;;  %v1421_v49 = vrot.slane %v1397_v60, 4  ;;  %v3683_v53 = vmul.f32 -1.442695, %v1236_v3  ;;  %v5773_v38 = vpop.f32.mrb[22].mxu1  ;;  %v1707_v51 = vsub.f32 1.0, %v5771_v57 }
 0x24f   :  { %v4646_v45 = vpop.eup %4645  ;;  %v1329_v36 = vadd.f32 1.0, %v4644_v6  ;;  %v946_v41 = vpop.f32.mrb[23].mxu1  ;;  %v5794_v6 = vrot.slane %v490_v48, %v5460_v56 }
 0x250   :  { %v1422_v39 = vadd.f32 %v1421_v49, %v1397_v60  ;;  %v1398_v1 = vmul.f32 %v4646_v45, %v5714_v50  ;;  %4657 = vpow2.f32 %v3683_v53  ;;  %v1237_v63 = vadd.f32 %v946_v41, %v5776_v5 }
 0x251   :  { %v5785_v3 = vpop.eup %4647  ;;  %4659 = vrcp.f32 %v1329_v36  ;;  %v5788_v20 = vmul.f32 %v1707_v51, %v5514_v55  ;;  %v498_v60 = vcombine.high %v476_v40, %v476_v40  ;;  %6812 = vst [vmem:[#allocation43_spill] sm:$0xff] %v5794_v6  ;;  %v5798_v45 = vrot.slane %v5780_v42, %v5483_v15 }
 0x252   :  { %v4650_v47 = vpop.eup %4649  ;;  %v1423_v35 = vrot.slane %v1422_v39, 2  ;;  %v1427_v21 = vrot.slane %v1398_v1, 4  ;;  %v3684_v34 = vmul.f32 -1.442695, %v1237_v63  ;;  %v5790_v44 = vpop.f32.mrb[24].mxu1  ;;  %v1708_v10 = vsub.f32 1.0, %v5785_v3 }
 0x253   :  { %v4652_v49 = vpop.eup %4651  ;;  %v1330_v50 = vadd.f32 1.0, %v4650_v47  ;;  %v952_v53 = vpop.f32.mrb[25].mxu1 }
 0x254   :  { %v1428_v55 = vadd.f32 %v1427_v21, %v1398_v1  ;;  %v1399_v51 = vmul.f32 %v4652_v49, %v5725_v14  ;;  %4661 = vpow2.f32 %v3684_v34  ;;  %v1424_v36 = vadd.f32 %v1423_v35, %v1422_v39 }
 0x255   :  { %4663 = vrcp.f32 %v1330_v50  ;;  %v1238_v41 = vadd.f32 %v952_v53, %v5794_v6  ;;  %v5803_v63 = vmul.f32 %v1708_v10, %v5526_v12  ;;  %v5808_v1 = vrot.slane %v498_v60, %v5460_v56 }
 0x256   :  { %v4654_v47 = vpop.eup %4653  ;;  %v1429_v40 = vrot.slane %v1428_v55, 2  ;;  %v1433_v5 = vrot.slane %v1399_v51, 4  ;;  %v5805_v29 = vpop.f32.mrb[26].mxu1  ;;  %v500_v34 = vcombine.high %v490_v48, %v490_v48  ;;  %v469_v35 = vcombine.high %v5780_v42, %v5780_v42 }
 0x257   :  { %v4656_v28 = vpop.eup %4655  ;;  %v1331_v37 = vadd.f32 1.0, %v4654_v47  ;;  %v3685_v23 = vmul.f32 -1.442695, %v1238_v41  ;;  %6813 = vst [vmem:[#allocation44_spill] sm:$0xff] %v5808_v1  ;;  %v958_v14 = vpop.f32.mrb[27].mxu1  ;;  %v1425_v10 = vrot.slane %v1424_v36, 1  ;;  %v5816_v50 = vrot.slane %v5798_v45, %v5460_v56 }
 0x258   :  { %v1430_v39 = vadd.f32 %v1429_v40, %v1428_v55  ;;  %v1434_v21 = vadd.f32 %v1433_v5, %v1399_v51  ;;  %v1400_v12 = vmul.f32 %v4656_v28, %v5729_v43  ;;  %v1239_v49 = vadd.f32 %v958_v14, %v5808_v1 }
 0x259   :  { %4665 = vrcp.f32 %v1331_v37  ;;  %v5821_v28 = vrot.slane %v500_v34, %v5460_v56  ;;  %v1426_v1 = vadd.f32 %v1425_v10, %v1424_v36 }
 0x25a   :  { %v4658_v53 = vpop.eup %4657  ;;  %v1431_v60 = vrot.slane %v1430_v39, 1  ;;  %v1435_v41 = vrot.slane %v1434_v21, 2  ;;  %v1439_v47 = vrot.slane %v1400_v12, 4  ;;  %4667 = vpow2.f32 %v3685_v23  ;;  %v5818_v48 = vpop.f32.mrb[28].mxu1 }
 0x25b   :  { %v4660_v42 = vpop.eup %4659  ;;  %v1332_v55 = vadd.f32 1.0, %v4658_v53  ;;  %v3686_v5 = vmul.f32 -1.442695, %v1239_v49  ;;  %v964_v37 = vpop.f32.mrb[29].mxu1  ;;  %v497_v23 = vrot.slane %v469_v35, %v5483_v15 }
 0x25c   :  { %v1432_v43 = vadd.f32 %v1431_v60, %v1430_v39  ;;  %v1436_v51 = vadd.f32 %v1435_v41, %v1434_v21  ;;  %v1440_v40 = vadd.f32 %v1439_v47, %v1400_v12  ;;  %v1401_v14 = vmul.f32 %v4660_v42, %v5735_v13 }
 0x25d   :  { %4669 = vrcp.f32 %v1332_v55  ;;  %v1240_v6 = vadd.f32 %v964_v37, %v5821_v28  ;;  %v5832_v35 = vrot.slane %v497_v23, %v5460_v56  ;;  %v499_v60 = vcombine.high %v5798_v45, %v5798_v45 }
 0x25e   :  { %v4662_v22 = vpop.eup %4661  ;;  %v1437_v27 = vrot.slane %v1436_v51, 1  ;;  %v1441_v53 = vrot.slane %v1440_v40, 2  ;;  %v1445_v49 = vrot.slane %v1401_v14, 4  ;;  %4671 = vpow2.f32 %v3686_v5  ;;  %v5826_v34 = vpop.f32.mrb[30].mxu1 }
 0x25f   :  { %v4664_v17 = vpop.eup %4663  ;;  %v1333_v16 = vadd.f32 1.0, %v4662_v22  ;;  %v3687_v39 = vmul.f32 -1.442695, %v1240_v6  ;;  %v970_v21 = vpop.f32.mrb[31].mxu1  ;;  %v1590_v12 = vsel %vm1589_vm2, %v1432_v43, %v1426_v1  ;;  %v5842_v43 = vrot.slane %v499_v60, %v5460_v56 }
 0x260   :  { %v1442_v13 = vadd.f32 %v1441_v53, %v1440_v40  ;;  %v1446_v36 = vadd.f32 %v1445_v49, %v1401_v14  ;;  %v1402_v10 = vmul.f32 %v4664_v17, %v5744_v61  ;;  %v1241_v15 = vadd.f32 %v970_v21, %v5816_v50 }
 0x261   :  { %4673 = vrcp.f32 %v1333_v16  ;;  %v1438_v41 = vadd.f32 %v1437_v27, %v1436_v51 }
 0x262   :  { %v1447_v22 = vrot.slane %v1446_v36, 2  ;;  %v1451_v6 = vrot.slane %v1402_v10, 4  ;;  %4675 = vpow2.f32 %v3687_v39  ;;  %v3688_v47 = vmul.f32 -1.442695, %v1241_v15  ;;  %v5836_v1 = vpop.f32.mrb[32].mxu1 }
 0x263   :  { %v4666_v42 = vpop.eup %4665  ;;  %v976_v55 = vpop.f32.mrb[33].mxu1  ;;  %v1443_v5 = vrot.slane %v1442_v13, 1  ;;  %v1592_v17 = vsel %vm1591_vm3, %v1438_v41, %v1590_v12  ;;  %v501_v39 = vcombine.high %v497_v23, %v497_v23 }
 0x264   :  { %v4668_v16 = vpop.eup %4667  ;;  %v1452_v61 = vadd.f32 %v1451_v6, %v1402_v10  ;;  %v1403_v37 = vmul.f32 %v4666_v42, %v5751_v7  ;;  %4677 = vpow2.f32 %v3688_v47  ;;  %v1242_v45 = vadd.f32 %v976_v55, %v5832_v35 }
 0x265   :  { %v1334_v27 = vadd.f32 1.0, %v4668_v16  ;;  %v1444_v51 = vadd.f32 %v1443_v5, %v1442_v13  ;;  %v1448_v40 = vadd.f32 %v1447_v22, %v1446_v36  ;;  %v5852_v55 = vrot.slane %v501_v39, %v5460_v56 }
 0x266   :  { %v1457_v14 = vrot.slane %v1403_v37, 4  ;;  %v3689_v53 = vmul.f32 -1.442695, %v1242_v45  ;;  %v5844_v49 = vpop.f32.mrb[34].mxu1  ;;  %v1453_v21 = vrot.slane %v1452_v61, 2 }
 0x267   :  { %v4670_v12 = vpop.eup %4669  ;;  %4679 = vrcp.f32 %v1334_v27  ;;  %v982_v10 = vpop.f32.mrb[35].mxu1  ;;  %v1449_v15 = vrot.slane %v1448_v40, 1  ;;  %v1594_v7 = vsel %vm1593_vm4, %v1444_v51, %v1592_v17 }
 0x268   :  { %v4672_v41 = vpop.eup %4671  ;;  %v1404_v6 = vmul.f32 %v4670_v12, %v5761_v25  ;;  %4681 = vpow2.f32 %v3689_v53  ;;  %v1243_v13 = vadd.f32 %v982_v10, %v5842_v43  ;;  %v1454_v36 = vadd.f32 %v1453_v21, %v1452_v61 }
 0x269   :  { %v1335_v60 = vadd.f32 1.0, %v4672_v41  ;;  %v1450_v22 = vadd.f32 %v1449_v15, %v1448_v40  ;;  %v1458_v47 = vadd.f32 %v1457_v14, %v1403_v37  ;;  %v5861_v41 = vrot.slane %v5489_v26, %v5460_v56 }
 0x26a   :  { %v3690_v42 = vmul.f32 -1.442695, %v1243_v13  ;;  %v5849_v23 = vpop.f32.mrb[36].mxu1  ;;  %v1455_v5 = vrot.slane %v1454_v36, 1  ;;  %v1463_v16 = vrot.slane %v1404_v6, 4 }
 0x26b   :  { %v4674_v17 = vpop.eup %4673  ;;  %4683 = vrcp.f32 %v1335_v60  ;;  %v988_v45 = vpop.f32.mrb[37].mxu1  ;;  %v1459_v27 = vrot.slane %v1458_v47, 2  ;;  %v1596_v25 = vsel %vm1595_vm5, %v1450_v22, %v1594_v7 }
 0x26c   :  { %v4676_v51 = vpop.eup %4675  ;;  %v1405_v61 = vmul.f32 %v4674_v17, %v5773_v38  ;;  %4685 = vpow2.f32 %v3690_v42  ;;  %v1244_v37 = vadd.f32 %v988_v45, %v5852_v55  ;;  %v1456_v40 = vadd.f32 %v1455_v5, %v1454_v36 }
 0x26d   :  { %v1336_v14 = vadd.f32 1.0, %v4676_v51  ;;  %v1460_v53 = vadd.f32 %v1459_v27, %v1458_v47  ;;  %v1464_v39 = vadd.f32 %v1463_v16, %v1404_v6  ;;  %v547_v17 = vcombine.high %v5489_v26, %v5489_v26 }
 0x26e   :  { %v4678_v21 = vpop.eup %4677  ;;  %v1469_v12 = vrot.slane %v1405_v61, 4  ;;  %v3691_v10 = vmul.f32 -1.442695, %v1244_v37  ;;  %v5857_v15 = vpop.f32.mrb[38].mxu1  ;;  %v1598_v7 = vsel %vm1597_vm6, %v1456_v40, %v1596_v25  ;;  %v5872_v51 = vrot.slane %v5495_v31, %v5460_v56 }
 0x26f   :  { %4687 = vrcp.f32 %v1336_v14  ;;  %v1337_v38 = vadd.f32 1.0, %v4678_v21  ;;  %v994_v13 = vpop.f32.mrb[39].mxu1  ;;  %v1461_v60 = vrot.slane %v1460_v53, 1  ;;  %v1465_v22 = vrot.slane %v1464_v39, 2 }
 0x270   :  { %v1470_v36 = vadd.f32 %v1469_v12, %v1405_v61  ;;  %4689 = vpow2.f32 %v3691_v10  ;;  %v1245_v6 = vadd.f32 %v994_v13, %v5861_v41  ;;  %6814 = vst [vmem:[#allocation45_spill] sm:$0xff] %v5872_v51 }
 0x271   :  { %v4680_v47 = vpop.eup %4679  ;;  %4691 = vrcp.f32 %v1337_v38  ;;  %v1462_v42 = vadd.f32 %v1461_v60, %v1460_v53  ;;  %v1466_v5 = vadd.f32 %v1465_v22, %v1464_v39  ;;  %v5880_v22 = vrot.slane %v547_v17, %v5460_v56 }
 0x272   :  { %v4682_v16 = vpop.eup %4681  ;;  %v1406_v45 = vmul.f32 %v4680_v47, %v5790_v44  ;;  %v3692_v27 = vmul.f32 -1.442695, %v1245_v6  ;;  %v5868_v25 = vpop.f32.mrb[40].mxu1  ;;  %v1471_v61 = vrot.slane %v1470_v36, 2 }
 0x273   :  { %v1338_v37 = vadd.f32 1.0, %v4682_v16  ;;  %v1000_v40 = vpop.f32.mrb[41].mxu1  ;;  %v1467_v14 = vrot.slane %v1466_v5, 1  ;;  %v1600_v53 = vsel %vm1599_vm7, %v1462_v42, %v1598_v7  ;;  %6815 = vst [vmem:[#allocation46_spill] sm:$0xff] %v5880_v22  ;;  %v549_v16 = vcombine.high %v5495_v31, %v5495_v31 }
 0x274   :  { %v1475_v39 = vrot.slane %v1406_v45, 4  ;;  %4693 = vpow2.f32 %v3692_v27  ;;  %v1246_v21 = vadd.f32 %v1000_v40, %v5872_v51  ;;  %v1472_v6 = vadd.f32 %v1471_v61, %v1470_v36 }
 0x275   :  { %v4684_v26 = vpop.eup %4683  ;;  %4695 = vrcp.f32 %v1338_v37  ;;  %v1468_v44 = vadd.f32 %v1467_v14, %v1466_v5  ;;  %v6816_v37 = vmov 0.0  }
 0x276   :  { %v4686_v12 = vpop.eup %4685  ;;  %v1476_v10 = vadd.f32 %v1475_v39, %v1406_v45  ;;  %v1407_v38 = vmul.f32 %v4684_v26, %v5805_v29  ;;  %v3693_v13 = vmul.f32 -1.442695, %v1246_v21  ;;  %v5877_v60 = vpop.f32.mrb[42].mxu1  ;;  %v5892_v21 = vrot.slane %v549_v16, %v5460_v56 }
 0x277   :  { %v1339_v7 = vadd.f32 1.0, %v4686_v12  ;;  %v1006_v47 = vpop.f32.mrb[43].mxu1  ;;  %v1602_v42 = vsel %vm1601_vm8, %v1468_v44, %v1600_v53  ;;  %v1473_v44 = vrot.slane %v1472_v6, 1 }
 0x278   :  { %v1477_v27 = vrot.slane %v1476_v10, 2  ;;  %v1481_v5 = vrot.slane %v1407_v38, 4  ;;  %4697 = vpow2.f32 %v3693_v13  ;;  %v1247_v45 = vadd.f32 %v1006_v47, %v5880_v22  ;;  %4089 = vmatmul.mubr.f32.vlgmr.msra.gmra.mrb[24].mxu0 %v1602_v42  ;;  %6817 = vst [vmem:[#allocation47_spill] sm:$0xff] %v5892_v21 }
 0x279   :  { %v4688_v29 = vpop.eup %4687  ;;  %4699 = vrcp.f32 %v1339_v7  ;;  %4091 = vmatprep.mubr.msk.f32.mxu0 %vm5104_vm0, %v6816_v37 }
 0x27a   :  { %v4690_v17 = vpop.eup %4689  ;;  %v1478_v36 = vadd.f32 %v1477_v27, %v1476_v10  ;;  %v1482_v61 = vadd.f32 %v1481_v5, %v1407_v38  ;;  %v1408_v40 = vmul.f32 %v4688_v29, %v5818_v48  ;;  %v3694_v14 = vmul.f32 -1.442695, %v1247_v45  ;;  %v5889_v53 = vpop.f32.mrb[44].mxu1 }
 0x27b   :  { %v4692_v31 = vpop.eup %4691  ;;  %v1340_v39 = vadd.f32 1.0, %v4690_v17  ;;  %v1012_v26 = vpop.f32.mrb[45].mxu1  ;;  %v5898_v48 = vrot.slane %v5492_v30, %v5460_v56  ;;  %v548_v5 = vcombine.high %v5492_v30, %v5492_v30 }
 0x27c   :  { %v1483_v12 = vrot.slane %v1482_v61, 2  ;;  %v1487_v13 = vrot.slane %v1408_v40, 4  ;;  %v1409_v7 = vmul.f32 %v4692_v31, %v5826_v34  ;;  %4701 = vpow2.f32 %v3694_v14 }
 0x27d   :  { %4703 = vrcp.f32 %v1340_v39  ;;  %v1248_v10 = vadd.f32 %v1012_v26, %v5892_v21  ;;  %6818 = vst [vmem:[#allocation48_spill] sm:$0xff] %v5898_v48  ;;  %v1479_v38 = vrot.slane %v1478_v36, 1  ;;  %v1474_v31 = vadd.f32 %v1473_v44, %v1472_v6 }
 0x27e   :  { %v4694_v47 = vpop.eup %4693  ;;  %v1488_v42 = vadd.f32 %v1487_v13, %v1408_v40  ;;  %v1493_v27 = vrot.slane %v1409_v7, 4  ;;  %v5900_v16 = vpop.f32.mrb[46].mxu1  ;;  %v1484_v45 = vadd.f32 %v1483_v12, %v1482_v61  ;;  %v5908_v40 = vrot.slane %v5498_v33, %v5460_v56 }
 0x27f   :  { %v4696_v29 = vpop.eup %4695  ;;  %v1341_v34 = vadd.f32 1.0, %v4694_v47  ;;  %v3695_v17 = vmul.f32 -1.442695, %v1248_v10  ;;  %v1018_v14 = vpop.f32.mrb[47].mxu1  ;;  %v1480_v39 = vadd.f32 %v1479_v38, %v1478_v36  ;;  %v5914_v47 = vrot.slane %v548_v5, %v5460_v56 }
 0x280   :  { %v1410_v26 = vmul.f32 %v4696_v29, %v5836_v1  ;;  %v1249_v21 = vadd.f32 %v1018_v14, %v5898_v48  ;;  %v1485_v22 = vrot.slane %v1484_v45, 1  ;;  %v1489_v51 = vrot.slane %v1488_v42, 2  ;;  %6819 = vst [vmem:[#allocation49_spill] sm:$0xff] %v5908_v40 }
 0x281   :  { %4705 = vrcp.f32 %v1341_v34  ;;  %v1494_v13 = vadd.f32 %v1493_v27, %v1409_v7  ;;  %v1603_v30 = vsel %vm1589_vm2, %v1480_v39, %v1474_v31  ;;  %v550_v5 = vcombine.high %v5498_v33, %v5498_v33 }
 0x282   :  { %v4698_v61 = vpop.eup %4697  ;;  %4707 = vpow2.f32 %v3695_v17  ;;  %v3696_v12 = vmul.f32 -1.442695, %v1249_v21  ;;  %v5911_v10 = vpop.f32.mrb[48].mxu1  ;;  %v1486_v6 = vadd.f32 %v1485_v22, %v1484_v45  ;;  %v1490_v36 = vadd.f32 %v1489_v51, %v1488_v42 }
 0x283   :  { %v4700_v1 = vpop.eup %4699  ;;  %v1342_v44 = vadd.f32 1.0, %v4698_v61  ;;  %v1024_v38 = vpop.f32.mrb[49].mxu1  ;;  %v1495_v29 = vrot.slane %v1494_v13, 2  ;;  %v1499_v34 = vrot.slane %v1410_v26, 4 }
 0x284   :  { %4709 = vpow2.f32 %v3696_v12  ;;  %v1250_v7 = vadd.f32 %v1024_v38, %v5908_v40  ;;  %v1411_v27 = vmul.f32 %v4700_v1, %v5844_v49  ;;  %v1491_v14 = vrot.slane %v1490_v36, 1 }
 0x285   :  { %4711 = vrcp.f32 %v1342_v44  ;;  %v1496_v21 = vadd.f32 %v1495_v29, %v1494_v13  ;;  %v1500_v17 = vadd.f32 %v1499_v34, %v1410_v26  ;;  %v1604_v22 = vsel %vm1591_vm3, %v1486_v6, %v1603_v30 }
 0x286   :  { %v4702_v51 = vpop.eup %4701  ;;  %v3697_v42 = vmul.f32 -1.442695, %v1250_v7  ;;  %v5919_v45 = vpop.f32.mrb[50].mxu1  ;;  %v1492_v31 = vadd.f32 %v1491_v14, %v1490_v36  ;;  %v1505_v39 = vrot.slane %v1411_v27, 4  ;;  %v5929_v36 = vrot.slane %v550_v5, %v5460_v56 }
 0x287   :  { %v4704_v61 = vpop.eup %4703  ;;  %v1343_v12 = vadd.f32 1.0, %v4702_v51  ;;  %v1030_v38 = vpop.f32.mrb[51].mxu1  ;;  %v1497_v40 = vrot.slane %v1496_v21, 1  ;;  %v1501_v49 = vrot.slane %v1500_v17, 2 }
 0x288   :  { %4713 = vpow2.f32 %v3697_v42  ;;  %v1251_v13 = vadd.f32 %v1030_v38, %v5914_v47  ;;  %v1412_v26 = vmul.f32 %v4704_v61, %v5849_v23  ;;  %v1506_v30 = vadd.f32 %v1505_v39, %v1411_v27  ;;  %6820 = vst [vmem:[#allocation50_spill] sm:$0xff] %v5929_v36 }
 0x289   :  { %4715 = vrcp.f32 %v1343_v12  ;;  %v1498_v6 = vadd.f32 %v1497_v40, %v1496_v21  ;;  %v1502_v1 = vadd.f32 %v1501_v49, %v1500_v17  ;;  %v1605_v44 = vsel %vm1593_vm4, %v1492_v31, %v1604_v22 }
 0x28a   :  { %v3698_v29 = vmul.f32 -1.442695, %v1251_v13  ;;  %v5926_v33 = vpop.f32.mrb[52].mxu1  ;;  %v1507_v34 = vrot.slane %v1506_v30, 2  ;;  %v1511_v7 = vrot.slane %v1412_v26, 4 }
 0x28b   :  { %v4706_v14 = vpop.eup %4705  ;;  %v1036_v51 = vpop.f32.mrb[53].mxu1  ;;  %v1503_v42 = vrot.slane %v1502_v1, 1  ;;  %v1606_v38 = vsel %vm1595_vm5, %v1498_v6, %v1605_v44 }
 0x28c   :  { %v4708_v23 = vpop.eup %4707  ;;  %v1413_v27 = vmul.f32 %v4706_v14, %v5857_v15  ;;  %4717 = vpow2.f32 %v3698_v29  ;;  %v1252_v40 = vadd.f32 %v1036_v51, %v5929_v36  ;;  %v1508_v21 = vadd.f32 %v1507_v34, %v1506_v30 }
 0x28d   :  { %v1344_v17 = vadd.f32 1.0, %v4708_v23  ;;  %v1504_v22 = vadd.f32 %v1503_v42, %v1502_v1  ;;  %v1512_v31 = vadd.f32 %v1511_v7, %v1412_v26 }
 0x28e   :  { %v4710_v39 = vpop.eup %4709  ;;  %v1517_v56 = vrot.slane %v1413_v27, 4  ;;  %v3699_v5 = vmul.f32 -1.442695, %v1252_v40  ;;  %v1509_v61 = vrot.slane %v1508_v21, 1 }
 0x28f   :  { %v4712_v12 = vpop.eup %4711  ;;  %4719 = vrcp.f32 %v1344_v17  ;;  %v1345_v49 = vadd.f32 1.0, %v4710_v39  ;;  %v1513_v13 = vrot.slane %v1512_v31, 2  ;;  %v1607_v6 = vsel %vm1597_vm6, %v1504_v22, %v1606_v38 }
 0x290   :  { %v1518_v44 = vadd.f32 %v1517_v56, %v1413_v27  ;;  %v1414_v15 = vmul.f32 %v4712_v12, %v5868_v25  ;;  %4721 = vpow2.f32 %v3699_v5  ;;  %v1510_v29 = vadd.f32 %v1509_v61, %v1508_v21 }
 0x291   :  { %4723 = vrcp.f32 %v1345_v49  ;;  %v1514_v30 = vadd.f32 %v1513_v13, %v1512_v31 }
 0x292   :  { %v4714_v34 = vpop.eup %4713  ;;  %v1519_v1 = vrot.slane %v1518_v44, 2  ;;  %v1523_v26 = vrot.slane %v1414_v15, 4  ;;  %v1608_v7 = vsel %vm1599_vm7, %v1510_v29, %v1607_v6 }
 0x293   :  { %v4716_v14 = vpop.eup %4715  ;;  %v1346_v51 = vadd.f32 1.0, %v4714_v34  ;;  %v1515_v42 = vrot.slane %v1514_v30, 1 }
 0x294   :  { %v1520_v23 = vadd.f32 %v1519_v1, %v1518_v44  ;;  %v1524_v40 = vadd.f32 %v1523_v26, %v1414_v15  ;;  %v1415_v17 = vmul.f32 %v4716_v14, %v5877_v60 }
 0x295   :  { %4725 = vrcp.f32 %v1346_v51  ;;  %v1516_v38 = vadd.f32 %v1515_v42, %v1514_v30 }
 0x296   :  { %v4718_v27 = vpop.eup %4717  ;;  %v1525_v25 = vrot.slane %v1524_v40, 2  ;;  %v1529_v22 = vrot.slane %v1415_v17, 4  ;;  %v1521_v39 = vrot.slane %v1520_v23, 1 }
 0x297   :  { %v1347_v21 = vadd.f32 1.0, %v4718_v27  ;;  %v1609_v31 = vsel %vm1601_vm8, %v1516_v38, %v1608_v7 }
 0x298   :  { %v1526_v56 = vadd.f32 %v1525_v25, %v1524_v40  ;;  %v1530_v5 = vadd.f32 %v1529_v22, %v1415_v17  ;;  %4092 = vmatmul.mubr.f32.gmra.mrb[26].mxu0 %v1609_v31  ;;  %v1522_v15 = vadd.f32 %v1521_v39, %v1520_v23 }
 0x299   :  { %v4720_v61 = vpop.eup %4719  ;;  %4727 = vrcp.f32 %v1347_v21  ;;  %4094 = vmatprep.mubr.msk.f32.mxu0 %vm5104_vm0, %v6816_v37 }
 0x29a   :  { %v4722_v12 = vpop.eup %4721  ;;  %v1531_v49 = vrot.slane %v1530_v5, 2  ;;  %v1416_v60 = vmul.f32 %v4720_v61, %v5889_v53  ;;  %v1527_v13 = vrot.slane %v1526_v56, 1 }
 0x29b   :  { %v4724_v6 = vpop.eup %4723  ;;  %v1348_v44 = vadd.f32 1.0, %v4722_v12 }
 0x29c   :  { %v1535_v29 = vrot.slane %v1416_v60, 4  ;;  %v1417_v30 = vmul.f32 %v4724_v6, %v5900_v16  ;;  %v1528_v34 = vadd.f32 %v1527_v13, %v1526_v56  ;;  %v1532_v1 = vadd.f32 %v1531_v49, %v1530_v5 }
 0x29d   :  { %4729 = vrcp.f32 %v1348_v44 }
 0x29e   :  { %v1536_v26 = vadd.f32 %v1535_v29, %v1416_v60  ;;  %v1541_v7 = vrot.slane %v1417_v30, 4  ;;  %v1533_v14 = vrot.slane %v1532_v1, 1  ;;  %v1610_v51 = vsel %vm1589_vm2, %v1528_v34, %v1522_v15 }
 0x29f   :  { %v4726_v42 = vpop.eup %4725 }
 0x2a0   :  { %v1418_v40 = vmul.f32 %v4726_v42, %v5911_v10  ;;  %v1534_v17 = vadd.f32 %v1533_v14, %v1532_v1  ;;  %v1537_v53 = vrot.slane %v1536_v26, 2  ;;  %v1542_v38 = vadd.f32 %v1541_v7, %v1417_v30 }
 0x2a2   :  { %v1538_v27 = vadd.f32 %v1537_v53, %v1536_v26  ;;  %v1543_v25 = vrot.slane %v1542_v38, 2  ;;  %v1547_v23 = vrot.slane %v1418_v40, 4  ;;  %v1611_v22 = vsel %vm1591_vm3, %v1534_v17, %v1610_v51 }
 0x2a3   :  { %v4728_v16 = vpop.eup %4727 }
 0x2a4   :  { %v1419_v21 = vmul.f32 %v4728_v16, %v5919_v45  ;;  %v1539_v31 = vrot.slane %v1538_v27, 1  ;;  %v1544_v39 = vadd.f32 %v1543_v25, %v1542_v38  ;;  %v1548_v56 = vadd.f32 %v1547_v23, %v1418_v40 }
 0x2a5   :  { %v5956_v25 = vadd.f32 %v5624_v54, %v5640_v24  ;;  %v5967_v54 = vadd.f32 %v5632_v18, %v5640_v24 }
 0x2a6   :  { %v1540_v5 = vadd.f32 %v1539_v31, %v1538_v27  ;;  %v1545_v61 = vrot.slane %v1544_v39, 1  ;;  %v1549_v12 = vrot.slane %v1548_v56, 2  ;;  %v1553_v49 = vrot.slane %v1419_v21, 4 }
 0x2a7   :  { %v4730_v60 = vpop.eup %4729 }
 0x2a8   :  { %v1420_v10 = vmul.f32 %v4730_v60, %v5926_v33  ;;  %v1546_v13 = vadd.f32 %v1545_v61, %v1544_v39  ;;  %v1550_v6 = vadd.f32 %v1549_v12, %v1548_v56  ;;  %v1554_v44 = vadd.f32 %v1553_v49, %v1419_v21  ;;  %v103_v39 = vld [vmem:[%s6694_s4] sm:$0xff] }
 0x2a9   :  { %v1612_v15 = vsel %vm1593_vm4, %v1540_v5, %v1611_v22 }
 0x2aa   :  { %v1551_v29 = vrot.slane %v1550_v6, 1  ;;  %v1555_v30 = vrot.slane %v1554_v44, 2  ;;  %v1559_v34 = vrot.slane %v1420_v10, 4  ;;  %v1613_v45 = vsel %vm1595_vm5, %v1546_v13, %v1612_v15 }
 0x2ac   :  { %v1552_v1 = vadd.f32 %v1551_v29, %v1550_v6  ;;  %v1556_v26 = vadd.f32 %v1555_v30, %v1554_v44  ;;  %v1560_v7 = vadd.f32 %v1559_v34, %v1420_v10 }
 0x2ae   :  { %v1557_v14 = vrot.slane %v1556_v26, 1  ;;  %v1561_v51 = vrot.slane %v1560_v7, 2  ;;  %v1614_v42 = vsel %vm1597_vm6, %v1552_v1, %v1613_v45 }
 0x2b0   :  { %v1558_v40 = vadd.f32 %v1557_v14, %v1556_v26  ;;  %v1562_v17 = vadd.f32 %v1561_v51, %v1560_v7 }
 0x2b2   :  { %v1563_v33 = vrot.slane %v1562_v17, 1  ;;  %v1615_v53 = vsel %vm1599_vm7, %v1558_v40, %v1614_v42  ;;  %v4966_v42 = vld [vmem:[%s6692_s2 + $0xb8] sm:$0xff]  ;;  %v6821_v40 = vmov 0.0|0.0  }
 0x2b4   :  { %v1564_v38 = vadd.f32 %v1563_v33, %v1562_v17  ;;  %v4967_v17 = vld [vmem:[%s6692_s2 + $0x8] sm:$0xff]  ;;  %v4968_v33 = vld [vmem:[%s6693_s3] sm:$0xff] }
 0x2b6   :  { %v1616_v27 = vsel %vm1601_vm8, %v1564_v38, %v1615_v53  ;;  %v6823_v53 = vld [vmem:[#allocation10_spill] sm:$0xff] }
 0x2b7   :  { %4095 = vmatmul.mubr.f32.gmra.mrb[28].mxu0 %v1616_v27  ;;  %v6824_v38 = vld [vmem:[#allocation18_spill] sm:$0xff]  ;;  %v6825_v27 = vld [vmem:[#allocation11_spill] sm:$0xff] }
 0x2b8   :  { %1868 = vmatprep.mubr.f32.mxu0 %v6816_v37 }
 0x34b   :  { %v1686_v23 = vpop.f32.mrb[24].mxu0 }
 0x34c   :  { %v1700_v22 = vadd.f32 %v1686_v23, %v5956_v25  ;;  %v4090_v16 = vpop.f32.mrb[25].mxu0  ;;  %v6826_v23 = vld [vmem:[#allocation12_spill] sm:$0xff] }
 0x34d   :  { %v6827_v16 = vld [vmem:[#allocation19_spill] sm:$0xff] }
 0x34e   :  { %4731 = vtanh.f32 %v1700_v22  ;;  %v4975_v22 = vld [vmem:[%s6692_s2 + $0x30] sm:$0xff] }
 0x358   :  { %v4732_v21 = vpop.eup %4731 }
 0x359   :  { %v1712_v31 = vmul.f32 %v4732_v21, %v5757_v0  ;;  %v6828_v21 = vld [vmem:[#allocation13_spill] sm:$0xff] }
 0x35b   :  { %v1715_v56 = vadd.f32 %v1712_v31, %v5769_v46  ;;  %v104_v46 = vld [vmem:[%s6694_s4 + $0x8] sm:$0xff]  ;;  %v6829_v31 = vld [vmem:[#allocation14_spill] sm:$0xff] }
 0x35d   :  { %v1718_v5 = vmul.f32 %v1715_v56, %v103_v39  ;;  %v4976_v39 = vld [vmem:[%s6692_s2 + $0x38] sm:$0xff]  ;;  %v6830_v56 = vld [vmem:[#allocation20_spill] sm:$0xff] }
 0x35f   :  { %1786 = vmatmul.mubr.f32.vlgmr.msra.gmra.mrb[54].mxu1 %v1718_v5 }
 0x360   :  { %1791 = vmatprep.mubr.f32.mxu1 %v6816_v37 }
 0x36b   :  { %v1691_v61 = vpop.f32.mrb[26].mxu0 }
 0x36c   :  { %v1701_v12 = vadd.f32 %v1691_v61, %v5967_v54  ;;  %v4093_v49 = vpop.f32.mrb[27].mxu0  ;;  %v6832_v61 = vld [vmem:[#allocation16_spill] sm:$0xff] }
 0x36d   :  { %v6833_v49 = vld [vmem:[#allocation21_spill] sm:$0xff] }
 0x36e   :  { %4733 = vtanh.f32 %v1701_v12  ;;  %v4977_v12 = vld [vmem:[%s6692_s2 + $0x40] sm:$0xff] }
 0x378   :  { %v4734_v0 = vpop.eup %4733 }
 0x379   :  { %v1713_v60 = vmul.f32 %v4734_v0, %v5771_v57  ;;  %v105_v57 = vld [vmem:[%s6694_s4 + $0x10] sm:$0xff]  ;;  %v6834_v0 = vld [vmem:[#allocation17_spill] sm:$0xff] }
 0x37b   :  { %v1716_v10 = vadd.f32 %v1713_v60, %v5788_v20  ;;  %v4978_v60 = vld [vmem:[%s6692_s2 + $0x48] sm:$0xff] }
 0x37d   :  { %v1719_v13 = vmul.f32 %v1716_v10, %v104_v46  ;;  %v6835_v46 = vld [vmem:[#allocation22_spill] sm:$0xff]  ;;  %v4979_v10 = vld [vmem:[%s6692_s2 + $0x50] sm:$0xff] }
 0x37f   :  { %1792 = vmatmul.mubr.f32.gmra.mrb[56].mxu1 %v1719_v13  ;;  %v4471_v6 = vpack.c.bf16 %v1719_v13, %v1718_v5  ;;  %v6831_v5 = vld [vmem:[#allocation15_spill] sm:$0xff]  ;;  %v4980_v13 = vld [vmem:[%s6692_s2 + $0x58] sm:$0xff] }
 0x380   :  { %1797 = vmatprep.mubr.f32.mxu1 %v6816_v37 }
 0x38a   :  { %v1696_v18 = vpop.f32.mrb[28].mxu0 }
 0x38b   :  { %v1702_v24 = vadd.f32 %v1696_v18, %v5643_v32  ;;  %v4096_v44 = vpop.f32.mrb[29].mxu0  ;;  %v4982_v18 = vld [vmem:[%s6692_s2 + $0x68] sm:$0xff] }
 0x38c   :  { %v4984_v44 = vld [vmem:[%s6692_s2 + $0x78] sm:$0xff] }
 0x38d   :  { %4735 = vtanh.f32 %v1702_v24  ;;  %v4983_v24 = vld [vmem:[%s6692_s2 + $0x70] sm:$0xff] }
 0x397   :  { %v4736_v15 = vpop.eup %4735 }
 0x398   :  { %v1714_v29 = vmul.f32 %v4736_v15, %v5785_v3  ;;  %v4985_v15 = vld [vmem:[%s6692_s2 + $0x80] sm:$0xff] }
 0x39a   :  { %v1717_v30 = vadd.f32 %v1714_v29, %v5803_v63  ;;  %v4965_v63 = vld [vmem:[%s6692_s2] sm:$0xff]  ;;  %v4986_v29 = vld [vmem:[%s6692_s2 + $0x88] sm:$0xff] }
 0x39c   :  { %v1720_v20 = vmul.f32 %v1717_v30, %v105_v57  ;;  %v4987_v57 = vld [vmem:[%s6692_s2 + $0x90] sm:$0xff]  ;;  %v4988_v30 = vld [vmem:[%s6692_s2 + $0x98] sm:$0xff] }
 0x39e   :  { %1798 = vmatmul.mubr.f32.gmra.mrb[58].mxu1 %v1720_v20 }
 0x39f   :  { %2006 = vmatprep.mubr.f32.mxu1 %v6816_v37 }
 0x432   :  { %v1787_v34 = vpop.f32.mrb[54].mxu1 }
 0x433   :  { %v1789_v45 = vpop.f32.mrb[55].mxu1 }
 0x452   :  { %v1793_v1 = vpop.f32.mrb[56].mxu1 }
 0x453   :  { %v4468_v26 = vpack.c.bf16 %v1793_v1, %v1787_v34  ;;  %v1795_v7 = vpop.f32.mrb[57].mxu1  ;;  %v4990_v34 = vld [vmem:[%s6692_s2 + $0xa8] sm:$0xff] }
 0x454   :  { %v4466_v14 = vpack.c.bf16 %v1795_v7, %v1789_v45  ;;  %v4991_v45 = vld [vmem:[%s6692_s2 + $0xb0] sm:$0xff] }
 0x456   :  { %4467 = vmatprep.subr.bf16.mxu0 %v4466_v14  ;;  %4608 = vmatprep.subr.bf16.mxu1 %v4466_v14 }
 0x457   :  { %4469 = vmatpush1.bf16.msra.mxu0 %v4468_v26  ;;  %4610 = vmatpush1.bf16.msra.mxu1 %v4468_v26 }
 0x471   :  { %v1799_v3 = vpop.f32.mrb[58].mxu1 }
 0x472   :  { %v1801_v51 = vpop.f32.mrb[59].mxu1 }
 0x473   :  { %1808 = vmatprep.subr.mxu0 %v1801_v51  ;;  %4609 = vmatprep.subr.mxu1 %v1801_v51 }
 0x474   :  { %1809 = vmatpush1.msra.mxu0 %v1799_v3  ;;  %4611 = vmatpush1.msra.mxu1 %v1799_v3  ;;  %v6836_v3 = vld [vmem:[#allocation33_spill] sm:$0xff] }
 0x475   :  { %3700 = vmatmul.mubr.msk.f32.vlgmr.msra.gmra.mrb[30].mxu0 %vm757_vm1, %v4965_v63  ;;  %3723 = vmatmul.mubr.msk.f32.vlgmr.msra.gmra.mrb[60].mxu1 %vm757_vm1, %v4966_v42 }
 0x476   :  { %4470 = vmatprep.subr.bf16.mxu1 %v6821_v40  ;;  %1874 = vmatprep.mubr.f32.mxu0 %v6816_v37 }
 0x477   :  { %4472 = vmatpush3.bf16.msra.mxu1 %v4471_v6  ;;  %4103 = vmatprep.mubr.msk.f32.mxu1 %vm5104_vm0, %v6816_v37  ;;  %v4981_v6 = vld [vmem:[%s6692_s2 + $0x60] sm:$0xff] }
 0x478   :  { %4101 = vmatprep.subr.mxu1 %v6816_v37  ;;  %4522 = vmatprep.subr.bf16.mxu0 %v5213_v52  ;;  %v4969_v52 = vld [vmem:[%s6692_s2 + $0x10] sm:$0xff] }
 0x479   :  { %3701 = vmatmul.mubr.msk.f32.gmra.mrb[32].mxu0 %vm757_vm1, %v4967_v17 }
 0x47a   :  { %1880 = vmatprep.mubr.f32.mxu0 %v6816_v37  ;;  %4524 = vmatpush1.bf16.msra.mxu0 %v5232_v58  ;;  %v4970_v58 = vld [vmem:[%s6693_s3 + $0x8] sm:$0xff] }
 0x47b   :  { %4102 = vmatpush3.msra.mxu1 %v1720_v20  ;;  %4526 = vmatprep.subr.bf16.mxu0 %v5235_v59  ;;  %v4971_v59 = vld [vmem:[%s6692_s2 + $0x18] sm:$0xff]  ;;  %v4989_v20 = vld [vmem:[%s6692_s2 + $0xa0] sm:$0xff] }
 0x47c   :  { %4104 = vmatmul.mubr.msk.f32.vlgmr.msra.gmra.mrb[62].mxu1 %vm757_vm1, %v4968_v33  ;;  %4473 = vmatprep.subr.bf16.mxu1 %v6821_v40 }
 0x47d   :  { %3702 = vmatmul.mubr.msk.f32.gmra.mrb[34].mxu0 %vm757_vm1, %v4969_v52  ;;  %4106 = vmatprep.mubr.msk.f32.mxu1 %vm5104_vm0, %v6816_v37 }
 0x47e   :  { %1886 = vmatprep.mubr.f32.mxu0 %v6816_v37  ;;  %4475 = vmatpush3.bf16.msra.mxu1 %v5408_v62 }
 0x47f   :  { %4476 = vmatprep.subr.bf16.mxu1 %v6821_v40  ;;  %4528 = vmatpush1.bf16.msra.mxu0 %v5251_v2  ;;  %v4972_v2 = vld [vmem:[%s6693_s3 + $0x10] sm:$0xff] }
 0x480   :  { %4107 = vmatmul.mubr.msk.f32.gmra.mrb[64].mxu1 %vm757_vm1, %v4970_v58  ;;  %4530 = vmatprep.subr.bf16.mxu0 %v5260_v4  ;;  %v4973_v4 = vld [vmem:[%s6692_s2 + $0x20] sm:$0xff]  ;;  %v6837_v58 = vld [vmem:[#allocation35_spill] sm:$0xff] }
 0x481   :  { %3703 = vmatmul.mubr.msk.f32.gmra.mrb[36].mxu0 %vm757_vm1, %v4971_v59  ;;  %4109 = vmatprep.mubr.msk.f32.mxu1 %vm5104_vm0, %v6816_v37 }
 0x482   :  { %1892 = vmatprep.mubr.f32.mxu0 %v6816_v37  ;;  %4478 = vmatpush3.bf16.msra.mxu1 %v5412_v8 }
 0x483   :  { %4479 = vmatprep.subr.bf16.mxu1 %v6821_v40  ;;  %4532 = vmatpush1.bf16.msra.mxu0 %v5276_v9  ;;  %v6822_v9 = vld [vmem:[#allocation9_spill] sm:$0xff] }
 0x484   :  { %4110 = vmatmul.mubr.msk.f32.gmra.mrb[66].mxu1 %vm757_vm1, %v4972_v2  ;;  %4534 = vmatprep.subr.bf16.mxu0 %v5285_v11  ;;  %v4974_v11 = vld [vmem:[%s6692_s2 + $0x28] sm:$0xff] }
 0x485   :  { %3704 = vmatmul.mubr.msk.f32.gmra.mrb[38].mxu0 %vm757_vm1, %v4973_v4  ;;  %4144 = vmatprep.mubr.msk.f32.mxu1 %vm5104_vm0, %v6816_v37 }
 0x486   :  { %1898 = vmatprep.mubr.f32.mxu0 %v6816_v37  ;;  %4481 = vmatpush3.bf16.msra.mxu1 %v5417_v19 }
 0x487   :  { %4482 = vmatprep.subr.bf16.mxu1 %v6821_v40  ;;  %4536 = vmatpush1.bf16.msra.mxu0 %v6822_v9 }
 0x488   :  { %4538 = vmatprep.subr.bf16.mxu0 %v6823_v53 }
 0x489   :  { %3705 = vmatmul.mubr.msk.f32.gmra.mrb[40].mxu0 %vm757_vm1, %v4974_v11 }
 0x48a   :  { %1904 = vmatprep.mubr.f32.mxu0 %v6816_v37  ;;  %4484 = vmatpush3.bf16.msra.mxu1 %v6824_v38 }
 0x48b   :  { %4485 = vmatprep.subr.bf16.mxu1 %v6821_v40  ;;  %4540 = vmatpush1.bf16.msra.mxu0 %v6825_v27  ;;  %v6838_v27 = vld [vmem:[#allocation24_spill] sm:$0xff] }
 0x48c   :  { %4542 = vmatprep.subr.bf16.mxu0 %v6826_v23  ;;  %v6839_v23 = vld [vmem:[#allocation36_spill] sm:$0xff] }
 0x48d   :  { %3706 = vmatmul.mubr.msk.f32.gmra.mrb[42].mxu0 %vm757_vm1, %v4975_v22 }
 0x48e   :  { %1910 = vmatprep.mubr.f32.mxu0 %v6816_v37  ;;  %4487 = vmatpush3.bf16.msra.mxu1 %v6827_v16 }
 0x48f   :  { %4488 = vmatprep.subr.bf16.mxu1 %v6821_v40  ;;  %4544 = vmatpush1.bf16.msra.mxu0 %v6828_v21 }
 0x490   :  { %4546 = vmatprep.subr.bf16.mxu0 %v6829_v31 }
 0x491   :  { %3707 = vmatmul.mubr.msk.f32.gmra.mrb[44].mxu0 %vm757_vm1, %v4976_v39 }
 0x492   :  { %1916 = vmatprep.mubr.f32.mxu0 %v6816_v37  ;;  %4490 = vmatpush3.bf16.msra.mxu1 %v6830_v56 }
 0x493   :  { %4491 = vmatprep.subr.bf16.mxu1 %v6821_v40  ;;  %4548 = vmatpush1.bf16.msra.mxu0 %v6831_v5 }
 0x494   :  { %4550 = vmatprep.subr.bf16.mxu0 %v6832_v61 }
 0x495   :  { %3708 = vmatmul.mubr.msk.f32.gmra.mrb[46].mxu0 %vm757_vm1, %v4977_v12  ;;  %v6840_v12 = vld [vmem:[#allocation25_spill] sm:$0xff] }
 0x496   :  { %1922 = vmatprep.mubr.f32.mxu0 %v6816_v37  ;;  %4493 = vmatpush3.bf16.msra.mxu1 %v6833_v49 }
 0x497   :  { %4494 = vmatprep.subr.bf16.mxu1 %v6821_v40  ;;  %4552 = vmatpush1.bf16.msra.mxu0 %v6834_v0  ;;  %v6841_v0 = vld [vmem:[#allocation37_spill] sm:$0xff] }
 0x498   :  { %4557 = vmatprep.subr.bf16.mxu0 %v6821_v40 }
 0x499   :  { %3709 = vmatmul.mubr.msk.f32.gmra.mrb[48].mxu0 %vm757_vm1, %v4978_v60 }
 0x49a   :  { %1928 = vmatprep.mubr.f32.mxu0 %v6816_v37  ;;  %4496 = vmatpush3.bf16.msra.mxu1 %v6835_v46 }
 0x49b   :  { %4497 = vmatprep.subr.bf16.mxu1 %v6821_v40 }
 0x49d   :  { %3710 = vmatmul.mubr.msk.f32.gmra.mrb[50].mxu0 %vm757_vm1, %v4979_v10 }
 0x49e   :  { %1934 = vmatprep.mubr.f32.mxu0 %v6816_v37 }
 0x4a1   :  { %3711 = vmatmul.mubr.msk.f32.gmra.mrb[52].mxu0 %vm757_vm1, %v4980_v13 }
 0x4a2   :  { %1940 = vmatprep.mubr.f32.mxu0 %v6816_v37 }
 0x4a5   :  { %3712 = vmatmul.mubr.msk.f32.gmra.mrb[54].mxu0 %vm757_vm1, %v4981_v6 }
 0x4a6   :  { %1946 = vmatprep.mubr.f32.mxu0 %v6816_v37 }
 0x4a9   :  { %3713 = vmatmul.mubr.msk.f32.gmra.mrb[56].mxu0 %vm757_vm1, %v4982_v18 }
 0x4aa   :  { %1952 = vmatprep.mubr.f32.mxu0 %v6816_v37 }
 0x4ad   :  { %3714 = vmatmul.mubr.msk.f32.gmra.mrb[58].mxu0 %vm757_vm1, %v4983_v24 }
 0x4ae   :  { %1958 = vmatprep.mubr.f32.mxu0 %v6816_v37 }
 0x4b1   :  { %3715 = vmatmul.mubr.msk.f32.gmra.mrb[60].mxu0 %vm757_vm1, %v4984_v44 }
 0x4b2   :  { %1964 = vmatprep.mubr.f32.mxu0 %v6816_v37 }
 0x4b5   :  { %3716 = vmatmul.mubr.msk.f32.gmra.mrb[62].mxu0 %vm757_vm1, %v4985_v15 }
 0x4b6   :  { %1970 = vmatprep.mubr.f32.mxu0 %v6816_v37 }
 0x4b9   :  { %3717 = vmatmul.mubr.msk.f32.gmra.mrb[64].mxu0 %vm757_vm1, %v4986_v29 }
 0x4ba   :  { %1976 = vmatprep.mubr.f32.mxu0 %v6816_v37 }
 0x4bd   :  { %3718 = vmatmul.mubr.msk.f32.gmra.mrb[66].mxu0 %vm757_vm1, %v4987_v57  ;;  %v6842_v57 = vld [vmem:[#allocation26_spill] sm:$0xff] }
 0x4be   :  { %1982 = vmatprep.mubr.f32.mxu0 %v6816_v37 }
 0x4c1   :  { %3719 = vmatmul.mubr.msk.f32.gmra.mrb[68].mxu0 %vm757_vm1, %v4988_v30 }
 0x4c2   :  { %1988 = vmatprep.mubr.f32.mxu0 %v6816_v37 }
 0x4c5   :  { %3720 = vmatmul.mubr.msk.f32.gmra.mrb[70].mxu0 %vm757_vm1, %v4989_v20  ;;  %v6843_v20 = vld [vmem:[#allocation38_spill] sm:$0xff] }
 0x4c6   :  { %1994 = vmatprep.mubr.f32.mxu0 %v6816_v37 }
 0x4c9   :  { %3721 = vmatmul.mubr.msk.f32.gmra.mrb[72].mxu0 %vm757_vm1, %v4990_v34 }
 0x4ca   :  { %2000 = vmatprep.mubr.f32.mxu0 %v6816_v37 }
 0x4cd   :  { %3722 = vmatmul.mubr.msk.f32.gmra.mrb[74].mxu0 %vm757_vm1, %v4991_v45 }
 0x4ce   :  { %2743 = vmatprep.mubr.f32.mxu0 %v6816_v37 }
 0x548   :  { %v6158_v1 = vpop.f32.mrb[30].mxu0  ;;  %v6160_v26 = vpop.f32.mrb[60].mxu1 }
 0x549   :  { %v1872_v7 = vpop.f32.mrb[31].mxu0  ;;  %v2010_v14 = vpop.f32.mrb[61].mxu1 }
 0x54a   :  { %v2194_v51 = vadd.f32 %v1872_v7, %v6836_v3  ;;  %v2217_v63 = vadd.f32 %v2010_v14, %v5929_v36 }
 0x54c   :  { %v3730_v42 = vmul.f32 -1.442695, %v2194_v51  ;;  %v3753_v17 = vmul.f32 -1.442695, %v2217_v63  ;;  %v6164_v33 = vpop.f32.mrb[32].mxu0 }
 0x54d   :  { %v1878_v52 = vpop.f32.mrb[33].mxu0 }
 0x54e   :  { %4737 = vpow2.f32 %v3730_v42  ;;  %v2195_v59 = vadd.f32 %v1878_v52, %v6837_v58  ;;  %v6844_v42 = vld [vmem:[#allocation27_spill] sm:$0xff] }
 0x54f   :  { %4739 = vpow2.f32 %v3753_v17  ;;  %v6167_v2 = vpop.f32.mrb[62].mxu1  ;;  %v6845_v17 = vld [vmem:[#allocation39_spill] sm:$0xff] }
 0x550   :  { %v3731_v4 = vmul.f32 -1.442695, %v2195_v59  ;;  %4145 = vmatmul.mubr.f32.vlgmr.msra.gmra.mrb[68].mxu1 %v6167_v2  ;;  %v6170_v9 = vpop.f32.mrb[34].mxu0  ;;  %v4105_v53 = vpop.f32.mrb[63].mxu1 }
 0x551   :  { %v1884_v11 = vpop.f32.mrb[35].mxu0  ;;  %4147 = vmatprep.mubr.msk.f32.mxu1 %vm5104_vm0, %v6816_v37  ;;  %4499 = vmatpush3.bf16.msra.mxu1 %v6838_v27 }
 0x552   :  { %4741 = vpow2.f32 %v3731_v4  ;;  %v2196_v22 = vadd.f32 %v1884_v11, %v6839_v23  ;;  %4500 = vmatprep.subr.bf16.mxu1 %v6821_v40 }
 0x553   :  { %v6177_v21 = vpop.f32.mrb[64].mxu1 }
 0x554   :  { %v3732_v31 = vmul.f32 -1.442695, %v2196_v22  ;;  %4148 = vmatmul.mubr.f32.gmra.mrb[70].mxu1 %v6177_v21  ;;  %v6180_v39 = vpop.f32.mrb[36].mxu0  ;;  %v4108_v5 = vpop.f32.mrb[65].mxu1 }
 0x555   :  { %v1890_v61 = vpop.f32.mrb[37].mxu0  ;;  %4150 = vmatprep.mubr.msk.f32.mxu1 %vm5104_vm0, %v6816_v37  ;;  %4502 = vmatpush3.bf16.msra.mxu1 %v6840_v12  ;;  %v6847_v5 = vld [vmem:[#allocation40_spill] sm:$0xff] }
 0x556   :  { %4743 = vpow2.f32 %v3732_v31  ;;  %v2197_v60 = vadd.f32 %v1890_v61, %v6841_v0  ;;  %4503 = vmatprep.subr.bf16.mxu1 %v6821_v40  ;;  %v6846_v31 = vld [vmem:[#allocation28_spill] sm:$0xff] }
 0x557   :  { %v6187_v10 = vpop.f32.mrb[66].mxu1 }
 0x558   :  { %v4738_v13 = vpop.eup %4737  ;;  %v3733_v6 = vmul.f32 -1.442695, %v2197_v60  ;;  %4151 = vmatmul.mubr.f32.gmra.mrb[72].mxu1 %v6187_v10  ;;  %v6190_v18 = vpop.f32.mrb[38].mxu0 }
 0x559   :  { %v4111_v24 = vpop.f32.mrb[67].mxu1  ;;  %v4740_v44 = vpop.eup %4739  ;;  %v2290_v15 = vadd.f32 1.0, %v4738_v13  ;;  %4505 = vmatpush3.bf16.msra.mxu1 %v6842_v57  ;;  %4185 = vmatprep.mubr.msk.f32.mxu1 %vm5104_vm0, %v6816_v37 }
 0x55a   :  { %v1896_v29 = vpop.f32.mrb[39].mxu0  ;;  %v2313_v30 = vadd.f32 1.0, %v4740_v44  ;;  %4745 = vpow2.f32 %v3733_v6  ;;  %4506 = vmatprep.subr.bf16.mxu1 %v6821_v40 }
 0x55b   :  { %v2198_v34 = vadd.f32 %v1896_v29, %v6843_v20  ;;  %4747 = vrcp.f32 %v2290_v15  ;;  %v6848_v29 = vld [vmem:[#allocation29_spill] sm:$0xff] }
 0x55c   :  { %v4742_v45 = vpop.eup %4741  ;;  %4749 = vrcp.f32 %v2313_v30  ;;  %v6197_v14 = vpop.f32.mrb[40].mxu0 }
 0x55d   :  { %v3734_v7 = vmul.f32 -1.442695, %v2198_v34  ;;  %v2291_v51 = vadd.f32 1.0, %v4742_v45  ;;  %v1902_v63 = vpop.f32.mrb[41].mxu0  ;;  %4508 = vmatpush3.bf16.msra.mxu1 %v6844_v42  ;;  %v6849_v45 = vld [vmem:[#allocation41_spill] sm:$0xff] }
 0x55e   :  { %v2199_v52 = vadd.f32 %v1902_v63, %v6845_v17  ;;  %4509 = vmatprep.subr.bf16.mxu1 %v6821_v40  ;;  %v6852_v17 = vld [vmem:[#allocation31_spill] sm:$0xff] }
 0x55f   :  { %4751 = vpow2.f32 %v3734_v7 }
 0x560   :  { %4753 = vrcp.f32 %v2291_v51  ;;  %v4744_v59 = vpop.eup %4743  ;;  %v3735_v4 = vmul.f32 -1.442695, %v2199_v52  ;;  %v6202_v53 = vpop.f32.mrb[42].mxu0 }
 0x561   :  { %v2292_v11 = vadd.f32 1.0, %v4744_v59  ;;  %v1908_v22 = vpop.f32.mrb[43].mxu0  ;;  %4511 = vmatpush3.bf16.msra.mxu1 %v6846_v31 }
 0x562   :  { %4755 = vpow2.f32 %v3735_v4  ;;  %v2200_v61 = vadd.f32 %v1908_v22, %v6847_v5  ;;  %4512 = vmatprep.subr.bf16.mxu1 %v6821_v40 }
 0x563   :  { %4757 = vrcp.f32 %v2292_v11 }
 0x564   :  { %v4746_v60 = vpop.eup %4745  ;;  %v3736_v13 = vmul.f32 -1.442695, %v2200_v61  ;;  %v6207_v6 = vpop.f32.mrb[44].mxu0 }
 0x565   :  { %v4748_v24 = vpop.eup %4747  ;;  %v2293_v44 = vadd.f32 1.0, %v4746_v60  ;;  %v1914_v15 = vpop.f32.mrb[45].mxu0  ;;  %4514 = vmatpush3.bf16.msra.mxu1 %v6848_v29  ;;  %v6850_v60 = vld [vmem:[#allocation30_spill] sm:$0xff] }
 0x566   :  { %v4750_v30 = vpop.eup %4749  ;;  %v2362_v34 = vmul.f32 %v4748_v24, %v6158_v1  ;;  %4759 = vpow2.f32 %v3736_v13  ;;  %v2201_v7 = vadd.f32 %v1914_v15, %v6849_v45  ;;  %4515 = vmatprep.subr.bf16.mxu1 %v6821_v40  ;;  %v6851_v24 = vld [vmem:[#allocation42_spill] sm:$0xff] }
 0x567   :  { %4761 = vrcp.f32 %v2293_v44  ;;  %v6214_v51 = vmul.f32 %v4750_v30, %v6160_v26 }
 0x568   :  { %v2386_v52 = vrot.slane %v2362_v34, 4  ;;  %v3737_v59 = vmul.f32 -1.442695, %v2201_v7  ;;  %v6216_v4 = vpop.f32.mrb[46].mxu0 }
 0x569   :  { %v4752_v63 = vpop.eup %4751  ;;  %v1920_v61 = vpop.f32.mrb[47].mxu0  ;;  %4517 = vmatpush3.bf16.msra.mxu1 %v6850_v60 }
 0x56a   :  { %v4754_v11 = vpop.eup %4753  ;;  %v2294_v22 = vadd.f32 1.0, %v4752_v63  ;;  %v2387_v1 = vadd.f32 %v2386_v52, %v2362_v34  ;;  %4763 = vpow2.f32 %v3737_v59  ;;  %v2202_v15 = vadd.f32 %v1920_v61, %v6851_v24  ;;  %4518 = vmatprep.subr.bf16.mxu1 %v6821_v40  ;;  %v6853_v59 = vld [vmem:[#allocation43_spill] sm:$0xff] }
 0x56b   :  { %v2363_v13 = vmul.f32 %v4754_v11, %v6164_v33 }
 0x56c   :  { %4765 = vrcp.f32 %v2294_v22  ;;  %v4756_v26 = vpop.eup %4755  ;;  %v2388_v44 = vrot.slane %v2387_v1, 2  ;;  %v3738_v7 = vmul.f32 -1.442695, %v2202_v15  ;;  %v6222_v36 = vpop.f32.mrb[48].mxu0 }
 0x56d   :  { %v2392_v30 = vrot.slane %v2363_v13, 4  ;;  %v4758_v45 = vpop.eup %4757  ;;  %v2295_v63 = vadd.f32 1.0, %v4756_v26  ;;  %v1926_v5 = vpop.f32.mrb[49].mxu0  ;;  %4520 = vmatpush3.bf16.msra.mxu1 %v6852_v17 }
 0x56e   :  { %v2364_v33 = vmul.f32 %v4758_v45, %v6170_v9  ;;  %4767 = vpow2.f32 %v3738_v7  ;;  %v2389_v52 = vadd.f32 %v2388_v44, %v2387_v1  ;;  %v2203_v11 = vadd.f32 %v1926_v5, %v6853_v59  ;;  %v6854_v9 = vld [vmem:[#allocation44_spill] sm:$0xff] }
 0x56f   :  { %v2393_v34 = vadd.f32 %v2392_v30, %v2363_v13  ;;  %4769 = vrcp.f32 %v2295_v63 }
 0x570   :  { %v4760_v22 = vpop.eup %4759  ;;  %v2398_v24 = vrot.slane %v2364_v33, 4  ;;  %v6227_v20 = vpop.f32.mrb[50].mxu0  ;;  %v3739_v23 = vmul.f32 -1.442695, %v2203_v11  ;;  %v2390_v30 = vrot.slane %v2389_v52, 1 }
 0x571   :  { %v2394_v61 = vrot.slane %v2393_v34, 2  ;;  %v4762_v15 = vpop.eup %4761  ;;  %v2296_v0 = vadd.f32 1.0, %v4760_v22  ;;  %v1932_v26 = vpop.f32.mrb[51].mxu0 }
 0x572   :  { %v2399_v3 = vadd.f32 %v2398_v24, %v2364_v33  ;;  %v2365_v13 = vmul.f32 %v4762_v15, %v6180_v39  ;;  %v2204_v45 = vadd.f32 %v1932_v26, %v6854_v9  ;;  %v2391_v33 = vadd.f32 %v2390_v30, %v2389_v52 }
 0x573   :  { %v2395_v58 = vadd.f32 %v2394_v61, %v2393_v34  ;;  %4771 = vrcp.f32 %v2296_v0 }
 0x574   :  { %v4764_v1 = vpop.eup %4763  ;;  %v2400_v5 = vrot.slane %v2399_v3, 2  ;;  %v2404_v7 = vrot.slane %v2365_v13, 4  ;;  %4773 = vpow2.f32 %v3739_v23  ;;  %v6231_v63 = vpop.f32.mrb[52].mxu0  ;;  %v3740_v22 = vmul.f32 -1.442695, %v2204_v45 }
 0x575   :  { %v2396_v44 = vrot.slane %v2395_v58, 1  ;;  %v2297_v17 = vadd.f32 1.0, %v4764_v1  ;;  %v1938_v11 = vpop.f32.mrb[53].mxu0 }
 0x576   :  { %v4766_v59 = vpop.eup %4765  ;;  %v2401_v34 = vadd.f32 %v2400_v5, %v2399_v3  ;;  %v2405_v24 = vadd.f32 %v2404_v7, %v2365_v13  ;;  %v2205_v0 = vadd.f32 %v1938_v11, %v5821_v28 }
 0x577   :  { %v2397_v60 = vadd.f32 %v2396_v44, %v2395_v58  ;;  %v2366_v39 = vmul.f32 %v4766_v59, %v6190_v18  ;;  %4775 = vrcp.f32 %v2297_v17 }
 0x578   :  { %v4768_v61 = vpop.eup %4767  ;;  %v2402_v15 = vrot.slane %v2401_v34, 1  ;;  %v2406_v26 = vrot.slane %v2405_v24, 2  ;;  %4777 = vpow2.f32 %v3740_v22  ;;  %v6235_v23 = vpop.f32.mrb[54].mxu0  ;;  %v3741_v45 = vmul.f32 -1.442695, %v2205_v0 }
 0x579   :  { %v2410_v9 = vrot.slane %v2366_v39, 4  ;;  %v4770_v29 = vpop.eup %4769  ;;  %v2298_v1 = vadd.f32 1.0, %v4768_v61  ;;  %v1944_v31 = vpop.f32.mrb[55].mxu0  ;;  %v2554_v3 = vsel %vm1589_vm2, %v2397_v60, %v2391_v33 }
 0x57a   :  { %v2407_v58 = vadd.f32 %v2406_v26, %v2405_v24  ;;  %v2367_v18 = vmul.f32 %v4770_v29, %v6197_v14  ;;  %v2206_v17 = vadd.f32 %v1944_v31, %v5816_v50  ;;  %v2403_v52 = vadd.f32 %v2402_v15, %v2401_v34 }
 0x57b   :  { %v2411_v13 = vadd.f32 %v2410_v9, %v2366_v39  ;;  %4779 = vrcp.f32 %v2298_v1 }
 0x57c   :  { %v2416_v30 = vrot.slane %v2367_v18, 4  ;;  %4781 = vpow2.f32 %v3741_v45  ;;  %v3742_v44 = vmul.f32 -1.442695, %v2206_v17  ;;  %v6240_v5 = vpop.f32.mrb[56].mxu0  ;;  %v2408_v11 = vrot.slane %v2407_v58, 1 }
 0x57d   :  { %v2412_v59 = vrot.slane %v2411_v13, 2  ;;  %v4772_v7 = vpop.eup %4771  ;;  %v1950_v22 = vpop.f32.mrb[57].mxu0  ;;  %v2555_v0 = vsel %vm1591_vm3, %v2403_v52, %v2554_v3 }
 0x57e   :  { %v4774_v60 = vpop.eup %4773  ;;  %v2417_v24 = vadd.f32 %v2416_v30, %v2367_v18  ;;  %v2368_v9 = vmul.f32 %v4772_v7, %v6202_v53  ;;  %4783 = vpow2.f32 %v3742_v44  ;;  %v2207_v14 = vadd.f32 %v1950_v22, %v5832_v35 }
 0x57f   :  { %v2299_v31 = vadd.f32 1.0, %v4774_v60  ;;  %v2409_v29 = vadd.f32 %v2408_v11, %v2407_v58  ;;  %v2413_v34 = vadd.f32 %v2412_v59, %v2411_v13 }
 0x580   :  { %v2422_v39 = vrot.slane %v2368_v9, 4  ;;  %v3743_v33 = vmul.f32 -1.442695, %v2207_v14  ;;  %v6245_v61 = vpop.f32.mrb[58].mxu0  ;;  %v2418_v15 = vrot.slane %v2417_v24, 2 }
 0x581   :  { %v4776_v26 = vpop.eup %4775  ;;  %4785 = vrcp.f32 %v2299_v31  ;;  %v1956_v1 = vpop.f32.mrb[59].mxu0  ;;  %v2414_v45 = vrot.slane %v2413_v34, 1  ;;  %v2556_v3 = vsel %vm1593_vm4, %v2409_v29, %v2555_v0 }
 0x582   :  { %v4778_v18 = vpop.eup %4777  ;;  %v2369_v53 = vmul.f32 %v4776_v26, %v6207_v6  ;;  %4787 = vpow2.f32 %v3743_v33  ;;  %v2208_v17 = vadd.f32 %v1956_v1, %v5842_v43  ;;  %v2419_v52 = vadd.f32 %v2418_v15, %v2417_v24 }
 0x583   :  { %v2300_v58 = vadd.f32 1.0, %v4778_v18  ;;  %v2415_v13 = vadd.f32 %v2414_v45, %v2413_v34  ;;  %v2423_v59 = vadd.f32 %v2422_v39, %v2368_v9 }
 0x584   :  { %v3744_v30 = vmul.f32 -1.442695, %v2208_v17  ;;  %v6250_v44 = vpop.f32.mrb[60].mxu0  ;;  %v2420_v7 = vrot.slane %v2419_v52, 1  ;;  %v2428_v22 = vrot.slane %v2369_v53, 4 }
 0x585   :  { %v4780_v11 = vpop.eup %4779  ;;  %4789 = vrcp.f32 %v2300_v58  ;;  %v1962_v60 = vpop.f32.mrb[61].mxu0  ;;  %v2424_v14 = vrot.slane %v2423_v59, 2  ;;  %v2557_v0 = vsel %vm1595_vm5, %v2415_v13, %v2556_v3 }
 0x586   :  { %v4782_v31 = vpop.eup %4781  ;;  %v2370_v6 = vmul.f32 %v4780_v11, %v6216_v4  ;;  %4791 = vpow2.f32 %v3744_v30  ;;  %v2209_v24 = vadd.f32 %v1962_v60, %v5852_v55  ;;  %v2421_v29 = vadd.f32 %v2420_v7, %v2419_v52 }
 0x587   :  { %v2301_v34 = vadd.f32 1.0, %v4782_v31  ;;  %v2425_v9 = vadd.f32 %v2424_v14, %v2423_v59  ;;  %v2429_v39 = vadd.f32 %v2428_v22, %v2369_v53 }
 0x588   :  { %v4784_v33 = vpop.eup %4783  ;;  %v2434_v15 = vrot.slane %v2370_v6, 4  ;;  %v3745_v26 = vmul.f32 -1.442695, %v2209_v24  ;;  %v6255_v1 = vpop.f32.mrb[62].mxu0  ;;  %v2558_v45 = vsel %vm1597_vm6, %v2421_v29, %v2557_v0  ;;  %v6855_v29 = vld [vmem:[#allocation45_spill] sm:$0xff] }
 0x589   :  { %4793 = vrcp.f32 %v2301_v34  ;;  %v2302_v18 = vadd.f32 1.0, %v4784_v33  ;;  %v1968_v3 = vpop.f32.mrb[63].mxu0  ;;  %v2426_v17 = vrot.slane %v2425_v9, 1  ;;  %v2430_v58 = vrot.slane %v2429_v39, 2 }
 0x58a   :  { %v2435_v4 = vadd.f32 %v2434_v15, %v2370_v6  ;;  %4795 = vpow2.f32 %v3745_v26  ;;  %v2210_v13 = vadd.f32 %v1968_v3, %v5861_v41 }
 0x58b   :  { %v4786_v52 = vpop.eup %4785  ;;  %4797 = vrcp.f32 %v2302_v18  ;;  %v2427_v59 = vadd.f32 %v2426_v17, %v2425_v9  ;;  %v2431_v53 = vadd.f32 %v2430_v58, %v2429_v39 }
 0x58c   :  { %v4788_v30 = vpop.eup %4787  ;;  %v2371_v7 = vmul.f32 %v4786_v52, %v6222_v36  ;;  %v3746_v22 = vmul.f32 -1.442695, %v2210_v13  ;;  %v6260_v11 = vpop.f32.mrb[64].mxu0  ;;  %v2436_v60 = vrot.slane %v2435_v4, 2 }
 0x58d   :  { %v2303_v14 = vadd.f32 1.0, %v4788_v30  ;;  %v1974_v0 = vpop.f32.mrb[65].mxu0  ;;  %v2432_v31 = vrot.slane %v2431_v53, 1  ;;  %v2559_v24 = vsel %vm1599_vm7, %v2427_v59, %v2558_v45  ;;  %v6856_v59 = vld [vmem:[#allocation46_spill] sm:$0xff] }
 0x58e   :  { %v2440_v6 = vrot.slane %v2371_v7, 4  ;;  %4799 = vpow2.f32 %v3746_v22  ;;  %v2211_v34 = vadd.f32 %v1974_v0, %v6855_v29  ;;  %v2437_v3 = vadd.f32 %v2436_v60, %v2435_v4 }
 0x58f   :  { %v4790_v33 = vpop.eup %4789  ;;  %4801 = vrcp.f32 %v2303_v14  ;;  %v2433_v9 = vadd.f32 %v2432_v31, %v2431_v53 }
 0x590   :  { %v4792_v39 = vpop.eup %4791  ;;  %v2441_v15 = vadd.f32 %v2440_v6, %v2371_v7  ;;  %v2372_v36 = vmul.f32 %v4790_v33, %v6227_v20  ;;  %v3747_v26 = vmul.f32 -1.442695, %v2211_v34  ;;  %v6265_v18 = vpop.f32.mrb[66].mxu0  ;;  %v2438_v6 = vrot.slane %v2437_v3, 1 }
 0x591   :  { %v2304_v17 = vadd.f32 1.0, %v4792_v39  ;;  %v1980_v58 = vpop.f32.mrb[67].mxu0  ;;  %v2560_v13 = vsel %vm1601_vm8, %v2433_v9, %v2559_v24  ;;  %v6857_v39 = vld [vmem:[#allocation47_spill] sm:$0xff] }
 0x592   :  { %v2442_v45 = vrot.slane %v2441_v15, 2  ;;  %v2446_v52 = vrot.slane %v2372_v36, 4  ;;  %4803 = vpow2.f32 %v3747_v26  ;;  %v2212_v30 = vadd.f32 %v1980_v58, %v6856_v59  ;;  %4186 = vmatmul.mubr.f32.vlgmr.msra.gmra.mrb[74].mxu1 %v2560_v13 }
 0x593   :  { %v4794_v22 = vpop.eup %4793  ;;  %4805 = vrcp.f32 %v2304_v17  ;;  %4188 = vmatprep.mubr.msk.f32.mxu1 %vm5104_vm0, %v6816_v37 }
 0x594   :  { %v4796_v20 = vpop.eup %4795  ;;  %v2443_v53 = vadd.f32 %v2442_v45, %v2441_v15  ;;  %v2447_v7 = vadd.f32 %v2446_v52, %v2372_v36  ;;  %v2373_v4 = vmul.f32 %v4794_v22, %v6231_v63  ;;  %v3748_v60 = vmul.f32 -1.442695, %v2212_v30  ;;  %v6272_v14 = vpop.f32.mrb[68].mxu0 }
 0x595   :  { %v4798_v0 = vpop.eup %4797  ;;  %v2305_v31 = vadd.f32 1.0, %v4796_v20  ;;  %v1986_v24 = vpop.f32.mrb[69].mxu0  ;;  %v2439_v20 = vadd.f32 %v2438_v6, %v2437_v3 }
 0x596   :  { %v2448_v34 = vrot.slane %v2447_v7, 2  ;;  %v2452_v33 = vrot.slane %v2373_v4, 4  ;;  %v2374_v9 = vmul.f32 %v4798_v0, %v6235_v23  ;;  %4807 = vpow2.f32 %v3748_v60 }
 0x597   :  { %4809 = vrcp.f32 %v2305_v31  ;;  %v2213_v26 = vadd.f32 %v1986_v24, %v6857_v39  ;;  %v2444_v17 = vrot.slane %v2443_v53, 1 }
 0x598   :  { %v4800_v15 = vpop.eup %4799  ;;  %v2453_v36 = vadd.f32 %v2452_v33, %v2373_v4  ;;  %v2458_v58 = vrot.slane %v2374_v9, 4  ;;  %v6276_v63 = vpop.f32.mrb[70].mxu0  ;;  %v2449_v13 = vadd.f32 %v2448_v34, %v2447_v7 }
 0x599   :  { %v4802_v45 = vpop.eup %4801  ;;  %v2306_v52 = vadd.f32 1.0, %v4800_v15  ;;  %v3749_v30 = vmul.f32 -1.442695, %v2213_v26  ;;  %v1992_v22 = vpop.f32.mrb[71].mxu0  ;;  %v2445_v59 = vadd.f32 %v2444_v17, %v2443_v53  ;;  %v6858_v17 = vld [vmem:[#allocation49_spill] sm:$0xff] }
 0x59a   :  { %v2375_v29 = vmul.f32 %v4802_v45, %v6240_v5  ;;  %v2214_v23 = vadd.f32 %v1992_v22, %v5898_v48  ;;  %v2450_v60 = vrot.slane %v2449_v13, 1  ;;  %v2454_v0 = vrot.slane %v2453_v36, 2 }
 0x59b   :  { %4811 = vrcp.f32 %v2306_v52  ;;  %v2459_v31 = vadd.f32 %v2458_v58, %v2374_v9  ;;  %v2561_v4 = vsel %vm1589_vm2, %v2445_v59, %v2439_v20 }
 0x59c   :  { %v4804_v24 = vpop.eup %4803  ;;  %4813 = vpow2.f32 %v3749_v30  ;;  %v3750_v33 = vmul.f32 -1.442695, %v2214_v23  ;;  %v6281_v7 = vpop.f32.mrb[72].mxu0  ;;  %v2451_v34 = vadd.f32 %v2450_v60, %v2449_v13  ;;  %v2455_v26 = vadd.f32 %v2454_v0, %v2453_v36 }
 0x59d   :  { %v4806_v15 = vpop.eup %4805  ;;  %v2307_v3 = vadd.f32 1.0, %v4804_v24  ;;  %v1998_v53 = vpop.f32.mrb[73].mxu0  ;;  %v2460_v6 = vrot.slane %v2459_v31, 2  ;;  %v2464_v5 = vrot.slane %v2375_v29, 4 }
 0x59e   :  { %4815 = vpow2.f32 %v3750_v33  ;;  %v2215_v45 = vadd.f32 %v1998_v53, %v6858_v17  ;;  %v2376_v52 = vmul.f32 %v4806_v15, %v6245_v61  ;;  %v2456_v9 = vrot.slane %v2455_v26, 1 }
 0x59f   :  { %4817 = vrcp.f32 %v2307_v3  ;;  %v2461_v59 = vadd.f32 %v2460_v6, %v2459_v31  ;;  %v2465_v58 = vadd.f32 %v2464_v5, %v2375_v29  ;;  %v2562_v30 = vsel %vm1591_vm3, %v2451_v34, %v2561_v4 }
 0x5a0   :  { %v4808_v22 = vpop.eup %4807  ;;  %v3751_v20 = vmul.f32 -1.442695, %v2215_v45  ;;  %v6286_v13 = vpop.f32.mrb[74].mxu0  ;;  %v2457_v36 = vadd.f32 %v2456_v9, %v2455_v26  ;;  %v2470_v23 = vrot.slane %v2376_v52, 4 }
 0x5a1   :  { %v4810_v60 = vpop.eup %4809  ;;  %v2308_v0 = vadd.f32 1.0, %v4808_v22  ;;  %v2004_v24 = vpop.f32.mrb[75].mxu0  ;;  %v2462_v33 = vrot.slane %v2461_v59, 1  ;;  %v2466_v48 = vrot.slane %v2465_v58, 2 }
 0x5a2   :  { %4819 = vpow2.f32 %v3751_v20  ;;  %v2216_v61 = vadd.f32 %v2004_v24, %v5914_v47  ;;  %v2377_v15 = vmul.f32 %v4810_v60, %v6250_v44  ;;  %v2471_v31 = vadd.f32 %v2470_v23, %v2376_v52 }
 0x5a3   :  { %4821 = vrcp.f32 %v2308_v0  ;;  %v2463_v29 = vadd.f32 %v2462_v33, %v2461_v59  ;;  %v2467_v4 = vadd.f32 %v2466_v48, %v2465_v58  ;;  %v2563_v34 = vsel %vm1593_vm4, %v2457_v36, %v2562_v30 }
 0x5a4   :  { %v3752_v3 = vmul.f32 -1.442695, %v2216_v61  ;;  %v2472_v53 = vrot.slane %v2471_v31, 2  ;;  %v2476_v26 = vrot.slane %v2377_v15, 4 }
 0x5a5   :  { %v4812_v6 = vpop.eup %4811  ;;  %v2468_v5 = vrot.slane %v2467_v4, 1  ;;  %v2564_v45 = vsel %vm1595_vm5, %v2463_v29, %v2563_v34 }
 0x5a6   :  { %v4814_v9 = vpop.eup %4813  ;;  %v2378_v22 = vmul.f32 %v4812_v6, %v6255_v1  ;;  %4823 = vpow2.f32 %v3752_v3  ;;  %v2473_v20 = vadd.f32 %v2472_v53, %v2471_v31  ;;  %v2477_v24 = vadd.f32 %v2476_v26, %v2377_v15 }
 0x5a7   :  { %v2309_v44 = vadd.f32 1.0, %v4814_v9  ;;  %v2469_v52 = vadd.f32 %v2468_v5, %v2467_v4 }
 0x5a8   :  { %v4816_v23 = vpop.eup %4815  ;;  %v2482_v59 = vrot.slane %v2378_v22, 4  ;;  %v2474_v48 = vrot.slane %v2473_v20, 1  ;;  %v2478_v58 = vrot.slane %v2477_v24, 2 }
 0x5a9   :  { %v4818_v30 = vpop.eup %4817  ;;  %4825 = vrcp.f32 %v2309_v44  ;;  %v2310_v36 = vadd.f32 1.0, %v4816_v23  ;;  %v2565_v60 = vsel %vm1597_vm6, %v2469_v52, %v2564_v45 }
 0x5aa   :  { %v2483_v0 = vadd.f32 %v2482_v59, %v2378_v22  ;;  %v2379_v33 = vmul.f32 %v4818_v30, %v6260_v11  ;;  %v2475_v61 = vadd.f32 %v2474_v48, %v2473_v20  ;;  %v2479_v29 = vadd.f32 %v2478_v58, %v2477_v24 }
 0x5ab   :  { %4827 = vrcp.f32 %v2310_v36 }
 0x5ac   :  { %v4820_v1 = vpop.eup %4819  ;;  %v2484_v31 = vrot.slane %v2483_v0, 2  ;;  %v2488_v15 = vrot.slane %v2379_v33, 4  ;;  %v2480_v34 = vrot.slane %v2479_v29, 1  ;;  %v2566_v4 = vsel %vm1599_vm7, %v2475_v61, %v2565_v60 }
 0x5ad   :  { %v4822_v3 = vpop.eup %4821  ;;  %v2311_v53 = vadd.f32 1.0, %v4820_v1 }
 0x5ae   :  { %v2485_v26 = vadd.f32 %v2484_v31, %v2483_v0  ;;  %v2489_v6 = vadd.f32 %v2488_v15, %v2379_v33  ;;  %v2380_v5 = vmul.f32 %v4822_v3, %v6265_v18  ;;  %v2481_v9 = vadd.f32 %v2480_v34, %v2479_v29 }
 0x5af   :  { %4829 = vrcp.f32 %v2311_v53  ;;  %v2524_v29 = vrot.slane %v6214_v51, 4 }
 0x5b0   :  { %v4824_v45 = vpop.eup %4823  ;;  %v2490_v22 = vrot.slane %v2489_v6, 2  ;;  %v2494_v11 = vrot.slane %v2380_v5, 4  ;;  %v2567_v20 = vsel %vm1601_vm8, %v2481_v9, %v2566_v4  ;;  %v2486_v44 = vrot.slane %v2485_v26, 1 }
 0x5b1   :  { %v2312_v24 = vadd.f32 1.0, %v4824_v45  ;;  %4189 = vmatmul.mubr.f32.gmra.mrb[76].mxu1 %v2567_v20 }
 0x5b2   :  { %v2491_v52 = vadd.f32 %v2490_v22, %v2489_v6  ;;  %v2495_v23 = vadd.f32 %v2494_v11, %v2380_v5  ;;  %4191 = vmatprep.mubr.msk.f32.mxu1 %vm5104_vm0, %v6816_v37  ;;  %v2487_v36 = vadd.f32 %v2486_v44, %v2485_v26  ;;  %v2525_v26 = vadd.f32 %v2524_v29, %v6214_v51 }
 0x5b3   :  { %v4826_v59 = vpop.eup %4825  ;;  %4831 = vrcp.f32 %v2312_v24 }
 0x5b4   :  { %v2496_v48 = vrot.slane %v2495_v23, 2  ;;  %v2381_v18 = vmul.f32 %v4826_v59, %v6272_v14  ;;  %v2492_v58 = vrot.slane %v2491_v52, 1 }
 0x5b5   :  { %v4828_v30 = vpop.eup %4827 }
 0x5b6   :  { %v2500_v60 = vrot.slane %v2381_v18, 4  ;;  %v2382_v0 = vmul.f32 %v4828_v30, %v6276_v63  ;;  %v2493_v33 = vadd.f32 %v2492_v58, %v2491_v52  ;;  %v2497_v61 = vadd.f32 %v2496_v48, %v2495_v23 }
 0x5b7   :  { %v2526_v52 = vrot.slane %v2525_v26, 2 }
 0x5b8   :  { %v2501_v1 = vadd.f32 %v2500_v60, %v2381_v18  ;;  %v2506_v31 = vrot.slane %v2382_v0, 4  ;;  %v2498_v15 = vrot.slane %v2497_v61, 1  ;;  %v2568_v34 = vsel %vm1589_vm2, %v2493_v33, %v2487_v36 }
 0x5b9   :  { %v4830_v4 = vpop.eup %4829  ;;  %v2527_v36 = vadd.f32 %v2526_v52, %v2525_v26 }
 0x5ba   :  { %v2383_v3 = vmul.f32 %v4830_v4, %v6281_v7  ;;  %v2499_v53 = vadd.f32 %v2498_v15, %v2497_v61  ;;  %v2502_v14 = vrot.slane %v2501_v1, 2  ;;  %v2507_v6 = vadd.f32 %v2506_v31, %v2382_v0 }
 0x5bb   :  { %v2528_v29 = vrot.slane %v2527_v36, 1 }
 0x5bc   :  { %v2503_v5 = vadd.f32 %v2502_v14, %v2501_v1  ;;  %v2508_v9 = vrot.slane %v2507_v6, 2  ;;  %v2512_v63 = vrot.slane %v2383_v3, 4  ;;  %v2569_v45 = vsel %vm1591_vm3, %v2499_v53, %v2568_v34  ;;  %v6859_v14 = vld [vmem:[#allocation32_spill] sm:$0xff] }
 0x5bd   :  { %v4832_v22 = vpop.eup %4831  ;;  %v2529_v34 = vadd.f32 %v2528_v29, %v2527_v36 }
 0x5be   :  { %v2384_v11 = vmul.f32 %v4832_v22, %v6286_v13  ;;  %v2504_v20 = vrot.slane %v2503_v5, 1  ;;  %v2509_v24 = vadd.f32 %v2508_v9, %v2507_v6  ;;  %v2513_v44 = vadd.f32 %v2512_v63, %v2383_v3  ;;  %v6860_v63 = vld [vmem:[#allocation34_spill] sm:$0xff] }
 0x5c0   :  { %v2505_v23 = vadd.f32 %v2504_v20, %v2503_v5  ;;  %v2510_v59 = vrot.slane %v2509_v24, 1  ;;  %v2514_v7 = vrot.slane %v2513_v44, 2  ;;  %v2518_v48 = vrot.slane %v2384_v11, 4 }
 0x5c2   :  { %v2511_v18 = vadd.f32 %v2510_v59, %v2509_v24  ;;  %v2515_v58 = vadd.f32 %v2514_v7, %v2513_v44  ;;  %v2519_v30 = vadd.f32 %v2518_v48, %v2384_v11  ;;  %v2570_v51 = vsel %vm1593_vm4, %v2505_v23, %v2569_v45  ;;  %v6861_v24 = vld [vmem:[#allocation23_spill] sm:$0xff] }
 0x5c4   :  { %v2516_v60 = vrot.slane %v2515_v58, 1  ;;  %v2520_v0 = vrot.slane %v2519_v30, 2  ;;  %v2571_v33 = vsel %vm1595_vm5, %v2511_v18, %v2570_v51 }
 0x5c6   :  { %v2517_v61 = vadd.f32 %v2516_v60, %v2515_v58  ;;  %v2521_v13 = vadd.f32 %v2520_v0, %v2519_v30 }
 0x5c8   :  { %v2522_v1 = vrot.slane %v2521_v13, 1  ;;  %v2572_v31 = vsel %vm1597_vm6, %v2517_v61, %v2571_v33 }
 0x5ca   :  { %v2523_v15 = vadd.f32 %v2522_v1, %v2521_v13 }
 0x5cc   :  { %v2573_v4 = vsel %vm1599_vm7, %v2523_v15, %v2572_v31 }
 0x5cd   :  { %v2574_v3 = vsel %vm1601_vm8, %v2529_v34, %v2573_v4 }
 0x5ce   :  { %4192 = vmatmul.mubr.f32.gmra.mrb[78].mxu1 %v2574_v3 }
 0x5cf   :  { %2826 = vmatprep.mubr.f32.mxu1 %v6816_v37 }
 0x623   :  { %v2159_v53 = vpop.f32.mrb[68].mxu1 }
 0x624   :  { %v2173_v6 = vadd.f32 %v2159_v53, %v6859_v14  ;;  %v4146_v26 = vpop.f32.mrb[69].mxu1 }
 0x626   :  { %v3727_v5 = vmul.f32 -1.442695, %v2173_v6 }
 0x627   :  { %v2164_v9 = vpop.f32.mrb[70].mxu1 }
 0x628   :  { %4833 = vpow2.f32 %v3727_v5  ;;  %v2174_v45 = vadd.f32 %v2164_v9, %v6860_v63  ;;  %v4149_v22 = vpop.f32.mrb[71].mxu1 }
 0x629   :  { %v4993_v22 = vld [vmem:[%s6694_s4 + $0x8] sm:$0xff] }
 0x62a   :  { %v3728_v11 = vmul.f32 -1.442695, %v2174_v45 }
 0x62b   :  { %v2169_v20 = vpop.f32.mrb[72].mxu1 }
 0x62c   :  { %4835 = vpow2.f32 %v3728_v11  ;;  %v2175_v44 = vadd.f32 %v2169_v20, %v6861_v24  ;;  %v4152_v52 = vpop.f32.mrb[73].mxu1 }
 0x62e   :  { %v3729_v23 = vmul.f32 -1.442695, %v2175_v44 }
 0x630   :  { %4837 = vpow2.f32 %v3729_v23 }
 0x632   :  { %v4834_v59 = vpop.eup %4833 }
 0x633   :  { %v2185_v7 = vadd.f32 1.0, %v4834_v59 }
 0x635   :  { %4839 = vrcp.f32 %v2185_v7 }
 0x636   :  { %v4836_v48 = vpop.eup %4835 }
 0x637   :  { %v2186_v18 = vadd.f32 1.0, %v4836_v48 }
 0x639   :  { %4841 = vrcp.f32 %v2186_v18  ;;  %v4994_v18 = vld [vmem:[%s6694_s4 + $0x10] sm:$0xff] }
 0x63a   :  { %v4838_v58 = vpop.eup %4837 }
 0x63b   :  { %v2187_v30 = vadd.f32 1.0, %v4838_v58 }
 0x63d   :  { %4843 = vrcp.f32 %v2187_v30  ;;  %v4995_v30 = vld [vmem:[%s6693_s3] sm:$0xff] }
 0x63f   :  { %v4840_v51 = vpop.eup %4839 }
 0x640   :  { %v2664_v36 = vsub.f32 1.0, %v4840_v51 }
 0x642   :  { %v2667_v60 = vmul.f32 %v2664_v36, %v6167_v2  ;;  %v4992_v2 = vld [vmem:[%s6694_s4] sm:$0xff]  ;;  %v4997_v36 = vld [vmem:[%s6693_s3 + $0x10] sm:$0xff] }
 0x643   :  { %v4842_v0 = vpop.eup %4841 }
 0x644   :  { %v2665_v33 = vsub.f32 1.0, %v4842_v0 }
 0x646   :  { %v2668_v61 = vmul.f32 %v2665_v33, %v6177_v21 }
 0x647   :  { %v4844_v13 = vpop.eup %4843 }
 0x648   :  { %v2666_v29 = vsub.f32 1.0, %v4844_v13 }
 0x64a   :  { %v2669_v1 = vmul.f32 %v2666_v29, %v6187_v10 }
 0x665   :  { %v2644_v31 = vpop.f32.mrb[74].mxu1 }
 0x666   :  { %v2658_v15 = vadd.f32 %v2644_v31, %v5956_v25  ;;  %v4187_v34 = vpop.f32.mrb[75].mxu1 }
 0x667   :  { %v5003_v34 = vld [vmem:[%s6692_s2 + $0x28] sm:$0xff] }
 0x668   :  { %4845 = vtanh.f32 %v2658_v15  ;;  %v6862_v15 = vld [vmem:[#allocation28_spill] sm:$0xff] }
 0x672   :  { %v4846_v4 = vpop.eup %4845 }
 0x673   :  { %v2670_v3 = vmul.f32 %v4846_v4, %v4840_v51  ;;  %v4996_v51 = vld [vmem:[%s6693_s3 + $0x8] sm:$0xff]  ;;  %v5004_v4 = vld [vmem:[%s6692_s2 + $0x30] sm:$0xff] }
 0x675   :  { %v2673_v53 = vadd.f32 %v2670_v3, %v2667_v60  ;;  %v6864_v3 = vld [vmem:[#allocation30_spill] sm:$0xff] }
 0x677   :  { %v2676_v6 = vmul.f32 %v4992_v2, %v2673_v53  ;;  %v5005_v53 = vld [vmem:[%s6692_s2 + $0x38] sm:$0xff]  ;;  %v6865_v2 = vld [vmem:[#allocation31_spill] sm:$0xff] }
 0x679   :  { %2744 = vmatmul.mubr.f32.vlgmr.msra.gmra.mrb[76].mxu0 %v2676_v6 }
 0x67a   :  { %2749 = vmatprep.mubr.f32.mxu0 %v6816_v37 }
 0x684   :  { %v2649_v21 = vpop.f32.mrb[76].mxu1 }
 0x685   :  { %v2659_v26 = vadd.f32 %v2649_v21, %v5967_v54  ;;  %v4190_v10 = vpop.f32.mrb[77].mxu1  ;;  %v5008_v21 = vld [vmem:[%s6692_s2 + $0x50] sm:$0xff] }
 0x686   :  { %v5010_v10 = vld [vmem:[%s6692_s2 + $0x60] sm:$0xff] }
 0x687   :  { %4847 = vtanh.f32 %v2659_v26  ;;  %v5009_v26 = vld [vmem:[%s6692_s2 + $0x58] sm:$0xff] }
 0x691   :  { %v4848_v5 = vpop.eup %4847 }
 0x692   :  { %v2671_v9 = vmul.f32 %v4848_v5, %v4842_v0  ;;  %v5011_v5 = vld [vmem:[%s6692_s2 + $0x68] sm:$0xff] }
 0x694   :  { %v2674_v45 = vadd.f32 %v2671_v9, %v2668_v61  ;;  %v4999_v61 = vld [vmem:[%s6692_s2 + $0x8] sm:$0xff]  ;;  %v5012_v9 = vld [vmem:[%s6692_s2 + $0x70] sm:$0xff] }
 0x696   :  { %v2677_v11 = vmul.f32 %v4993_v22, %v2674_v45  ;;  %v5013_v45 = vld [vmem:[%s6692_s2 + $0x78] sm:$0xff]  ;;  %v5014_v22 = vld [vmem:[%s6692_s2 + $0x80] sm:$0xff] }
 0x698   :  { %2750 = vmatmul.mubr.f32.gmra.mrb[78].mxu0 %v2677_v11  ;;  %v4558_v20 = vpack.c.bf16 %v2677_v11, %v2676_v6  ;;  %v5006_v6 = vld [vmem:[%s6692_s2 + $0x40] sm:$0xff]  ;;  %v5015_v11 = vld [vmem:[%s6692_s2 + $0x88] sm:$0xff] }
 0x699   :  { %2755 = vmatprep.mubr.f32.mxu0 %v6816_v37 }
 0x69a   :  { %4559 = vmatpush3.bf16.msra.mxu0 %v4558_v20  ;;  %v5016_v20 = vld [vmem:[%s6692_s2 + $0x90] sm:$0xff] }
 0x69b   :  { %4198 = vmatprep.subr.mxu0 %v6816_v37 }
 0x6a1   :  { %v2654_v44 = vpop.f32.mrb[78].mxu1 }
 0x6a2   :  { %v2660_v52 = vadd.f32 %v2654_v44, %v5643_v32  ;;  %v4193_v23 = vpop.f32.mrb[79].mxu1  ;;  %v5017_v44 = vld [vmem:[%s6692_s2 + $0x98] sm:$0xff] }
 0x6a3   :  { %v5019_v23 = vld [vmem:[%s6692_s2 + $0xa8] sm:$0xff] }
 0x6a4   :  { %4849 = vtanh.f32 %v2660_v52  ;;  %v5018_v52 = vld [vmem:[%s6692_s2 + $0xa0] sm:$0xff] }
 0x6ae   :  { %v4850_v59 = vpop.eup %4849 }
 0x6af   :  { %v2672_v7 = vmul.f32 %v4850_v59, %v4844_v13  ;;  %v5020_v59 = vld [vmem:[%s6692_s2 + $0xb0] sm:$0xff] }
 0x6b1   :  { %v2675_v48 = vadd.f32 %v2672_v7, %v2669_v1  ;;  %v5021_v7 = vld [vmem:[%s6692_s2 + $0xb8] sm:$0xff] }
 0x6b3   :  { %v2678_v58 = vmul.f32 %v4994_v18, %v2675_v48 }
 0x6b5   :  { %2756 = vmatmul.mubr.f32.gmra.mrb[80].mxu0 %v2678_v58 }
 0x6b6   :  { %4199 = vmatpush3.msra.mxu0 %v2678_v58  ;;  %4200 = vmatprep.mubr.msk.f32.mxu0 %vm5104_vm0, %v6816_v37 }
 0x6b7   :  { %4560 = vmatprep.subr.bf16.mxu0 %v6821_v40 }
 0x6b9   :  { %4201 = vmatmul.mubr.msk.f32.vlgmr.msra.gmra.mrb[82].mxu0 %vm757_vm1, %v4995_v30  ;;  %v6866_v30 = vld [vmem:[#allocation33_spill] sm:$0xff] }
 0x6ba   :  { %4203 = vmatprep.mubr.msk.f32.mxu0 %vm5104_vm0, %v6816_v37  ;;  %4562 = vmatpush3.bf16.msra.mxu0 %v5408_v62 }
 0x6bb   :  { %4563 = vmatprep.subr.bf16.mxu0 %v6821_v40 }
 0x6bd   :  { %4204 = vmatmul.mubr.msk.f32.gmra.mrb[84].mxu0 %vm757_vm1, %v4996_v51 }
 0x6be   :  { %4206 = vmatprep.mubr.msk.f32.mxu0 %vm5104_vm0, %v6816_v37  ;;  %4565 = vmatpush3.bf16.msra.mxu0 %v5412_v8 }
 0x6bf   :  { %4566 = vmatprep.subr.bf16.mxu0 %v6821_v40 }
 0x6c1   :  { %4207 = vmatmul.mubr.msk.f32.gmra.mrb[86].mxu0 %vm757_vm1, %v4997_v36 }
 0x6c2   :  { %4568 = vmatpush3.bf16.msra.mxu0 %v5417_v19  ;;  %4241 = vmatprep.mubr.msk.f32.mxu0 %vm5104_vm0, %v6816_v37 }
 0x6c3   :  { %4569 = vmatprep.subr.bf16.mxu0 %v6821_v40 }
 0x6c6   :  { %4571 = vmatpush3.bf16.msra.mxu0 %v6824_v38 }
 0x6c7   :  { %4572 = vmatprep.subr.bf16.mxu0 %v6821_v40 }
 0x6ca   :  { %4574 = vmatpush3.bf16.msra.mxu0 %v6827_v16 }
 0x6cb   :  { %4575 = vmatprep.subr.bf16.mxu0 %v6821_v40 }
 0x6ce   :  { %4577 = vmatpush3.bf16.msra.mxu0 %v6830_v56 }
 0x6cf   :  { %4578 = vmatprep.subr.bf16.mxu0 %v6821_v40 }
 0x6d2   :  { %4580 = vmatpush3.bf16.msra.mxu0 %v6833_v49  ;;  %v4998_v49 = vld [vmem:[%s6692_s2] sm:$0xff] }
 0x6d3   :  { %4581 = vmatprep.subr.bf16.mxu0 %v6821_v40 }
 0x6d6   :  { %4583 = vmatpush3.bf16.msra.mxu0 %v6835_v46 }
 0x6d7   :  { %4584 = vmatprep.subr.bf16.mxu0 %v6821_v40 }
 0x74c   :  { %v2745_v62 = vpop.f32.mrb[76].mxu0 }
 0x74d   :  { %v2747_v8 = vpop.f32.mrb[77].mxu0 }
 0x76b   :  { %v2751_v19 = vpop.f32.mrb[78].mxu0 }
 0x76c   :  { %v4555_v38 = vpack.c.bf16 %v2751_v19, %v2745_v62  ;;  %v2753_v60 = vpop.f32.mrb[79].mxu0 }
 0x76d   :  { %v4553_v16 = vpack.c.bf16 %v2753_v60, %v2747_v8 }
 0x76f   :  { %4554 = vmatprep.subr.bf16.mxu1 %v4553_v16 }
 0x770   :  { %4556 = vmatpush1.bf16.msra.mxu1 %v4555_v38 }
 0x788   :  { %v2757_v0 = vpop.f32.mrb[80].mxu0 }
 0x789   :  { %v2759_v56 = vpop.f32.mrb[81].mxu0 }
 0x78a   :  { %2766 = vmatprep.subr.mxu1 %v2759_v56 }
 0x78b   :  { %2767 = vmatpush1.msra.mxu1 %v2757_v0  ;;  %v6867_v0 = vld [vmem:[#allocation35_spill] sm:$0xff] }
 0x78c   :  { %3754 = vmatmul.mubr.msk.f32.vlgmr.msra.gmra.mrb[80].mxu1 %vm757_vm1, %v4998_v49  ;;  %v6376_v46 = vpop.f32.mrb[82].mxu0 }
 0x78d   :  { %4242 = vmatmul.mubr.f32.vlgmr.msra.gmra.mrb[88].mxu0 %v6376_v46  ;;  %2832 = vmatprep.mubr.f32.mxu1 %v6816_v37  ;;  %v4202_v33 = vpop.f32.mrb[83].mxu0 }
 0x78e   :  { %4244 = vmatprep.mubr.msk.f32.mxu0 %vm5104_vm0, %v6816_v37  ;;  %4586 = vmatpush3.bf16.msra.mxu0 %v6838_v27  ;;  %v5000_v27 = vld [vmem:[%s6692_s2 + $0x10] sm:$0xff] }
 0x78f   :  { %4587 = vmatprep.subr.bf16.mxu0 %v6821_v40 }
 0x790   :  { %3755 = vmatmul.mubr.msk.f32.gmra.mrb[82].mxu1 %vm757_vm1, %v4999_v61  ;;  %v6388_v13 = vpop.f32.mrb[84].mxu0 }
 0x791   :  { %4245 = vmatmul.mubr.f32.gmra.mrb[90].mxu0 %v6388_v13  ;;  %2838 = vmatprep.mubr.f32.mxu1 %v6816_v37  ;;  %v4205_v29 = vpop.f32.mrb[85].mxu0 }
 0x792   :  { %4247 = vmatprep.mubr.msk.f32.mxu0 %vm5104_vm0, %v6816_v37  ;;  %4589 = vmatpush3.bf16.msra.mxu0 %v6840_v12  ;;  %v5001_v12 = vld [vmem:[%s6692_s2 + $0x18] sm:$0xff] }
 0x793   :  { %4590 = vmatprep.subr.bf16.mxu0 %v6821_v40 }
 0x794   :  { %3756 = vmatmul.mubr.msk.f32.gmra.mrb[84].mxu1 %vm757_vm1, %v5000_v27  ;;  %v6400_v1 = vpop.f32.mrb[86].mxu0 }
 0x795   :  { %4248 = vmatmul.mubr.f32.gmra.mrb[92].mxu0 %v6400_v1  ;;  %2844 = vmatprep.mubr.f32.mxu1 %v6816_v37  ;;  %v4208_v31 = vpop.f32.mrb[87].mxu0 }
 0x796   :  { %4592 = vmatpush3.bf16.msra.mxu0 %v6842_v57  ;;  %4282 = vmatprep.mubr.msk.f32.mxu0 %vm5104_vm0, %v6816_v37  ;;  %v5002_v57 = vld [vmem:[%s6692_s2 + $0x20] sm:$0xff] }
 0x797   :  { %4593 = vmatprep.subr.bf16.mxu0 %v6821_v40 }
 0x798   :  { %3757 = vmatmul.mubr.msk.f32.gmra.mrb[86].mxu1 %vm757_vm1, %v5001_v12  ;;  %v6868_v12 = vld [vmem:[#allocation36_spill] sm:$0xff] }
 0x799   :  { %2850 = vmatprep.mubr.f32.mxu1 %v6816_v37 }
 0x79a   :  { %4595 = vmatpush3.bf16.msra.mxu0 %v6844_v42  ;;  %v6863_v42 = vld [vmem:[#allocation29_spill] sm:$0xff] }
 0x79b   :  { %4596 = vmatprep.subr.bf16.mxu0 %v6821_v40 }
 0x79c   :  { %3758 = vmatmul.mubr.msk.f32.gmra.mrb[88].mxu1 %vm757_vm1, %v5002_v57 }
 0x79d   :  { %2856 = vmatprep.mubr.f32.mxu1 %v6816_v37 }
 0x79e   :  { %4598 = vmatpush3.bf16.msra.mxu0 %v6862_v15 }
 0x79f   :  { %4599 = vmatprep.subr.bf16.mxu0 %v6821_v40 }
 0x7a0   :  { %3759 = vmatmul.mubr.msk.f32.gmra.mrb[90].mxu1 %vm757_vm1, %v5003_v34 }
 0x7a1   :  { %2862 = vmatprep.mubr.f32.mxu1 %v6816_v37 }
 0x7a2   :  { %4601 = vmatpush3.bf16.msra.mxu0 %v6863_v42 }
 0x7a3   :  { %4602 = vmatprep.subr.bf16.mxu0 %v6821_v40 }
 0x7a4   :  { %3760 = vmatmul.mubr.msk.f32.gmra.mrb[92].mxu1 %vm757_vm1, %v5004_v4 }
 0x7a5   :  { %2868 = vmatprep.mubr.f32.mxu1 %v6816_v37 }
 0x7a6   :  { %4604 = vmatpush3.bf16.msra.mxu0 %v6864_v3 }
 0x7a7   :  { %4605 = vmatprep.subr.bf16.mxu0 %v6821_v40  ;;  %v5007_v40 = vld [vmem:[%s6692_s2 + $0x48] sm:$0xff] }
 0x7a8   :  { %3761 = vmatmul.mubr.msk.f32.gmra.mrb[94].mxu1 %vm757_vm1, %v5005_v53  ;;  %v6869_v53 = vld [vmem:[#allocation37_spill] sm:$0xff] }
 0x7a9   :  { %2874 = vmatprep.mubr.f32.mxu1 %v6816_v37 }
 0x7aa   :  { %4607 = vmatpush3.bf16.msra.mxu0 %v6865_v2 }
 0x7ac   :  { %3762 = vmatmul.mubr.msk.f32.gmra.mrb[96].mxu1 %vm757_vm1, %v5006_v6 }
 0x7ad   :  { %2880 = vmatprep.mubr.f32.mxu1 %v6816_v37 }
 0x7b0   :  { %3763 = vmatmul.mubr.msk.f32.gmra.mrb[98].mxu1 %vm757_vm1, %v5007_v40 }
 0x7b1   :  { %2886 = vmatprep.mubr.f32.mxu1 %v6816_v37 }
 0x7b4   :  { %3764 = vmatmul.mubr.msk.f32.gmra.mrb[100].mxu1 %vm757_vm1, %v5008_v21 }
 0x7b5   :  { %2892 = vmatprep.mubr.f32.mxu1 %v6816_v37 }
 0x7b8   :  { %3765 = vmatmul.mubr.msk.f32.gmra.mrb[102].mxu1 %vm757_vm1, %v5009_v26 }
 0x7b9   :  { %2898 = vmatprep.mubr.f32.mxu1 %v6816_v37 }
 0x7bc   :  { %3766 = vmatmul.mubr.msk.f32.gmra.mrb[104].mxu1 %vm757_vm1, %v5010_v10 }
 0x7bd   :  { %2904 = vmatprep.mubr.f32.mxu1 %v6816_v37 }
 0x7c0   :  { %3767 = vmatmul.mubr.msk.f32.gmra.mrb[106].mxu1 %vm757_vm1, %v5011_v5 }
 0x7c1   :  { %2910 = vmatprep.mubr.f32.mxu1 %v6816_v37 }
 0x7c4   :  { %3768 = vmatmul.mubr.msk.f32.gmra.mrb[108].mxu1 %vm757_vm1, %v5012_v9 }
 0x7c5   :  { %2916 = vmatprep.mubr.f32.mxu1 %v6816_v37 }
 0x7c8   :  { %3769 = vmatmul.mubr.msk.f32.gmra.mrb[110].mxu1 %vm757_vm1, %v5013_v45 }
 0x7c9   :  { %2922 = vmatprep.mubr.f32.mxu1 %v6816_v37 }
 0x7cc   :  { %3770 = vmatmul.mubr.msk.f32.gmra.mrb[112].mxu1 %vm757_vm1, %v5014_v22 }
 0x7cd   :  { %2928 = vmatprep.mubr.f32.mxu1 %v6816_v37 }
 0x7d0   :  { %3771 = vmatmul.mubr.msk.f32.gmra.mrb[114].mxu1 %vm757_vm1, %v5015_v11 }
 0x7d1   :  { %2934 = vmatprep.mubr.f32.mxu1 %v6816_v37 }
 0x7d4   :  { %3772 = vmatmul.mubr.msk.f32.gmra.mrb[116].mxu1 %vm757_vm1, %v5016_v20 }
 0x7d5   :  { %2940 = vmatprep.mubr.f32.mxu1 %v6816_v37 }
 0x7d8   :  { %3773 = vmatmul.mubr.msk.f32.gmra.mrb[118].mxu1 %vm757_vm1, %v5017_v44 }
 0x7d9   :  { %2946 = vmatprep.mubr.f32.mxu1 %v6816_v37 }
 0x7dc   :  { %3774 = vmatmul.mubr.msk.f32.gmra.mrb[120].mxu1 %vm757_vm1, %v5018_v52 }
 0x7dd   :  { %2952 = vmatprep.mubr.f32.mxu1 %v6816_v37 }
 0x7e0   :  { %3775 = vmatmul.mubr.msk.f32.gmra.mrb[122].mxu1 %vm757_vm1, %v5019_v23 }
 0x7e1   :  { %2958 = vmatprep.mubr.f32.mxu1 %v6816_v37 }
 0x7e4   :  { %3776 = vmatmul.mubr.msk.f32.gmra.mrb[124].mxu1 %vm757_vm1, %v5020_v59 }
 0x7e5   :  { %2964 = vmatprep.mubr.f32.mxu1 %v6816_v37 }
 0x7e8   :  { %3777 = vmatmul.mubr.msk.f32.gmra.mrb[126].mxu1 %vm757_vm1, %v5021_v7  ;;  %v6871_v7 = vld [vmem:[#allocation39_spill] sm:$0xff] }
 0x85f   :  { %v6521_v48 = vpop.f32.mrb[80].mxu1 }
 0x860   :  { %v2830_v18 = vpop.f32.mrb[81].mxu1  ;;  %v3117_v58 = vpop.f32.mrb[88].mxu0 }
 0x861   :  { %v3152_v51 = vadd.f32 %v2830_v18, %v6866_v30  ;;  %v3131_v36 = vadd.f32 %v3117_v58, %v6859_v14  ;;  %v4243_v62 = vpop.f32.mrb[89].mxu0 }
 0x863   :  { %v3784_v8 = vmul.f32 -1.442695, %v3152_v51  ;;  %v3781_v19 = vmul.f32 -1.442695, %v3131_v36  ;;  %v6525_v38 = vpop.f32.mrb[82].mxu1 }
 0x864   :  { %v2836_v60 = vpop.f32.mrb[83].mxu1  ;;  %v3122_v16 = vpop.f32.mrb[90].mxu0 }
 0x865   :  { %4851 = vpow2.f32 %v3784_v8  ;;  %v3153_v56 = vadd.f32 %v2836_v60, %v6867_v0  ;;  %v3132_v49 = vadd.f32 %v3122_v16, %v6860_v63  ;;  %v4246_v33 = vpop.f32.mrb[91].mxu0  ;;  %v6872_v60 = vld [vmem:[#allocation40_spill] sm:$0xff] }
 0x866   :  { %4853 = vpow2.f32 %v3781_v19 }
 0x867   :  { %v3785_v61 = vmul.f32 -1.442695, %v3153_v56  ;;  %v3782_v29 = vmul.f32 -1.442695, %v3132_v49  ;;  %v6529_v27 = vpop.f32.mrb[84].mxu1 }
 0x868   :  { %v2842_v31 = vpop.f32.mrb[85].mxu1  ;;  %v3127_v14 = vpop.f32.mrb[92].mxu0 }
 0x869   :  { %4855 = vpow2.f32 %v3785_v61  ;;  %v3154_v57 = vadd.f32 %v2842_v31, %v6868_v12  ;;  %v3133_v15 = vadd.f32 %v3127_v14, %v6861_v24  ;;  %v4249_v34 = vpop.f32.mrb[93].mxu0  ;;  %v6870_v24 = vld [vmem:[#allocation38_spill] sm:$0xff]  ;;  %v6873_v12 = vld [vmem:[#allocation41_spill] sm:$0xff] }
 0x86a   :  { %4857 = vpow2.f32 %v3782_v29 }
 0x86b   :  { %v3786_v42 = vmul.f32 -1.442695, %v3154_v57  ;;  %v3783_v4 = vmul.f32 -1.442695, %v3133_v15  ;;  %v6533_v3 = vpop.f32.mrb[86].mxu1 }
 0x86c   :  { %v2848_v63 = vpop.f32.mrb[87].mxu1 }
 0x86d   :  { %4859 = vpow2.f32 %v3786_v42  ;;  %v3155_v2 = vadd.f32 %v2848_v63, %v6869_v53 }
 0x86e   :  { %4861 = vpow2.f32 %v3783_v4 }
 0x86f   :  { %v4852_v6 = vpop.eup %4851  ;;  %v3787_v40 = vmul.f32 -1.442695, %v3155_v2  ;;  %v6536_v21 = vpop.f32.mrb[88].mxu1 }
 0x870   :  { %v4854_v26 = vpop.eup %4853  ;;  %v3248_v10 = vadd.f32 1.0, %v4852_v6  ;;  %v2854_v5 = vpop.f32.mrb[89].mxu1 }
 0x871   :  { %v3143_v9 = vadd.f32 1.0, %v4854_v26  ;;  %4863 = vpow2.f32 %v3787_v40  ;;  %v3156_v45 = vadd.f32 %v2854_v5, %v6870_v24  ;;  %v6874_v5 = vld [vmem:[#allocation42_spill] sm:$0xff] }
 0x872   :  { %4865 = vrcp.f32 %v3248_v10 }
 0x873   :  { %v4856_v22 = vpop.eup %4855  ;;  %4867 = vrcp.f32 %v3143_v9  ;;  %v3788_v11 = vmul.f32 -1.442695, %v3156_v45  ;;  %v6539_v20 = vpop.f32.mrb[90].mxu1 }
 0x874   :  { %v4858_v44 = vpop.eup %4857  ;;  %v3249_v52 = vadd.f32 1.0, %v4856_v22  ;;  %v2860_v23 = vpop.f32.mrb[91].mxu1 }
 0x875   :  { %v3144_v59 = vadd.f32 1.0, %v4858_v44  ;;  %4869 = vpow2.f32 %v3788_v11  ;;  %v3157_v18 = vadd.f32 %v2860_v23, %v6871_v7 }
 0x876   :  { %4871 = vrcp.f32 %v3249_v52 }
 0x877   :  { %v4860_v58 = vpop.eup %4859  ;;  %4873 = vrcp.f32 %v3144_v59  ;;  %v3789_v30 = vmul.f32 -1.442695, %v3157_v18  ;;  %v6542_v51 = vpop.f32.mrb[92].mxu1 }
 0x878   :  { %v4862_v36 = vpop.eup %4861  ;;  %v3250_v62 = vadd.f32 1.0, %v4860_v58  ;;  %v2866_v8 = vpop.f32.mrb[93].mxu1 }
 0x879   :  { %v3145_v19 = vadd.f32 1.0, %v4862_v36  ;;  %4875 = vpow2.f32 %v3789_v30  ;;  %v3158_v16 = vadd.f32 %v2866_v8, %v6872_v60 }
 0x87a   :  { %4877 = vrcp.f32 %v3250_v62  ;;  %v6875_v62 = vld [vmem:[#allocation43_spill] sm:$0xff] }
 0x87b   :  { %v4864_v0 = vpop.eup %4863  ;;  %4879 = vrcp.f32 %v3145_v19  ;;  %v3790_v56 = vmul.f32 -1.442695, %v3158_v16  ;;  %v6545_v49 = vpop.f32.mrb[94].mxu1 }
 0x87c   :  { %v4866_v33 = vpop.eup %4865  ;;  %v3251_v61 = vadd.f32 1.0, %v4864_v0  ;;  %v2872_v29 = vpop.f32.mrb[95].mxu1 }
 0x87d   :  { %v6547_v31 = vpop.eup %4867  ;;  %v3320_v14 = vmul.f32 %v4866_v33, %v6521_v48  ;;  %4881 = vpow2.f32 %v3790_v56  ;;  %v3159_v57 = vadd.f32 %v2872_v29, %v6873_v12 }
 0x87e   :  { %v3622_v15 = vsub.f32 1.0, %v6547_v31  ;;  %4883 = vrcp.f32 %v3251_v61 }
 0x87f   :  { %v4870_v34 = vpop.eup %4869  ;;  %v3344_v42 = vrot.slane %v3320_v14, 4  ;;  %v3791_v4 = vmul.f32 -1.442695, %v3159_v57  ;;  %v6552_v63 = vpop.f32.mrb[96].mxu1 }
 0x880   :  { %v4872_v53 = vpop.eup %4871  ;;  %v3252_v2 = vadd.f32 1.0, %v4870_v34  ;;  %v2878_v6 = vpop.f32.mrb[97].mxu1  ;;  %v6555_v40 = vmul.f32 %v3622_v15, %v6376_v46  ;;  %v6876_v15 = vld [vmem:[#allocation44_spill] sm:$0xff] }
 0x881   :  { %v6557_v26 = vpop.eup %4873  ;;  %v3345_v48 = vadd.f32 %v3344_v42, %v3320_v14  ;;  %v3321_v10 = vmul.f32 %v4872_v53, %v6525_v38  ;;  %4885 = vpow2.f32 %v3791_v4  ;;  %v3160_v9 = vadd.f32 %v2878_v6, %v6874_v5 }
 0x882   :  { %v3623_v24 = vsub.f32 1.0, %v6557_v26  ;;  %4887 = vrcp.f32 %v3252_v2 }
 0x883   :  { %v4876_v45 = vpop.eup %4875  ;;  %v3346_v22 = vrot.slane %v3345_v48, 2  ;;  %v3350_v11 = vrot.slane %v3321_v10, 4  ;;  %v3792_v44 = vmul.f32 -1.442695, %v3160_v9  ;;  %v6562_v52 = vpop.f32.mrb[98].mxu1 }
 0x884   :  { %v4878_v23 = vpop.eup %4877  ;;  %v3253_v46 = vadd.f32 1.0, %v4876_v45  ;;  %v2884_v59 = vpop.f32.mrb[99].mxu1  ;;  %v6565_v7 = vmul.f32 %v3623_v24, %v6388_v13 }
 0x885   :  { %v6567_v18 = vpop.eup %4879  ;;  %v3351_v38 = vadd.f32 %v3350_v11, %v3321_v10  ;;  %v3322_v58 = vmul.f32 %v4878_v23, %v6529_v27  ;;  %4889 = vpow2.f32 %v3792_v44  ;;  %v3347_v30 = vadd.f32 %v3346_v22, %v3345_v48 }
 0x886   :  { %v3624_v36 = vsub.f32 1.0, %v6567_v18  ;;  %4891 = vrcp.f32 %v3253_v46  ;;  %v3161_v8 = vadd.f32 %v2884_v59, %v6875_v62 }
 0x887   :  { %v4882_v19 = vpop.eup %4881  ;;  %v3352_v60 = vrot.slane %v3351_v38, 2  ;;  %v3356_v16 = vrot.slane %v3322_v58, 4  ;;  %v6572_v0 = vpop.f32.mrb[100].mxu1  ;;  %v3348_v57 = vrot.slane %v3347_v30, 1 }
 0x888   :  { %v4884_v56 = vpop.eup %4883  ;;  %v3254_v13 = vadd.f32 1.0, %v4882_v19  ;;  %v3793_v33 = vmul.f32 -1.442695, %v3161_v8  ;;  %v2890_v61 = vpop.f32.mrb[101].mxu1  ;;  %v6575_v29 = vmul.f32 %v3624_v36, %v6400_v1 }
 0x889   :  { %v3353_v27 = vadd.f32 %v3352_v60, %v3351_v38  ;;  %v3357_v14 = vadd.f32 %v3356_v16, %v3322_v58  ;;  %v3323_v12 = vmul.f32 %v4884_v56, %v6533_v3  ;;  %v3162_v34 = vadd.f32 %v2890_v61, %v6876_v15 }
 0x88a   :  { %4893 = vrcp.f32 %v3254_v13  ;;  %v3349_v22 = vadd.f32 %v3348_v57, %v3347_v30 }
 0x88b   :  { %v4886_v42 = vpop.eup %4885  ;;  %v3354_v4 = vrot.slane %v3353_v27, 1  ;;  %v3358_v53 = vrot.slane %v3357_v14, 2  ;;  %v3362_v2 = vrot.slane %v3323_v12, 4  ;;  %4895 = vpow2.f32 %v3793_v33  ;;  %v6579_v6 = vpop.f32.mrb[102].mxu1 }
 0x88c   :  { %v4888_v48 = vpop.eup %4887  ;;  %v3255_v10 = vadd.f32 1.0, %v4886_v42  ;;  %v3794_v5 = vmul.f32 -1.442695, %v3162_v34  ;;  %v2896_v1 = vpop.f32.mrb[103].mxu1 }
 0x88d   :  { %v3355_v9 = vadd.f32 %v3354_v4, %v3353_v27  ;;  %v3359_v24 = vadd.f32 %v3358_v53, %v3357_v14  ;;  %v3363_v45 = vadd.f32 %v3362_v2, %v3323_v12  ;;  %v3324_v3 = vmul.f32 %v4888_v48, %v6536_v21 }
 0x88e   :  { %4897 = vrcp.f32 %v3255_v10  ;;  %v3163_v11 = vadd.f32 %v2896_v1, %v5821_v28 }
 0x88f   :  { %v4890_v44 = vpop.eup %4889  ;;  %v3360_v23 = vrot.slane %v3359_v24, 1  ;;  %v3364_v46 = vrot.slane %v3363_v45, 2  ;;  %v3368_v59 = vrot.slane %v3324_v3, 4  ;;  %4899 = vpow2.f32 %v3794_v5  ;;  %v6583_v38 = vpop.f32.mrb[104].mxu1 }
 0x890   :  { %v4892_v58 = vpop.eup %4891  ;;  %v3256_v36 = vadd.f32 1.0, %v4890_v44  ;;  %v3795_v62 = vmul.f32 -1.442695, %v3163_v11  ;;  %v2902_v8 = vpop.f32.mrb[105].mxu1  ;;  %v3512_v19 = vsel %vm1589_vm2, %v3355_v9, %v3349_v22 }
 0x891   :  { %v3365_v60 = vadd.f32 %v3364_v46, %v3363_v45  ;;  %v3369_v16 = vadd.f32 %v3368_v59, %v3324_v3  ;;  %v3325_v21 = vmul.f32 %v4892_v58, %v6539_v20  ;;  %v3164_v30 = vadd.f32 %v2902_v8, %v5816_v50 }
 0x892   :  { %4901 = vrcp.f32 %v3256_v36  ;;  %v3361_v28 = vadd.f32 %v3360_v23, %v3359_v24 }
 0x893   :  { %v3370_v56 = vrot.slane %v3369_v16, 2  ;;  %v3374_v13 = vrot.slane %v3325_v21, 4  ;;  %4903 = vpow2.f32 %v3795_v62  ;;  %v3796_v33 = vmul.f32 -1.442695, %v3164_v30  ;;  %v6588_v61 = vpop.f32.mrb[106].mxu1 }
 0x894   :  { %v4894_v27 = vpop.eup %4893  ;;  %v2908_v14 = vpop.f32.mrb[107].mxu1  ;;  %v3366_v12 = vrot.slane %v3365_v60, 1  ;;  %v3513_v57 = vsel %vm1591_vm3, %v3361_v28, %v3512_v19 }
 0x895   :  { %v4896_v15 = vpop.eup %4895  ;;  %v3375_v34 = vadd.f32 %v3374_v13, %v3325_v21  ;;  %v3326_v42 = vmul.f32 %v4894_v27, %v6542_v51  ;;  %4905 = vpow2.f32 %v3796_v33  ;;  %v3165_v50 = vadd.f32 %v2908_v14, %v5832_v35 }
 0x896   :  { %v3257_v20 = vadd.f32 1.0, %v4896_v15  ;;  %v3367_v4 = vadd.f32 %v3366_v12, %v3365_v60  ;;  %v3371_v53 = vadd.f32 %v3370_v56, %v3369_v16 }
 0x897   :  { %v3380_v2 = vrot.slane %v3326_v42, 4  ;;  %v3797_v48 = vmul.f32 -1.442695, %v3165_v50  ;;  %v6593_v10 = vpop.f32.mrb[108].mxu1  ;;  %v3376_v5 = vrot.slane %v3375_v34, 2 }
 0x898   :  { %v4898_v1 = vpop.eup %4897  ;;  %4907 = vrcp.f32 %v3257_v20  ;;  %v2914_v9 = vpop.f32.mrb[109].mxu1  ;;  %v3372_v24 = vrot.slane %v3371_v53, 1  ;;  %v3514_v45 = vsel %vm1593_vm4, %v3367_v4, %v3513_v57 }
 0x899   :  { %v4900_v3 = vpop.eup %4899  ;;  %v3327_v51 = vmul.f32 %v4898_v1, %v6545_v49  ;;  %4909 = vpow2.f32 %v3797_v48  ;;  %v3166_v35 = vadd.f32 %v2914_v9, %v5842_v43  ;;  %v3377_v22 = vadd.f32 %v3376_v5, %v3375_v34 }
 0x89a   :  { %v3258_v11 = vadd.f32 1.0, %v4900_v3  ;;  %v3373_v44 = vadd.f32 %v3372_v24, %v3371_v53  ;;  %v3381_v23 = vadd.f32 %v3380_v2, %v3326_v42 }
 0x89b   :  { %v3798_v46 = vmul.f32 -1.442695, %v3166_v35  ;;  %v6598_v59 = vpop.f32.mrb[110].mxu1  ;;  %v3378_v58 = vrot.slane %v3377_v22, 1  ;;  %v3386_v36 = vrot.slane %v3327_v51, 4  ;;  %v6877_v35 = vld [vmem:[#allocation45_spill] sm:$0xff] }
 0x89c   :  { %v4902_v62 = vpop.eup %4901  ;;  %4911 = vrcp.f32 %v3258_v11  ;;  %v2920_v8 = vpop.f32.mrb[111].mxu1  ;;  %v3382_v19 = vrot.slane %v3381_v23, 2  ;;  %v3515_v60 = vsel %vm1595_vm5, %v3373_v44, %v3514_v45 }
 0x89d   :  { %v4904_v16 = vpop.eup %4903  ;;  %v3328_v49 = vmul.f32 %v4902_v62, %v6552_v63  ;;  %4913 = vpow2.f32 %v3798_v46  ;;  %v3167_v43 = vadd.f32 %v2920_v8, %v5852_v55  ;;  %v3379_v21 = vadd.f32 %v3378_v58, %v3377_v22 }
 0x89e   :  { %v3259_v30 = vadd.f32 1.0, %v4904_v16  ;;  %v3383_v28 = vadd.f32 %v3382_v19, %v3381_v23  ;;  %v3387_v56 = vadd.f32 %v3386_v36, %v3327_v51 }
 0x89f   :  { %v4906_v13 = vpop.eup %4905  ;;  %v3392_v33 = vrot.slane %v3328_v49, 4  ;;  %v3799_v27 = vmul.f32 -1.442695, %v3167_v43  ;;  %v6603_v14 = vpop.f32.mrb[112].mxu1  ;;  %v3516_v12 = vsel %vm1597_vm6, %v3379_v21, %v3515_v60 }
 0x8a0   :  { %4915 = vrcp.f32 %v3259_v30  ;;  %v3260_v57 = vadd.f32 1.0, %v4906_v13  ;;  %v2926_v15 = vpop.f32.mrb[113].mxu1  ;;  %v3384_v34 = vrot.slane %v3383_v28, 1  ;;  %v3388_v42 = vrot.slane %v3387_v56, 2 }
 0x8a1   :  { %v3393_v63 = vadd.f32 %v3392_v33, %v3328_v49  ;;  %4917 = vpow2.f32 %v3799_v27  ;;  %v3168_v55 = vadd.f32 %v2926_v15, %v5861_v41  ;;  %v6878_v49 = vld [vmem:[#allocation46_spill] sm:$0xff] }
 0x8a2   :  { %v4908_v50 = vpop.eup %4907  ;;  %4919 = vrcp.f32 %v3260_v57  ;;  %v3385_v20 = vadd.f32 %v3384_v34, %v3383_v28  ;;  %v3389_v4 = vadd.f32 %v3388_v42, %v3387_v56 }
 0x8a3   :  { %v4910_v53 = vpop.eup %4909  ;;  %v3329_v2 = vmul.f32 %v4908_v50, %v6562_v52  ;;  %v3800_v48 = vmul.f32 -1.442695, %v3168_v55  ;;  %v6608_v5 = vpop.f32.mrb[114].mxu1  ;;  %v3394_v1 = vrot.slane %v3393_v63, 2 }
 0x8a4   :  { %v3261_v9 = vadd.f32 1.0, %v4910_v53  ;;  %v2932_v24 = vpop.f32.mrb[115].mxu1  ;;  %v3390_v45 = vrot.slane %v3389_v4, 1  ;;  %v3517_v3 = vsel %vm1599_vm7, %v3385_v20, %v3516_v12 }
 0x8a5   :  { %v3398_v51 = vrot.slane %v3329_v2, 4  ;;  %4921 = vpow2.f32 %v3800_v48  ;;  %v3169_v41 = vadd.f32 %v2932_v24, %v6877_v35  ;;  %v3395_v36 = vadd.f32 %v3394_v1, %v3393_v63 }
 0x8a6   :  { %v4912_v22 = vpop.eup %4911  ;;  %4923 = vrcp.f32 %v3261_v9  ;;  %v3391_v11 = vadd.f32 %v3390_v45, %v3389_v4 }
 0x8a7   :  { %v4914_v44 = vpop.eup %4913  ;;  %v3399_v23 = vadd.f32 %v3398_v51, %v3329_v2  ;;  %v3330_v52 = vmul.f32 %v4912_v22, %v6572_v0  ;;  %v3801_v46 = vmul.f32 -1.442695, %v3169_v41  ;;  %v6613_v58 = vpop.f32.mrb[116].mxu1  ;;  %v3396_v15 = vrot.slane %v3395_v36, 1 }
 0x8a8   :  { %v3262_v62 = vadd.f32 1.0, %v4914_v44  ;;  %v2938_v8 = vpop.f32.mrb[117].mxu1  ;;  %v3518_v19 = vsel %vm1601_vm8, %v3391_v11, %v3517_v3 }
 0x8a9   :  { %v3400_v60 = vrot.slane %v3399_v23, 2  ;;  %v3404_v16 = vrot.slane %v3330_v52, 4  ;;  %4925 = vpow2.f32 %v3801_v46  ;;  %v3170_v43 = vadd.f32 %v2938_v8, %v6878_v49  ;;  %4283 = vmatmul.mubr.f32.vlgmr.msra.gmra.mrb[94].mxu0 %v3518_v19 }
 0x8aa   :  { %v4916_v21 = vpop.eup %4915  ;;  %4927 = vrcp.f32 %v3262_v62  ;;  %4285 = vmatprep.mubr.msk.f32.mxu0 %vm5104_vm0, %v6816_v37  ;;  %v3397_v45 = vadd.f32 %v3396_v15, %v3395_v36 }
 0x8ab   :  { %v4918_v0 = vpop.eup %4917  ;;  %v3401_v30 = vadd.f32 %v3400_v60, %v3399_v23  ;;  %v3405_v28 = vadd.f32 %v3404_v16, %v3330_v52  ;;  %v3331_v56 = vmul.f32 %v4916_v21, %v6579_v6  ;;  %v3802_v13 = vmul.f32 -1.442695, %v3170_v43  ;;  %v6620_v33 = vpop.f32.mrb[118].mxu1 }
 0x8ac   :  { %v4920_v27 = vpop.eup %4919  ;;  %v3263_v12 = vadd.f32 1.0, %v4918_v0  ;;  %v2944_v57 = vpop.f32.mrb[119].mxu1 }
 0x8ad   :  { %v3406_v34 = vrot.slane %v3405_v28, 2  ;;  %v3410_v42 = vrot.slane %v3331_v56, 4  ;;  %v3332_v63 = vmul.f32 %v4920_v27, %v6583_v38  ;;  %4929 = vpow2.f32 %v3802_v13  ;;  %v6879_v38 = vld [vmem:[#allocation48_spill] sm:$0xff] }
 0x8ae   :  { %4931 = vrcp.f32 %v3263_v12  ;;  %v3171_v55 = vadd.f32 %v2944_v57, %v6857_v39  ;;  %v3402_v50 = vrot.slane %v3401_v30, 1 }
 0x8af   :  { %v4922_v20 = vpop.eup %4921  ;;  %v3411_v4 = vadd.f32 %v3410_v42, %v3331_v56  ;;  %v3416_v53 = vrot.slane %v3332_v63, 4  ;;  %v6624_v6 = vpop.f32.mrb[120].mxu1  ;;  %v3407_v2 = vadd.f32 %v3406_v34, %v3405_v28 }
 0x8b0   :  { %v4924_v48 = vpop.eup %4923  ;;  %v3264_v1 = vadd.f32 1.0, %v4922_v20  ;;  %v3803_v9 = vmul.f32 -1.442695, %v3171_v55  ;;  %v2950_v24 = vpop.f32.mrb[121].mxu1  ;;  %v3403_v3 = vadd.f32 %v3402_v50, %v3401_v30 }
 0x8b1   :  { %v3333_v51 = vmul.f32 %v4924_v48, %v6588_v61  ;;  %v3172_v35 = vadd.f32 %v2950_v24, %v6879_v38  ;;  %v3408_v41 = vrot.slane %v3407_v2, 1  ;;  %v3412_v22 = vrot.slane %v3411_v4, 2 }
 0x8b2   :  { %4933 = vrcp.f32 %v3264_v1  ;;  %v3417_v39 = vadd.f32 %v3416_v53, %v3332_v63  ;;  %v3519_v11 = vsel %vm1589_vm2, %v3403_v3, %v3397_v45 }
 0x8b3   :  { %v4926_v44 = vpop.eup %4925  ;;  %4935 = vpow2.f32 %v3803_v9  ;;  %v3804_v23 = vmul.f32 -1.442695, %v3172_v35  ;;  %v6629_v52 = vpop.f32.mrb[122].mxu1  ;;  %v3409_v46 = vadd.f32 %v3408_v41, %v3407_v2  ;;  %v3413_v62 = vadd.f32 %v3412_v22, %v3411_v4 }
 0x8b4   :  { %v4928_v8 = vpop.eup %4927  ;;  %v3265_v36 = vadd.f32 1.0, %v4926_v44  ;;  %v2956_v19 = vpop.f32.mrb[123].mxu1  ;;  %v3418_v60 = vrot.slane %v3417_v39, 2  ;;  %v3422_v61 = vrot.slane %v3333_v51, 4 }
 0x8b5   :  { %4937 = vpow2.f32 %v3804_v23  ;;  %v3173_v16 = vadd.f32 %v2956_v19, %v6858_v17  ;;  %v3334_v49 = vmul.f32 %v4928_v8, %v6593_v10  ;;  %v3414_v43 = vrot.slane %v3413_v62, 1 }
 0x8b6   :  { %4939 = vrcp.f32 %v3265_v36  ;;  %v3419_v21 = vadd.f32 %v3418_v60, %v3417_v39  ;;  %v3423_v0 = vadd.f32 %v3422_v61, %v3333_v51  ;;  %v3520_v30 = vsel %vm1591_vm3, %v3409_v46, %v3519_v11 }
 0x8b7   :  { %v4930_v28 = vpop.eup %4929  ;;  %v3805_v56 = vmul.f32 -1.442695, %v3173_v16  ;;  %v6634_v13 = vpop.f32.mrb[124].mxu1  ;;  %v3415_v27 = vadd.f32 %v3414_v43, %v3413_v62  ;;  %v3428_v12 = vrot.slane %v3334_v49, 4 }
 0x8b8   :  { %v4932_v57 = vpop.eup %4931  ;;  %v3266_v15 = vadd.f32 1.0, %v4930_v28  ;;  %v2962_v34 = vpop.f32.mrb[125].mxu1  ;;  %v3420_v42 = vrot.slane %v3419_v21, 1  ;;  %v3424_v63 = vrot.slane %v3423_v0, 2 }
 0x8b9   :  { %4941 = vpow2.f32 %v3805_v56  ;;  %v3174_v17 = vadd.f32 %v2962_v34, %v5914_v47  ;;  %v3335_v10 = vmul.f32 %v4932_v57, %v6598_v59  ;;  %v3429_v55 = vadd.f32 %v3428_v12, %v3334_v49  ;;  %v6880_v59 = vld [vmem:[#allocation50_spill] sm:$0xff] }
 0x8ba   :  { %4943 = vrcp.f32 %v3266_v15  ;;  %v3421_v50 = vadd.f32 %v3420_v42, %v3419_v21  ;;  %v3425_v20 = vadd.f32 %v3424_v63, %v3423_v0  ;;  %v3521_v4 = vsel %vm1593_vm4, %v3415_v27, %v3520_v30 }
 0x8bb   :  { %v3806_v53 = vmul.f32 -1.442695, %v3174_v17  ;;  %v6639_v2 = vpop.f32.mrb[126].mxu1  ;;  %v3430_v48 = vrot.slane %v3429_v55, 2  ;;  %v3434_v1 = vrot.slane %v3335_v10, 4 }
 0x8bc   :  { %v4934_v9 = vpop.eup %4933  ;;  %v2968_v24 = vpop.f32.mrb[127].mxu1  ;;  %v3426_v45 = vrot.slane %v3425_v20, 1  ;;  %v3522_v3 = vsel %vm1595_vm5, %v3421_v50, %v3521_v4 }
 0x8bd   :  { %v4936_v51 = vpop.eup %4935  ;;  %v3336_v47 = vmul.f32 %v4934_v9, %v6603_v14  ;;  %4945 = vpow2.f32 %v3806_v53  ;;  %v3175_v38 = vadd.f32 %v2968_v24, %v6880_v59  ;;  %v3431_v35 = vadd.f32 %v3430_v48, %v3429_v55 }
 0x8be   :  { %v3267_v41 = vadd.f32 1.0, %v4936_v51  ;;  %v3427_v22 = vadd.f32 %v3426_v45, %v3425_v20  ;;  %v3435_v39 = vadd.f32 %v3434_v1, %v3335_v10 }
 0x8bf   :  { %v4938_v11 = vpop.eup %4937  ;;  %v3440_v44 = vrot.slane %v3336_v47, 4  ;;  %v3807_v23 = vmul.f32 -1.442695, %v3175_v38  ;;  %v3432_v46 = vrot.slane %v3431_v35, 1 }
 0x8c0   :  { %v4940_v62 = vpop.eup %4939  ;;  %4947 = vrcp.f32 %v3267_v41  ;;  %v3268_v8 = vadd.f32 1.0, %v4938_v11  ;;  %v3436_v36 = vrot.slane %v3435_v39, 2  ;;  %v3523_v19 = vsel %vm1597_vm6, %v3427_v22, %v3522_v3 }
 0x8c1   :  { %v3441_v60 = vadd.f32 %v3440_v44, %v3336_v47  ;;  %v3337_v14 = vmul.f32 %v4940_v62, %v6608_v5  ;;  %4949 = vpow2.f32 %v3807_v23  ;;  %v3433_v61 = vadd.f32 %v3432_v46, %v3431_v35 }
 0x8c2   :  { %4951 = vrcp.f32 %v3268_v8  ;;  %v3437_v16 = vadd.f32 %v3436_v36, %v3435_v39 }
 0x8c3   :  { %v4942_v49 = vpop.eup %4941  ;;  %v3442_v43 = vrot.slane %v3441_v60, 2  ;;  %v3446_v21 = vrot.slane %v3337_v14, 4  ;;  %v3524_v0 = vsel %vm1599_vm7, %v3433_v61, %v3523_v19 }
 0x8c4   :  { %v4944_v30 = vpop.eup %4943  ;;  %v3269_v28 = vadd.f32 1.0, %v4942_v49  ;;  %v3438_v56 = vrot.slane %v3437_v16, 1 }
 0x8c5   :  { %v3443_v27 = vadd.f32 %v3442_v43, %v3441_v60  ;;  %v3447_v12 = vadd.f32 %v3446_v21, %v3337_v14  ;;  %v3338_v57 = vmul.f32 %v4944_v30, %v6613_v58 }
 0x8c6   :  { %4953 = vrcp.f32 %v3269_v28  ;;  %v3439_v15 = vadd.f32 %v3438_v56, %v3437_v16 }
 0x8c7   :  { %v4946_v34 = vpop.eup %4945  ;;  %v3448_v5 = vrot.slane %v3447_v12, 2  ;;  %v3452_v42 = vrot.slane %v3338_v57, 4  ;;  %v3444_v10 = vrot.slane %v3443_v27, 1 }
 0x8c8   :  { %v3270_v63 = vadd.f32 1.0, %v4946_v34  ;;  %v3525_v17 = vsel %vm1601_vm8, %v3439_v15, %v3524_v0 }
 0x8c9   :  { %v3449_v55 = vadd.f32 %v3448_v5, %v3447_v12  ;;  %v3453_v50 = vadd.f32 %v3452_v42, %v3338_v57  ;;  %4286 = vmatmul.mubr.f32.gmra.mrb[96].mxu0 %v3525_v17  ;;  %v3445_v24 = vadd.f32 %v3444_v10, %v3443_v27 }
 0x8ca   :  { %v4948_v20 = vpop.eup %4947  ;;  %4955 = vrcp.f32 %v3270_v63  ;;  %4288 = vmatprep.mubr.msk.f32.mxu0 %vm5104_vm0, %v6816_v37 }
 0x8cb   :  { %v4950_v4 = vpop.eup %4949  ;;  %v3454_v53 = vrot.slane %v3453_v50, 2  ;;  %v3339_v58 = vmul.f32 %v4948_v20, %v6620_v33  ;;  %v3450_v48 = vrot.slane %v3449_v55, 1 }
 0x8cc   :  { %v4952_v1 = vpop.eup %4951  ;;  %v3271_v9 = vadd.f32 1.0, %v4950_v4 }
 0x8cd   :  { %v3458_v45 = vrot.slane %v3339_v58, 4  ;;  %v3340_v3 = vmul.f32 %v4952_v1, %v6624_v6  ;;  %v3451_v51 = vadd.f32 %v3450_v48, %v3449_v55  ;;  %v3455_v47 = vadd.f32 %v3454_v53, %v3453_v50 }
 0x8ce   :  { %4957 = vrcp.f32 %v3271_v9 }
 0x8cf   :  { %v3459_v59 = vadd.f32 %v3458_v45, %v3339_v58  ;;  %v3464_v38 = vrot.slane %v3340_v3, 4  ;;  %v3456_v35 = vrot.slane %v3455_v47, 1  ;;  %v3526_v41 = vsel %vm1589_vm2, %v3451_v51, %v3445_v24  ;;  %v5022_v24 = vld [vmem:[%s6694_s4] sm:$0xff] }
 0x8d0   :  { %v4954_v37 = vpop.eup %4953 }
 0x8d1   :  { %v3341_v22 = vmul.f32 %v4954_v37, %v6629_v52  ;;  %v3457_v39 = vadd.f32 %v3456_v35, %v3455_v47  ;;  %v3460_v33 = vrot.slane %v3459_v59, 2  ;;  %v3465_v11 = vadd.f32 %v3464_v38, %v3340_v3 }
 0x8d3   :  { %v3461_v44 = vadd.f32 %v3460_v33, %v3459_v59  ;;  %v3466_v23 = vrot.slane %v3465_v11, 2  ;;  %v3470_v46 = vrot.slane %v3341_v22, 4  ;;  %v3527_v62 = vsel %vm1591_vm3, %v3457_v39, %v3526_v41 }
 0x8d4   :  { %v4956_v6 = vpop.eup %4955 }
 0x8d5   :  { %v3342_v8 = vmul.f32 %v4956_v6, %v6634_v13  ;;  %v3462_v36 = vrot.slane %v3461_v44, 1  ;;  %v3467_v19 = vadd.f32 %v3466_v23, %v3465_v11  ;;  %v3471_v60 = vadd.f32 %v3470_v46, %v3341_v22 }
 0x8d7   :  { %v3463_v14 = vadd.f32 %v3462_v36, %v3461_v44  ;;  %v3468_v61 = vrot.slane %v3467_v19, 1  ;;  %v3472_v16 = vrot.slane %v3471_v60, 2  ;;  %v3476_v49 = vrot.slane %v3342_v8, 4 }
 0x8d8   :  { %v4958_v43 = vpop.eup %4957 }
 0x8d9   :  { %v3343_v52 = vmul.f32 %v4958_v43, %v6639_v2  ;;  %v3469_v21 = vadd.f32 %v3468_v61, %v3467_v19  ;;  %v3473_v0 = vadd.f32 %v3472_v16, %v3471_v60  ;;  %v3477_v30 = vadd.f32 %v3476_v49, %v3342_v8 }
 0x8da   :  { %v3528_v28 = vsel %vm1593_vm4, %v3463_v14, %v3527_v62 }
 0x8db   :  { %v3474_v56 = vrot.slane %v3473_v0, 1  ;;  %v3478_v27 = vrot.slane %v3477_v30, 2  ;;  %v3482_v12 = vrot.slane %v3343_v52, 4  ;;  %v3529_v13 = vsel %vm1595_vm5, %v3469_v21, %v3528_v28 }
 0x8dd   :  { %v3475_v57 = vadd.f32 %v3474_v56, %v3473_v0  ;;  %v3479_v15 = vadd.f32 %v3478_v27, %v3477_v30  ;;  %v3483_v34 = vadd.f32 %v3482_v12, %v3343_v52 }
 0x8df   :  { %v3480_v5 = vrot.slane %v3479_v15, 1  ;;  %v3484_v42 = vrot.slane %v3483_v34, 2  ;;  %v3530_v63 = vsel %vm1597_vm6, %v3475_v57, %v3529_v13 }
 0x8e1   :  { %v3481_v17 = vadd.f32 %v3480_v5, %v3479_v15  ;;  %v3485_v10 = vadd.f32 %v3484_v42, %v3483_v34 }
 0x8e3   :  { %v3486_v2 = vrot.slane %v3485_v10, 1  ;;  %v3531_v55 = vsel %vm1599_vm7, %v3481_v17, %v3530_v63 }
 0x8e5   :  { %v3487_v50 = vadd.f32 %v3486_v2, %v3485_v10 }
 0x8e7   :  { %v3532_v20 = vsel %vm1601_vm8, %v3487_v50, %v3531_v55 }
 0x8e8   :  { %4289 = vmatmul.mubr.f32.gmra.mrb[98].mxu0 %v3532_v20 }
 0x97c   :  { %v3602_v4 = vpop.f32.mrb[94].mxu0 }
 0x97d   :  { %v3616_v53 = vadd.f32 %v3602_v4, %v5956_v25  ;;  %v4284_v58 = vpop.f32.mrb[95].mxu0 }
 0x97f   :  { %4959 = vtanh.f32 %v3616_v53 }
 0x989   :  { %v4960_v48 = vpop.eup %4959 }
 0x98a   :  { %v3628_v1 = vmul.f32 %v4960_v48, %v6547_v31 }
 0x98c   :  { %v3631_v9 = vadd.f32 %v3628_v1, %v6555_v40  ;;  %v5023_v40 = vld [vmem:[%s6694_s4 + $0x8] sm:$0xff] }
 0x98e   :  { %v3634_v45 = vmul.f32 %v5022_v24, %v3631_v9 }
 0x990   :  { %3637 = vst [vmem:[%s6700_s10] sm:$0xff] %v3634_v45 }
 0x99c   :  { %v3607_v3 = vpop.f32.mrb[96].mxu0 }
 0x99d   :  { %v3617_v51 = vadd.f32 %v3607_v3, %v5967_v54  ;;  %v4287_v25 = vpop.f32.mrb[97].mxu0 }
 0x99f   :  { %4961 = vtanh.f32 %v3617_v51 }
 0x9a9   :  { %v4962_v47 = vpop.eup %4961 }
 0x9aa   :  { %v3629_v59 = vmul.f32 %v4962_v47, %v6557_v26 }
 0x9ac   :  { %v3632_v31 = vadd.f32 %v3629_v59, %v6565_v7  ;;  %v5024_v7 = vld [vmem:[%s6694_s4 + $0x10] sm:$0xff] }
 0x9ae   :  { %v3635_v38 = vmul.f32 %v5023_v40, %v3632_v31 }
 0x9b0   :  { %3638 = vst [vmem:[%s6700_s10 + $0x8] sm:$0xff] %v3635_v38 }
 0x9bb   :  { %v3612_v35 = vpop.f32.mrb[98].mxu0 }
 0x9bc   :  { %v3618_v41 = vadd.f32 %v3612_v35, %v5643_v32  ;;  %v4290_v54 = vpop.f32.mrb[99].mxu0 }
 0x9be   :  { %4963 = vtanh.f32 %v3618_v41 }
 0x9c8   :  { %v4964_v37 = vpop.eup %4963 }
 0x9c9   :  { %v3630_v22 = vmul.f32 %v4964_v37, %v6567_v18 }
 0x9cb   :  { %v3633_v26 = vadd.f32 %v3630_v22, %v6575_v29 }
 0x9cd   :  { %v3636_v39 = vmul.f32 %v5024_v7, %v3633_v26 }
 0x9cf   :  { %3639 = vst [vmem:[%s6700_s10 + $0x10] sm:$0xff] %v3636_v39 }
 0x9d0   :  { %3644 = vsyncpa [#allocation3], 1 }
 0x9d1   :  { %3645 = vsyncpa [#allocation5], 1 }

</bundles_post_ra>
